<compile_context>
chip_gen: v7x
topology: tpu7x:2x2x1
jax: 0.10.0
libtpu: 0.0.40
codegen_flags: <defaults>
</compile_context>

<pallas_src>
import jax
import jax.numpy as jnp
from jax.experimental import pallas as pl
from jax.experimental.pallas import tpu as pltpu


def _conv3x3_rows(slab, w_ref, n_rows, W, C):
    """3x3 stride-1 conv of `slab` (n_rows+2, W+2, C) with kw folded into K.

    w_ref is (3, 3*C, C): per kh a (3*C, C) slab (kw-major, channel-minor).
    Returns an f32 (n_rows*W, C) accumulator held in vregs (written by caller
    exactly once), i.e. 3 MXU matmuls with K = 3*C instead of 9 with K = C.
    """
    acc = None
    for kh in range(3):
        s = slab[kh:kh + n_rows, :, :]                               # (n_rows, W+2, C)
        patch = jnp.concatenate(
            [s[:, 0:W, :], s[:, 1:W + 1, :], s[:, 2:W + 2, :]], axis=-1)
        patch = patch.reshape(n_rows * W, 3 * C)                     # (M, 3C)
        d = jnp.dot(patch, w_ref[kh], preferred_element_type=jnp.float32)
        acc = d if acc is None else acc + d
    return acc


def basic_block_b_kernel(xpad_ref, w1_ref, s1_ref, b1_ref,
                         w2_ref, s2_ref, b2_ref,
                         out_ref, midpad_ref):
    TH, W, C = out_ref.shape
    cdt = midpad_ref.dtype
    r = pl.program_id(1)
    row0 = pl.multiple_of(r * TH, TH)

    # ---- conv1 on this row tile (+1 halo row each side) --------------------
    # Needs padded-input rows [row0, row0 + TH + 4); loaded once per tile.
    x_slab = xpad_ref[pl.ds(row0, TH + 4), :, :]                     # (TH+4, W+2, C)
    a1 = _conv3x3_rows(x_slab, w1_ref, TH + 2, W, C)                 # f32, in vregs
    out1 = jnp.maximum(a1 * s1_ref[...] + b1_ref[...], 0.0)         # bn1 + relu

    # ---- re-pad conv1 output in VMEM for conv2 (1-px zero border) ----------
    midpad_ref[:, 0:1, :] = jnp.zeros((TH + 2, 1, C), cdt)
    midpad_ref[:, W + 1:W + 2, :] = jnp.zeros((TH + 2, 1, C), cdt)
    midpad_ref[:, 1:W + 1, :] = out1.reshape(TH + 2, W, C).astype(cdt)

    # conv2's zero padding applies to conv1's *output*: halo rows that fall
    # outside the image (computed above from padded input rows) must be zero.
    @pl.when(r == 0)
    def _():
        midpad_ref[0:1, :, :] = jnp.zeros((1, W + 2, C), cdt)

    @pl.when(r == pl.num_programs(1) - 1)
    def _():
        midpad_ref[TH + 1:TH + 2, :, :] = jnp.zeros((1, W + 2, C), cdt)

    # ---- conv2 + bn2 + residual + relu --------------------------------------
    a2 = _conv3x3_rows(midpad_ref[...], w2_ref, TH, W, C)            # (TH*W, C) f32
    ident = x_slab[2:TH + 2, 1:W + 1, :].reshape(TH * W, C).astype(jnp.float32)
    out = jnp.maximum(a2 * s2_ref[...] + b2_ref[...] + ident, 0.0)
    out_ref[...] = out.reshape(TH, W, C).astype(out_ref.dtype)


def _vmem_limit_bytes():
    """Per-generation VMEM cap: ~3/4 of physical, never above 96 MiB."""
    try:
        cap = int(pltpu.get_tpu_info().vmem_capacity_bytes)
    except Exception:
        cap = 128 * 1024 * 1024
    return int(min(96 * 1024 * 1024, (cap * 3) // 4))


def basic_block_b(x_nchw, w1, bn1, w2, bn2, eps=1e-5,
                  compute_dtype=jnp.bfloat16, row_tile=8):
    """x_nchw: (N, C, H, W).  w*: (Cout, Cin, 3, 3) PyTorch layout.
    bn*: dict with gamma, beta, running_mean, running_var (shape (C,))."""
    N, Cin, H, W = x_nchw.shape
    Cout = w1.shape[0]
    assert w1.shape == (Cout, Cin, 3, 3) and w2.shape == (Cout, Cout, 3, 3)
    assert Cin == Cout, "stride=1 / no-downsample block requires inplanes == planes"

    LANE = 128
    C = ((Cout + LANE - 1) // LANE) * LANE      # lane-dense channels

    TH = row_tile if (H % row_tile == 0) else H  # output rows per grid step
    R = H // TH

    # ---- glue (once per block here; in a full network the NHWC /
    #      channel-padded layout would persist and be paid once) ----
    x_nhwc = jnp.transpose(x_nchw, (0, 2, 3, 1))                              # (N,H,W,Cin)
    x_nhwc = jnp.pad(x_nhwc, ((0, 0), (0, 0), (0, 0), (0, C - Cin)))          # pad channels
    # 2-row top/bottom pad (1 conv pad + 1 halo row per tile), 1-col pad.
    x_pad = jnp.pad(x_nhwc, ((0, 0), (2, 2), (1, 1), (0, 0))).astype(compute_dtype)

    def prep_w(w):
        wk = jnp.transpose(w, (2, 3, 1, 0))                                   # (3,3,Cin,Cout)
        wk = jnp.pad(wk, ((0, 0), (0, 0),
                          (0, C - wk.shape[2]), (0, C - wk.shape[3])))
        return wk.reshape(3, 3 * C, C).astype(compute_dtype)                  # kw folded into K

    def fold(bn):
        scale = bn["gamma"] / jnp.sqrt(bn["running_var"] + eps)
        bias = bn["beta"] - bn["running_mean"] * scale
        scale = jnp.pad(scale, (0, C - Cout)).reshape(1, C).astype(jnp.float32)
        bias = jnp.pad(bias, (0, C - Cout)).reshape(1, C).astype(jnp.float32)
        return scale, bias

    w1_k, w2_k = prep_w(w1), prep_w(w2)
    s1, b1 = fold(bn1)
    s2, b2 = fold(bn2)

    out_nhwc = pl.pallas_call(
        basic_block_b_kernel,
        out_shape=jax.ShapeDtypeStruct((N, H, W, C), compute_dtype),
        grid=(N, R),
        in_specs=[
            # Whole padded image resident per n (block index ignores r -> only
            # re-DMA'd when n changes); row tiles sliced inside the kernel.
            pl.BlockSpec((None, H + 4, W + 2, C), lambda n, r: (n, 0, 0, 0)),
            pl.BlockSpec((3, 3 * C, C), lambda n, r: (0, 0, 0)),              # w1 (K=3C)
            pl.BlockSpec((1, C), lambda n, r: (0, 0)),                        # bn1 scale
            pl.BlockSpec((1, C), lambda n, r: (0, 0)),                        # bn1 bias
            pl.BlockSpec((3, 3 * C, C), lambda n, r: (0, 0, 0)),              # w2 (K=3C)
            pl.BlockSpec((1, C), lambda n, r: (0, 0)),                        # bn2 scale
            pl.BlockSpec((1, C), lambda n, r: (0, 0)),                        # bn2 bias
        ],
        out_specs=pl.BlockSpec((None, TH, W, C), lambda n, r: (n, r, 0, 0)),
        scratch_shapes=[
            pltpu.VMEM((TH + 2, W + 2, C), compute_dtype),   # re-padded conv1 tile
        ],
        compiler_params=pltpu.CompilerParams(
            dimension_semantics=("parallel", "parallel"),
            vmem_limit_bytes=_vmem_limit_bytes(),
        ),
    )(x_pad, w1_k, s1, b1, w2_k, s2, b2)

    out = out_nhwc[..., :Cout]                                                # drop channel pad
    return jnp.transpose(out, (0, 3, 1, 2))                                   # back to NCHW


def _reference(x_nchw, w1, bn1, w2, bn2, eps=1e-5):
    """Pure-JAX reference (NCHW conv) for validation."""
    def conv(x, w):
        return jax.lax.conv_general_dilated(
            x, w, window_strides=(1, 1), padding=((1, 1), (1, 1)),
            dimension_numbers=("NCHW", "OIHW", "NCHW"))

    def bn(x, p):
        scale = (p["gamma"] / jnp.sqrt(p["running_var"] + eps)).reshape(1, -1, 1, 1)
        bias = (p["beta"] - p["running_mean"] * p["gamma"]
                / jnp.sqrt(p["running_var"] + eps)).reshape(1, -1, 1, 1)
        return x * scale + bias

    out = jax.nn.relu(bn(conv(x_nchw, w1), bn1))
    out = bn(conv(out, w2), bn2)
    return jax.nn.relu(out + x_nchw)


if __name__ == "__main__":
    key = jax.random.PRNGKey(0)
    k = jax.random.split(key, 8)

    N, C, H, W = 2, 4, 16, 16        # inplanes = planes = 4, stride = 1
    x = jax.random.normal(k[0], (N, C, H, W), jnp.float32)

    w1 = jax.random.normal(k[1], (C, C, 3, 3), jnp.float32) * 0.1
    w2 = jax.random.normal(k[2], (C, C, 3, 3), jnp.float32) * 0.1
    bn1 = {
        "gamma": jax.random.normal(k[3], (C,), jnp.float32) * 0.1 + 1.0,
        "beta": jax.random.normal(k[4], (C,), jnp.float32) * 0.1,
        "running_mean": jax.random.normal(k[5], (C,), jnp.float32) * 0.1,
        "running_var": jnp.abs(jax.random.normal(k[6], (C,), jnp.float32)) * 0.1 + 1.0,
    }
    bn2 = {
        "gamma": jnp.linspace(0.9, 1.1, C, dtype=jnp.float32),
        "beta": jnp.linspace(-0.1, 0.1, C, dtype=jnp.float32),
        "running_mean": jnp.linspace(-0.05, 0.05, C, dtype=jnp.float32),
        "running_var": jnp.linspace(0.9, 1.2, C, dtype=jnp.float32),
    }

    ref = jax.block_until_ready(_reference(x, w1, bn1, w2, bn2))

    # Exact-semantics check with f32 MXU operands (f32 output).
    out_f32 = jax.block_until_ready(
        basic_block_b(x, w1, bn1, w2, bn2, compute_dtype=jnp.float32))
    assert out_f32.shape == (N, C, H, W)
    assert jnp.max(jnp.abs(out_f32 - ref)) < 1e-4, "f32 path mismatch vs reference"

    # Default fast path: bf16 MXU operands + bf16 output, f32 accumulate/epilogue.
    out_bf16 = jax.block_until_ready(basic_block_b(x, w1, bn1, w2, bn2))
    assert out_bf16.shape == (N, C, H, W)
    assert jnp.max(jnp.abs(out_bf16.astype(jnp.float32) - ref)) < 1e-1, \
        "bf16 path mismatch vs reference"

    print("KERNEL_OK")
</pallas_src>

<mosaic_0001>
module attributes {stable_mosaic.version = 11 : i64} {
  func.func @basic_block_b_kernel(%arg0: i32, %arg1: i32, %arg2: memref<1x20x18x128xf32, #tpu.memory_space<vmem>>, %arg3: memref<3x384x128xf32, #tpu.memory_space<vmem>>, %arg4: memref<1x128xf32, #tpu.memory_space<vmem>>, %arg5: memref<1x128xf32, #tpu.memory_space<vmem>>, %arg6: memref<3x384x128xf32, #tpu.memory_space<vmem>>, %arg7: memref<1x128xf32, #tpu.memory_space<vmem>>, %arg8: memref<1x128xf32, #tpu.memory_space<vmem>>, %arg9: memref<1x8x16x128xf32, #tpu.memory_space<vmem>>, %arg10: memref<10x18x128xf32, #tpu.memory_space<vmem>>) attributes {dimension_semantics = [#tpu.dimension_semantics<parallel>, #tpu.dimension_semantics<parallel>], iteration_bounds = array<i64: 2, 2>, scalar_prefetch = 0 : i64, scratch_operands = 1 : i64, tpu.core_type = #tpu.core_type<tc>, window_params = [{transform_indices = @transform_0, window_bounds = array<i64: 1, 20, 18, 128>}, {pipeline_mode = #tpu.pipeline_mode<synchronous>, transform_indices = @transform_1, window_bounds = array<i64: 3, 384, 128>}, {pipeline_mode = #tpu.pipeline_mode<synchronous>, transform_indices = @transform_2, window_bounds = array<i64: 1, 128>}, {pipeline_mode = #tpu.pipeline_mode<synchronous>, transform_indices = @transform_3, window_bounds = array<i64: 1, 128>}, {pipeline_mode = #tpu.pipeline_mode<synchronous>, transform_indices = @transform_4, window_bounds = array<i64: 3, 384, 128>}, {pipeline_mode = #tpu.pipeline_mode<synchronous>, transform_indices = @transform_5, window_bounds = array<i64: 1, 128>}, {pipeline_mode = #tpu.pipeline_mode<synchronous>, transform_indices = @transform_6, window_bounds = array<i64: 1, 128>}, {transform_indices = @transform_7, window_bounds = array<i64: 1, 8, 16, 128>}]} {
    %c8_i32 = arith.constant 8 : i32
    %0 = arith.muli %arg1, %c8_i32 : i32
    %1 = tpu.assume_multiple %0, 8 : i32
    %c0 = arith.constant 0 : index
    %2 = arith.index_cast %1 : i32 to index
    %c0_0 = arith.constant 0 : index
    %c0_1 = arith.constant 0 : index
    %3 = vector.load %arg2[%c0, %2, %c0_0, %c0_1] : memref<1x20x18x128xf32, #tpu.memory_space<vmem>>, vector<1x12x18x128xf32>
    %4 = vector.shape_cast %3 : vector<1x12x18x128xf32> to vector<12x18x128xf32>
    %5 = vector.extract_strided_slice %4 {offsets = [0, 0, 0], sizes = [10, 18, 128], strides = [1, 1, 1]} : vector<12x18x128xf32> to vector<10x18x128xf32>
    %6 = vector.extract_strided_slice %5 {offsets = [0, 0, 0], sizes = [10, 16, 128], strides = [1, 1, 1]} : vector<10x18x128xf32> to vector<10x16x128xf32>
    %7 = vector.extract_strided_slice %5 {offsets = [0, 1, 0], sizes = [10, 16, 128], strides = [1, 1, 1]} : vector<10x18x128xf32> to vector<10x16x128xf32>
    %8 = vector.extract_strided_slice %5 {offsets = [0, 2, 0], sizes = [10, 16, 128], strides = [1, 1, 1]} : vector<10x18x128xf32> to vector<10x16x128xf32>
    %9 = tpu.concatenate %6, %7, %8 in 2 : vector<10x16x128xf32>, vector<10x16x128xf32>, vector<10x16x128xf32> -> vector<10x16x384xf32>
    %10 = vector.shape_cast %9 : vector<10x16x384xf32> to vector<160x384xf32>
    %c0_2 = arith.constant 0 : index
    %c0_3 = arith.constant 0 : index
    %c0_4 = arith.constant 0 : index
    %11 = vector.load %arg3[%c0_2, %c0_3, %c0_4] : memref<3x384x128xf32, #tpu.memory_space<vmem>>, vector<1x384x128xf32>
    %12 = vector.shape_cast %11 : vector<1x384x128xf32> to vector<384x128xf32>
    %cst = arith.constant dense<0.000000e+00> : vector<160x128xf32>
    %13 = tpu.matmul %10, %12, %cst {dimension_numbers = #tpu.dot_dimension_numbers<[1], [0], [0], [1], [0, 0, 1, 1], [], []>} : vector<160x384xf32>, vector<384x128xf32>, vector<160x128xf32> -> vector<160x128xf32>
    %14 = vector.extract_strided_slice %4 {offsets = [1, 0, 0], sizes = [10, 18, 128], strides = [1, 1, 1]} : vector<12x18x128xf32> to vector<10x18x128xf32>
    %15 = vector.extract_strided_slice %14 {offsets = [0, 0, 0], sizes = [10, 16, 128], strides = [1, 1, 1]} : vector<10x18x128xf32> to vector<10x16x128xf32>
    %16 = vector.extract_strided_slice %14 {offsets = [0, 1, 0], sizes = [10, 16, 128], strides = [1, 1, 1]} : vector<10x18x128xf32> to vector<10x16x128xf32>
    %17 = vector.extract_strided_slice %14 {offsets = [0, 2, 0], sizes = [10, 16, 128], strides = [1, 1, 1]} : vector<10x18x128xf32> to vector<10x16x128xf32>
    %18 = tpu.concatenate %15, %16, %17 in 2 : vector<10x16x128xf32>, vector<10x16x128xf32>, vector<10x16x128xf32> -> vector<10x16x384xf32>
    %19 = vector.shape_cast %18 : vector<10x16x384xf32> to vector<160x384xf32>
    %c1 = arith.constant 1 : index
    %c0_5 = arith.constant 0 : index
    %c0_6 = arith.constant 0 : index
    %20 = vector.load %arg3[%c1, %c0_5, %c0_6] : memref<3x384x128xf32, #tpu.memory_space<vmem>>, vector<1x384x128xf32>
    %21 = vector.shape_cast %20 : vector<1x384x128xf32> to vector<384x128xf32>
    %cst_7 = arith.constant dense<0.000000e+00> : vector<160x128xf32>
    %22 = tpu.matmul %19, %21, %cst_7 {dimension_numbers = #tpu.dot_dimension_numbers<[1], [0], [0], [1], [0, 0, 1, 1], [], []>} : vector<160x384xf32>, vector<384x128xf32>, vector<160x128xf32> -> vector<160x128xf32>
    %23 = arith.addf %13, %22 : vector<160x128xf32>
    %24 = vector.extract_strided_slice %4 {offsets = [2, 0, 0], sizes = [10, 18, 128], strides = [1, 1, 1]} : vector<12x18x128xf32> to vector<10x18x128xf32>
    %25 = vector.extract_strided_slice %24 {offsets = [0, 0, 0], sizes = [10, 16, 128], strides = [1, 1, 1]} : vector<10x18x128xf32> to vector<10x16x128xf32>
    %26 = vector.extract_strided_slice %24 {offsets = [0, 1, 0], sizes = [10, 16, 128], strides = [1, 1, 1]} : vector<10x18x128xf32> to vector<10x16x128xf32>
    %27 = vector.extract_strided_slice %24 {offsets = [0, 2, 0], sizes = [10, 16, 128], strides = [1, 1, 1]} : vector<10x18x128xf32> to vector<10x16x128xf32>
    %28 = tpu.concatenate %25, %26, %27 in 2 : vector<10x16x128xf32>, vector<10x16x128xf32>, vector<10x16x128xf32> -> vector<10x16x384xf32>
    %29 = vector.shape_cast %28 : vector<10x16x384xf32> to vector<160x384xf32>
    %c2 = arith.constant 2 : index
    %c0_8 = arith.constant 0 : index
    %c0_9 = arith.constant 0 : index
    %30 = vector.load %arg3[%c2, %c0_8, %c0_9] : memref<3x384x128xf32, #tpu.memory_space<vmem>>, vector<1x384x128xf32>
    %31 = vector.shape_cast %30 : vector<1x384x128xf32> to vector<384x128xf32>
    %cst_10 = arith.constant dense<0.000000e+00> : vector<160x128xf32>
    %32 = tpu.matmul %29, %31, %cst_10 {dimension_numbers = #tpu.dot_dimension_numbers<[1], [0], [0], [1], [0, 0, 1, 1], [], []>} : vector<160x384xf32>, vector<384x128xf32>, vector<160x128xf32> -> vector<160x128xf32>
    %33 = arith.addf %23, %32 : vector<160x128xf32>
    %c0_11 = arith.constant 0 : index
    %c0_12 = arith.constant 0 : index
    %34 = vector.load %arg4[%c0_11, %c0_12] : memref<1x128xf32, #tpu.memory_space<vmem>>, vector<1x128xf32>
    %35 = vector.broadcast %34 : vector<1x128xf32> to vector<160x128xf32>
    %36 = arith.mulf %33, %35 : vector<160x128xf32>
    %c0_13 = arith.constant 0 : index
    %c0_14 = arith.constant 0 : index
    %37 = vector.load %arg5[%c0_13, %c0_14] : memref<1x128xf32, #tpu.memory_space<vmem>>, vector<1x128xf32>
    %38 = vector.broadcast %37 : vector<1x128xf32> to vector<160x128xf32>
    %39 = arith.addf %36, %38 : vector<160x128xf32>
    %cst_15 = arith.constant 0.000000e+00 : f32
    %40 = vector.broadcast %cst_15 : f32 to vector<160x128xf32>
    %41 = arith.maximumf %39, %40 : vector<160x128xf32>
    %cst_16 = arith.constant 0.000000e+00 : f32
    %42 = vector.broadcast %cst_16 : f32 to vector<10x1x128xf32>
    %c0_17 = arith.constant 0 : index
    %c0_18 = arith.constant 0 : index
    %c0_19 = arith.constant 0 : index
    %43 = vector.load %arg10[%c0_17, %c0_18, %c0_19] : memref<10x18x128xf32, #tpu.memory_space<vmem>>, vector<10x1x128xf32>
    tpu.vector_store %arg10[%c0_17, %c0_18, %c0_19], %42 {strides = array<i32>} : memref<10x18x128xf32, #tpu.memory_space<vmem>>, vector<10x1x128xf32>,
    %cst_20 = arith.constant 0.000000e+00 : f32
    %44 = vector.broadcast %cst_20 : f32 to vector<10x1x128xf32>
    %c0_21 = arith.constant 0 : index
    %c17 = arith.constant 17 : index
    %c0_22 = arith.constant 0 : index
    %45 = vector.load %arg10[%c0_21, %c17, %c0_22] : memref<10x18x128xf32, #tpu.memory_space<vmem>>, vector<10x1x128xf32>
    tpu.vector_store %arg10[%c0_21, %c17, %c0_22], %44 {strides = array<i32>} : memref<10x18x128xf32, #tpu.memory_space<vmem>>, vector<10x1x128xf32>,
    %46 = vector.shape_cast %41 : vector<160x128xf32> to vector<10x16x128xf32>
    %c0_23 = arith.constant 0 : index
    %c1_24 = arith.constant 1 : index
    %c0_25 = arith.constant 0 : index
    %47 = vector.load %arg10[%c0_23, %c1_24, %c0_25] : memref<10x18x128xf32, #tpu.memory_space<vmem>>, vector<10x16x128xf32>
    tpu.vector_store %arg10[%c0_23, %c1_24, %c0_25], %46 {strides = array<i32>} : memref<10x18x128xf32, #tpu.memory_space<vmem>>, vector<10x16x128xf32>,
    %c0_i32 = arith.constant 0 : i32
    %48 = arith.cmpi eq, %arg1, %c0_i32 : i32
    %49 = arith.extui %48 : i1 to i32
    %c0_i32_26 = arith.constant 0 : i32
    %50 = arith.cmpi ne, %49, %c0_i32_26 : i32
    scf.if %50 {
      %cst_52 = arith.constant 0.000000e+00 : f32
      %99 = vector.broadcast %cst_52 : f32 to vector<1x18x128xf32>
      %c0_53 = arith.constant 0 : index
      %c0_54 = arith.constant 0 : index
      %c0_55 = arith.constant 0 : index
      %100 = vector.load %arg10[%c0_53, %c0_54, %c0_55] : memref<10x18x128xf32, #tpu.memory_space<vmem>>, vector<1x18x128xf32>
      tpu.vector_store %arg10[%c0_53, %c0_54, %c0_55], %99 {strides = array<i32>} : memref<10x18x128xf32, #tpu.memory_space<vmem>>, vector<1x18x128xf32>,
    } else {
    }
    %c1_i32 = arith.constant 1 : i32
    %51 = arith.cmpi eq, %arg1, %c1_i32 : i32
    %52 = arith.extui %51 : i1 to i32
    %c0_i32_27 = arith.constant 0 : i32
    %53 = arith.cmpi ne, %52, %c0_i32_27 : i32
    scf.if %53 {
      %cst_52 = arith.constant 0.000000e+00 : f32
      %99 = vector.broadcast %cst_52 : f32 to vector<1x18x128xf32>
      %c9 = arith.constant 9 : index
      %c0_53 = arith.constant 0 : index
      %c0_54 = arith.constant 0 : index
      %100 = vector.load %arg10[%c9, %c0_53, %c0_54] : memref<10x18x128xf32, #tpu.memory_space<vmem>>, vector<1x18x128xf32>
      tpu.vector_store %arg10[%c9, %c0_53, %c0_54], %99 {strides = array<i32>} : memref<10x18x128xf32, #tpu.memory_space<vmem>>, vector<1x18x128xf32>,
    } else {
    }
    %c0_28 = arith.constant 0 : index
    %c0_29 = arith.constant 0 : index
    %c0_30 = arith.constant 0 : index
    %54 = vector.load %arg10[%c0_28, %c0_29, %c0_30] : memref<10x18x128xf32, #tpu.memory_space<vmem>>, vector<10x18x128xf32>
    %55 = vector.extract_strided_slice %54 {offsets = [0, 0, 0], sizes = [8, 18, 128], strides = [1, 1, 1]} : vector<10x18x128xf32> to vector<8x18x128xf32>
    %56 = vector.extract_strided_slice %55 {offsets = [0, 0, 0], sizes = [8, 16, 128], strides = [1, 1, 1]} : vector<8x18x128xf32> to vector<8x16x128xf32>
    %57 = vector.extract_strided_slice %55 {offsets = [0, 1, 0], sizes = [8, 16, 128], strides = [1, 1, 1]} : vector<8x18x128xf32> to vector<8x16x128xf32>
    %58 = vector.extract_strided_slice %55 {offsets = [0, 2, 0], sizes = [8, 16, 128], strides = [1, 1, 1]} : vector<8x18x128xf32> to vector<8x16x128xf32>
    %59 = tpu.concatenate %56, %57, %58 in 2 : vector<8x16x128xf32>, vector<8x16x128xf32>, vector<8x16x128xf32> -> vector<8x16x384xf32>
    %60 = vector.shape_cast %59 : vector<8x16x384xf32> to vector<128x384xf32>
    %c0_31 = arith.constant 0 : index
    %c0_32 = arith.constant 0 : index
    %c0_33 = arith.constant 0 : index
    %61 = vector.load %arg6[%c0_31, %c0_32, %c0_33] : memref<3x384x128xf32, #tpu.memory_space<vmem>>, vector<1x384x128xf32>
    %62 = vector.shape_cast %61 : vector<1x384x128xf32> to vector<384x128xf32>
    %cst_34 = arith.constant dense<0.000000e+00> : vector<128x128xf32>
    %63 = tpu.matmul %60, %62, %cst_34 {dimension_numbers = #tpu.dot_dimension_numbers<[1], [0], [0], [1], [0, 0, 1, 1], [], []>} : vector<128x384xf32>, vector<384x128xf32>, vector<128x128xf32> -> vector<128x128xf32>
    %64 = vector.extract_strided_slice %54 {offsets = [1, 0, 0], sizes = [8, 18, 128], strides = [1, 1, 1]} : vector<10x18x128xf32> to vector<8x18x128xf32>
    %65 = vector.extract_strided_slice %64 {offsets = [0, 0, 0], sizes = [8, 16, 128], strides = [1, 1, 1]} : vector<8x18x128xf32> to vector<8x16x128xf32>
    %66 = vector.extract_strided_slice %64 {offsets = [0, 1, 0], sizes = [8, 16, 128], strides = [1, 1, 1]} : vector<8x18x128xf32> to vector<8x16x128xf32>
    %67 = vector.extract_strided_slice %64 {offsets = [0, 2, 0], sizes = [8, 16, 128], strides = [1, 1, 1]} : vector<8x18x128xf32> to vector<8x16x128xf32>
    %68 = tpu.concatenate %65, %66, %67 in 2 : vector<8x16x128xf32>, vector<8x16x128xf32>, vector<8x16x128xf32> -> vector<8x16x384xf32>
    %69 = vector.shape_cast %68 : vector<8x16x384xf32> to vector<128x384xf32>
    %c1_35 = arith.constant 1 : index
    %c0_36 = arith.constant 0 : index
    %c0_37 = arith.constant 0 : index
    %70 = vector.load %arg6[%c1_35, %c0_36, %c0_37] : memref<3x384x128xf32, #tpu.memory_space<vmem>>, vector<1x384x128xf32>
    %71 = vector.shape_cast %70 : vector<1x384x128xf32> to vector<384x128xf32>
    %cst_38 = arith.constant dense<0.000000e+00> : vector<128x128xf32>
    %72 = tpu.matmul %69, %71, %cst_38 {dimension_numbers = #tpu.dot_dimension_numbers<[1], [0], [0], [1], [0, 0, 1, 1], [], []>} : vector<128x384xf32>, vector<384x128xf32>, vector<128x128xf32> -> vector<128x128xf32>
    %73 = arith.addf %63, %72 : vector<128x128xf32>
    %74 = vector.extract_strided_slice %54 {offsets = [2, 0, 0], sizes = [8, 18, 128], strides = [1, 1, 1]} : vector<10x18x128xf32> to vector<8x18x128xf32>
    %75 = vector.extract_strided_slice %74 {offsets = [0, 0, 0], sizes = [8, 16, 128], strides = [1, 1, 1]} : vector<8x18x128xf32> to vector<8x16x128xf32>
    %76 = vector.extract_strided_slice %74 {offsets = [0, 1, 0], sizes = [8, 16, 128], strides = [1, 1, 1]} : vector<8x18x128xf32> to vector<8x16x128xf32>
    %77 = vector.extract_strided_slice %74 {offsets = [0, 2, 0], sizes = [8, 16, 128], strides = [1, 1, 1]} : vector<8x18x128xf32> to vector<8x16x128xf32>
    %78 = tpu.concatenate %75, %76, %77 in 2 : vector<8x16x128xf32>, vector<8x16x128xf32>, vector<8x16x128xf32> -> vector<8x16x384xf32>
    %79 = vector.shape_cast %78 : vector<8x16x384xf32> to vector<128x384xf32>
    %c2_39 = arith.constant 2 : index
    %c0_40 = arith.constant 0 : index
    %c0_41 = arith.constant 0 : index
    %80 = vector.load %arg6[%c2_39, %c0_40, %c0_41] : memref<3x384x128xf32, #tpu.memory_space<vmem>>, vector<1x384x128xf32>
    %81 = vector.shape_cast %80 : vector<1x384x128xf32> to vector<384x128xf32>
    %cst_42 = arith.constant dense<0.000000e+00> : vector<128x128xf32>
    %82 = tpu.matmul %79, %81, %cst_42 {dimension_numbers = #tpu.dot_dimension_numbers<[1], [0], [0], [1], [0, 0, 1, 1], [], []>} : vector<128x384xf32>, vector<384x128xf32>, vector<128x128xf32> -> vector<128x128xf32>
    %83 = arith.addf %73, %82 : vector<128x128xf32>
    %84 = vector.extract_strided_slice %4 {offsets = [2, 1, 0], sizes = [8, 16, 128], strides = [1, 1, 1]} : vector<12x18x128xf32> to vector<8x16x128xf32>
    %85 = vector.shape_cast %84 : vector<8x16x128xf32> to vector<128x128xf32>
    %c0_43 = arith.constant 0 : index
    %c0_44 = arith.constant 0 : index
    %86 = vector.load %arg7[%c0_43, %c0_44] : memref<1x128xf32, #tpu.memory_space<vmem>>, vector<1x128xf32>
    %87 = vector.broadcast %86 : vector<1x128xf32> to vector<128x128xf32>
    %88 = arith.mulf %83, %87 : vector<128x128xf32>
    %c0_45 = arith.constant 0 : index
    %c0_46 = arith.constant 0 : index
    %89 = vector.load %arg8[%c0_45, %c0_46] : memref<1x128xf32, #tpu.memory_space<vmem>>, vector<1x128xf32>
    %90 = vector.broadcast %89 : vector<1x128xf32> to vector<128x128xf32>
    %91 = arith.addf %88, %90 : vector<128x128xf32>
    %92 = arith.addf %91, %85 : vector<128x128xf32>
    %cst_47 = arith.constant 0.000000e+00 : f32
    %93 = vector.broadcast %cst_47 : f32 to vector<128x128xf32>
    %94 = arith.maximumf %92, %93 : vector<128x128xf32>
    %95 = vector.shape_cast %94 : vector<128x128xf32> to vector<8x16x128xf32>
    %c0_48 = arith.constant 0 : index
    %c0_49 = arith.constant 0 : index
    %c0_50 = arith.constant 0 : index
    %c0_51 = arith.constant 0 : index
    %96 = vector.load %arg9[%c0_48, %c0_49, %c0_50, %c0_51] : memref<1x8x16x128xf32, #tpu.memory_space<vmem>>, vector<1x8x16x128xf32>
    %97 = vector.shape_cast %96 : vector<1x8x16x128xf32> to vector<8x16x128xf32>
    %98 = vector.shape_cast %95 : vector<8x16x128xf32> to vector<1x8x16x128xf32>
    tpu.vector_store %arg9[%c0_48, %c0_49, %c0_50, %c0_51], %98 {strides = array<i32>} : memref<1x8x16x128xf32, #tpu.memory_space<vmem>>, vector<1x8x16x128xf32>,
    return
  }
  func.func @transform_0(%arg0: i32, %arg1: i32) -> (i32, i32, i32, i32) {
    %c0_i32 = arith.constant 0 : i32
    %c0_i32_0 = arith.constant 0 : i32
    %c0_i32_1 = arith.constant 0 : i32
    %c0_i32_2 = arith.constant 0 : i32
    return %arg0, %c0_i32, %c0_i32_0, %c0_i32_1 : i32, i32, i32, i32
  }
  func.func @transform_1(%arg0: i32, %arg1: i32) -> (i32, i32, i32) {
    %c0_i32 = arith.constant 0 : i32
    %c0_i32_0 = arith.constant 0 : i32
    %c0_i32_1 = arith.constant 0 : i32
    %c0_i32_2 = arith.constant 0 : i32
    return %c0_i32, %c0_i32_0, %c0_i32_1 : i32, i32, i32
  }
  func.func @transform_2(%arg0: i32, %arg1: i32) -> (i32, i32) {
    %c0_i32 = arith.constant 0 : i32
    %c0_i32_0 = arith.constant 0 : i32
    %c0_i32_1 = arith.constant 0 : i32
    return %c0_i32, %c0_i32_0 : i32, i32
  }
  func.func @transform_3(%arg0: i32, %arg1: i32) -> (i32, i32) {
    %c0_i32 = arith.constant 0 : i32
    %c0_i32_0 = arith.constant 0 : i32
    %c0_i32_1 = arith.constant 0 : i32
    return %c0_i32, %c0_i32_0 : i32, i32
  }
  func.func @transform_4(%arg0: i32, %arg1: i32) -> (i32, i32, i32) {
    %c0_i32 = arith.constant 0 : i32
    %c0_i32_0 = arith.constant 0 : i32
    %c0_i32_1 = arith.constant 0 : i32
    %c0_i32_2 = arith.constant 0 : i32
    return %c0_i32, %c0_i32_0, %c0_i32_1 : i32, i32, i32
  }
  func.func @transform_5(%arg0: i32, %arg1: i32) -> (i32, i32) {
    %c0_i32 = arith.constant 0 : i32
    %c0_i32_0 = arith.constant 0 : i32
    %c0_i32_1 = arith.constant 0 : i32
    return %c0_i32, %c0_i32_0 : i32, i32
  }
  func.func @transform_6(%arg0: i32, %arg1: i32) -> (i32, i32) {
    %c0_i32 = arith.constant 0 : i32
    %c0_i32_0 = arith.constant 0 : i32
    %c0_i32_1 = arith.constant 0 : i32
    return %c0_i32, %c0_i32_0 : i32, i32
  }
  func.func @transform_7(%arg0: i32, %arg1: i32) -> (i32, i32, i32, i32) {
    %c0_i32 = arith.constant 0 : i32
    %c0_i32_0 = arith.constant 0 : i32
    %c0_i32_1 = arith.constant 0 : i32
    return %arg0, %arg1, %c0_i32, %c0_i32_0 : i32, i32, i32, i32
  }
}

</mosaic_0001>

<bundles_post_ra>
// kernel: tpu_custom_call.1
= control target key start
LH: loop header
LB: loop body
LE: loop exit
PB: predicated region body
PF: predicated region fallthrough
CT: control target
= control target key end

     0   :  { %s7011_s0 = inlined_call_operand.hbm [shape: f32[2,20,18,128], index: 0, kind: input, shape index: {}]   ;;  %s7012_s1 = inlined_call_operand.hbm [shape: f32[3,384,128], index: 1, kind: input, shape index: {}]   ;;  %s7013_s2 = inlined_call_operand.hbm [shape: f32[1,128], index: 2, kind: input, shape index: {}]   ;;  %s7014_s3 = inlined_call_operand.hbm [shape: f32[1,128], index: 3, kind: input, shape index: {}]   ;;  %s7015_s4 = inlined_call_operand.hbm [shape: f32[3,384,128], index: 4, kind: input, shape index: {}]   ;;  %s7016_s5 = inlined_call_operand.hbm [shape: f32[1,128], index: 5, kind: input, shape index: {}]   ;;  %s7017_s6 = inlined_call_operand.hbm [shape: f32[1,128], index: 6, kind: input, shape index: {}]   ;;  %s7018_s7 = inlined_call_operand.hbm [shape: f32[2,16,16,128], index: 7, kind: output, shape index: {}]  }
   0x1   :  { %7075 = sst [smem:[#allocation53_spill]] %s7011_s0 }
   0x2   :  { %7076 = sst [smem:[#allocation54_spill]] %s7012_s1 }
   0x3   :  { %7077 = sst [smem:[#allocation55_spill]] %s7013_s2 }
   0x4   :  { %7078 = sst [smem:[#allocation56_spill]] %s7014_s3 }
   0x5   :  { %7079 = sst [smem:[#allocation57_spill]] %s7015_s4 }
   0x6   :  { %7080 = sst [smem:[#allocation58_spill]] %s7018_s7 }
   0x7   :  { %12 = vsyncpa [#allocation4], 0 }
   0x8   :  { %14 = vsyncpa [#allocation4 + $0x1], 0 }
   0x9   :  { %15 = vsyncpa [#allocation7], 0 }
   0xa   :  { %16 = vsyncpa [#allocation10], 0 }
   0xb   :  { %17 = vsyncpa [#allocation13], 0 }
   0xc   :  { %18 = vsyncpa [#allocation5], 0 }
   0xd   :  { %20 = vsyncpa [#allocation5 + $0x1], 0  ;;  %s5325_s24 = smov 0   ;;  %s5327_s25 = smov 0  }
   0xe   :  { %s5329_s26 = smov 0   ;;  %s5331_s27 = smov 0  }
   0xf   :  { %s5333_s28 = smov 0   ;;  %s5335_s29 = smov 0  }
  0x10   :  { %s5337_s30 = smov 0   ;;  %s5339_s8 = smov 0  }
  0x11   :  { %s5341_s9 = smov 0   ;;  %s5343_s10 = smov 0  }
  0x12   :  { %s5345_s11 = smov 0  }
  0x13 LB: > { %7081 = sst [smem:[#allocation21_spill]] %s5227_s24  ;;  %s3410_s12 = sadd.s32 4294967295, %s5267_s11   ;;  %s5267_s11 = sphi %s5345_s11, %s26_s11   ;;  %s5263_s10 = sphi %s5343_s10, %s7195_s10   ;;  %s5259_s9 = sphi %s5341_s9, %s7194_s9   ;;  %s5255_s8 = sphi %s5339_s8, %s7193_s8   ;;  %s5251_s30 = sphi %s5337_s30, %s7192_s30   ;;  %s5247_s29 = sphi %s5335_s29, %s7191_s29   ;;  %s5243_s28 = sphi %s5333_s28, %s7190_s28   ;;  %s5239_s27 = sphi %s5331_s27, %s7189_s27   ;;  %s5235_s26 = sphi %s5329_s26, %s7188_s26   ;;  %s5231_s25 = sphi %s5327_s25, %s7187_s25   ;;  %s5227_s24 = sphi %s5325_s24, %s7186_s24  }
  0x14   : > { %7082 = sst [smem:[#allocation22_spill]] %s5251_s30  ;;  %p3412_p0 = scmp.ge.s32.totalorder %s5267_s11, 1 }
  0x15   : > { %7083 = sst [smem:[#allocation23_spill]] %s5255_s8  ;;  %p5382_p1 = scmp.eq.s32.totalorder %s3410_s12, 0 }
  0x16   : > { %p5386_p2 = scmp.eq.s32.totalorder %s3410_s12, 3  ;;  %p223_p3 = scmp.lt.s32.totalorder %s5267_s11, 5 }
  0x17   : > { %s7084_s13 = scalar_select %p5382_p1, 1, 0 }
  0x18   : > { %s7085_s14 = scalar_select %p5386_p2, 1, 0 }
  0x19   : > { %p5391_p4 = pnand %p3412_p0, %p223_p3  ;;  %s5269_s16 = smov [#allocation6]  }
  0x1a   : > { %7086 = sst [smem:[#allocation24_spill]] %s7085_s14  ;;  %s235_s17 = sshll.u32 %s5269_s16, 4  ;;  %s5395_s17 = int_to_ptr.vmem [resolvable:$true] %s235_s17 }
  0x1b   : > { %s7087_s15 = scalar_select %p5391_p4, 1, 0 }
  0x1c   : > { %p4786_p5 = pneg %p5391_p4  ;;  %s5270_s19 = smov [#allocation9]  }
  0x1d   : > { %7088 = sst [smem:[#allocation25_spill]] %s7087_s15  ;;  %s260_s20 = sshll.u32 %s5270_s19, 4  ;;  %s5405_s20 = int_to_ptr.vmem [resolvable:$true] %s260_s20 }
  0x1e   : > { %p5401_p6 = pnand %p4786_p5, %p5382_p1  ;;  %s5271_s21 = smov [#allocation12]  }
  0x1f   : > { %s284_s22 = sshll.u32 %s5271_s21, 4  ;;  %s7090_s1 = sld [smem:[#allocation54_spill]]  ;;  %s5407_s22 = int_to_ptr.vmem [resolvable:$true] %s284_s22 }
  0x20   : > { %p5417_p8 = pneg %p5401_p6 }
  0x25   : > { %s4935_s16 = scalar_lea.hbm %s7090_s1, 18432 }
  0x26   : > { %p4936_p7 = scmp.ne.s32.totalorder %s7090_s1, %s4935_s16  ;;  %p4942_p11 = scmp.lt.u32.totalorder %s4935_s16, %s7090_s1 }
  0x28   : > { %p4938_p9 = pnand %p5417_p8, %p4936_p7 }
  0x2a   : > { %p4939_p10 = pneg %p4938_p9 }
  0x2c   : > { %p4944_p12 = pnand %p4942_p11, %p4939_p10 }
  0x2e   : > { %4947 = shalt.err (!%p4944_p12)
}
  0x2f   : > { %s4948_s7 = scalar_lea.vmem %s5395_s17, 18432  ;;  %p4956_p5 = scmp.lt.s32.totalorder %s5395_s17, %s5395_s17 }
  0x30   : > { %p4949_p13 = scmp.ne.s32.totalorder %s5395_s17, %s4948_s7  ;;  %p4957_p4 = scmp.lt.s32.totalorder %s4948_s7, %s4948_s7 }
  0x32   : > { %p4951_p0 = pnand %p4949_p13, %p5417_p8  ;;  %p4958_p7 = por %p4957_p4, %p4956_p5 }
  0x34   : > { %p4952_p3 = pneg %p4951_p0 }
  0x36   : > { %p4959_p9 = pnand %p4958_p7, %p4952_p3 }
  0x38   : > { %4962 = shalt.err (!%p4959_p9)
}
  0x39   : > { %s7027_s8 = smov 128   ;;  %s7028_s23 = smov 8  }
  0x3a   : > { %4789 = dma.hbm_to_vmem [thread:$0]  (!%p5401_p6), %s7090_s1, 18432, %s5395_s17, [#allocation7], %s7027_s8, %s7027_s8, %s7028_s23  }
  0x3b   : > { %s7092_s3 = sld [smem:[#allocation56_spill]] }
  0x41   : > { %s4963_s7 = scalar_lea.hbm %s7092_s3, 16 }
  0x42   : > { %p4964_p4 = scmp.ne.s32.totalorder %s7092_s3, %s4963_s7  ;;  %p4970_p12 = scmp.lt.u32.totalorder %s4963_s7, %s7092_s3 }
  0x44   : > { %p4966_p10 = pnand %p4964_p4, %p5417_p8 }
  0x46   : > { %p4967_p11 = pneg %p4966_p10 }
  0x48   : > { %p4972_p13 = pnand %p4970_p12, %p4967_p11 }
  0x4a   : > { %4975 = shalt.err (!%p4972_p13)
}
  0x4b   : > { %s4976_s17 = scalar_lea.vmem %s5405_s20, 16  ;;  %s4983_s0 = scalar_lea.vmem %s5405_s20, 32 }
  0x4c   : > { %p4977_p0 = scmp.ne.s32.totalorder %s5405_s20, %s4976_s17  ;;  %p4984_p7 = scmp.lt.s32.totalorder %s5405_s20, %s5405_s20 }
  0x4d   : > { %p4985_p9 = scmp.lt.s32.totalorder %s4983_s0, %s4976_s17 }
  0x4e   : > { %p4979_p3 = pnand %p4977_p0, %p5417_p8 }
  0x4f   : > { %p4986_p4 = por %p4985_p9, %p4984_p7 }
  0x50   : > { %p4980_p5 = pneg %p4979_p3 }
  0x52   : > { %p4987_p10 = pnand %p4986_p4, %p4980_p5 }
  0x54   : > { %4990 = shalt.err (!%p4987_p10)
}
  0x55   : > { %4795 = dma.hbm_to_vmem [thread:$0]  (!%p5401_p6), %s7092_s3, 16, %s5405_s20, [#allocation10]  }
  0x56   : > { %s4991_s16 = scalar_lea.hbm %s7016_s5, 16 }
  0x57   : > { %p4992_p11 = scmp.ne.s32.totalorder %s7016_s5, %s4991_s16  ;;  %p4998_p0 = scmp.lt.u32.totalorder %s4991_s16, %s7016_s5 }
  0x59   : > { %p4994_p12 = pnand %p4992_p11, %p5417_p8 }
  0x5b   : > { %p4995_p13 = pneg %p4994_p12 }
  0x5d   : > { %p5000_p3 = pnand %p4998_p0, %p4995_p13 }
  0x5f   : > { %5003 = shalt.err (!%p5000_p3)
}
  0x60   : > { %s5004_s20 = scalar_lea.vmem %s5407_s22, 16  ;;  %s5011_s0 = scalar_lea.vmem %s5407_s22, 32 }
  0x61   : > { %p5005_p5 = scmp.ne.s32.totalorder %s5407_s22, %s5004_s20  ;;  %p5012_p4 = scmp.lt.s32.totalorder %s5407_s22, %s5407_s22 }
  0x62   : > { %p5013_p10 = scmp.lt.s32.totalorder %s5011_s0, %s5004_s20 }
  0x63   : > { %p5007_p7 = pnand %p5005_p5, %p5417_p8 }
  0x64   : > { %p5014_p11 = por %p5013_p10, %p5012_p4 }
  0x65   : > { %p5008_p9 = pneg %p5007_p7 }
  0x67   : > { %p5015_p12 = pnand %p5014_p11, %p5008_p9 }
  0x69   : > { %5018 = shalt.err (!%p5015_p12)
}
  0x6a   : > { %4801 = dma.hbm_to_vmem [thread:$0]  (!%p5401_p6), %s7016_s5, 16, %s5407_s22, [#allocation13]  }
  0x6b   : > { %s5274_s15 = smov [#allocation8]   ;;  %s5275_s16 = smov [#allocation11]  }
  0x6c   : > { %s249_s12 = sshll.u32 %s5274_s15, 4  ;;  %s270_s19 = sshll.u32 %s5275_s16, 4  ;;  %s250_s12 = int_to_ptr.vmem [resolvable:$true] %s249_s12  ;;  %s5489_s19 = int_to_ptr.vmem [resolvable:$true] %s270_s19 }
  0x6d   : > { %s7093_s2 = sld [smem:[#allocation55_spill]] }
  0x73   : > { %s5019_s17 = scalar_lea.hbm %s7093_s2, 16 }
  0x74   : > { %p5020_p13 = scmp.ne.s32.totalorder %s7093_s2, %s5019_s17  ;;  %p5026_p5 = scmp.lt.u32.totalorder %s5019_s17, %s7093_s2 }
  0x76   : > { %p5022_p0 = pnand %p5020_p13, %p5417_p8 }
  0x78   : > { %p5023_p3 = pneg %p5022_p0 }
  0x7a   : > { %p5028_p7 = pnand %p5026_p5, %p5023_p3 }
  0x7c   : > { %5031 = shalt.err (!%p5028_p7)
}
  0x7d   : > { %s5032_s14 = scalar_lea.vmem %s250_s12, 16  ;;  %s5039_s15 = scalar_lea.vmem %s250_s12, 32 }
  0x7e   : > { %p5033_p9 = scmp.ne.s32.totalorder %s250_s12, %s5032_s14  ;;  %p5040_p11 = scmp.lt.s32.totalorder %s250_s12, %s250_s12 }
  0x7f   : > { %p5041_p12 = scmp.lt.s32.totalorder %s5039_s15, %s5032_s14 }
  0x80   : > { %p5035_p4 = pnand %p5033_p9, %p5417_p8 }
  0x81   : > { %p5042_p2 = por %p5041_p12, %p5040_p11 }
  0x82   : > { %p5036_p10 = pneg %p5035_p4 }
  0x84   : > { %p5043_p1 = pnand %p5042_p2, %p5036_p10 }
  0x86   : > { %5046 = shalt.err (!%p5043_p1)
}
  0x87   : > { %4792 = dma.hbm_to_vmem [thread:$0]  (!%p5401_p6), %s7093_s2, 16, %s250_s12, [#allocation7]  }
  0x88   : > { %s7094_s4 = sld [smem:[#allocation57_spill]] }
  0x8e   : > { %s5047_s20 = scalar_lea.hbm %s7094_s4, 18432 }
  0x8f   : > { %p5048_p13 = scmp.ne.s32.totalorder %s7094_s4, %s5047_s20  ;;  %p5054_p1 = scmp.lt.u32.totalorder %s5047_s20, %s7094_s4 }
  0x91   : > { %p5050_p0 = pnand %p5048_p13, %p5417_p8 }
  0x93   : > { %p5051_p3 = pneg %p5050_p0 }
  0x95   : > { %p5056_p2 = pnand %p5054_p1, %p5051_p3 }
  0x97   : > { %5059 = shalt.err (!%p5056_p2)
}
  0x98   : > { %s5060_s12 = scalar_lea.vmem %s5489_s19, 18432  ;;  %p5068_p4 = scmp.lt.s32.totalorder %s5489_s19, %s5489_s19 }
  0x99   : > { %p5061_p5 = scmp.ne.s32.totalorder %s5489_s19, %s5060_s12  ;;  %p5069_p10 = scmp.lt.s32.totalorder %s5060_s12, %s5060_s12 }
  0x9b   : > { %p5063_p7 = pnand %p5061_p5, %p5417_p8  ;;  %p5070_p11 = por %p5069_p10, %p5068_p4 }
  0x9d   : > { %p5064_p9 = pneg %p5063_p7 }
  0x9f   : > { %p5071_p12 = pnand %p5070_p11, %p5064_p9 }
  0xa1   : > { %5074 = shalt.err (!%p5071_p12)
}
  0xa2   : > { %4798 = dma.hbm_to_vmem [thread:$0]  (!%p5401_p6), %s7094_s4, 18432, %s5489_s19, [#allocation10], %s7027_s8, %s7027_s8, %s7028_s23  }
  0xa3   : > { %s5276_s21 = smov [#allocation14]   ;;  %s5075_s0 = scalar_lea.hbm %s7017_s6, 16 }
  0xa4   : > { %s295_s7 = sshll.u32 %s5276_s21, 4  ;;  %p5076_p13 = scmp.ne.s32.totalorder %s7017_s6, %s5075_s0  ;;  %s296_s7 = int_to_ptr.vmem [resolvable:$true] %s295_s7 }
  0xa5   : > { %p5082_p1 = scmp.lt.u32.totalorder %s5075_s0, %s7017_s6 }
  0xa6   : > { %p5078_p0 = pnand %p5076_p13, %p5417_p8 }
  0xa8   : > { %p5079_p3 = pneg %p5078_p0 }
  0xaa   : > { %p5084_p2 = pnand %p5082_p1, %p5079_p3 }
  0xac   : > { %5087 = shalt.err (!%p5084_p2)
}
  0xad   : > { %s5088_s19 = scalar_lea.vmem %s296_s7, 16  ;;  %s5095_s15 = scalar_lea.vmem %s296_s7, 32 }
  0xae   : > { %p5089_p5 = scmp.ne.s32.totalorder %s296_s7, %s5088_s19  ;;  %p5096_p4 = scmp.lt.s32.totalorder %s296_s7, %s296_s7 }
  0xaf   : > { %p5097_p10 = scmp.lt.s32.totalorder %s5095_s15, %s5088_s19 }
  0xb0   : > { %p5091_p7 = pnand %p5089_p5, %p5417_p8 }
  0xb1   : > { %p5098_p11 = por %p5097_p10, %p5096_p4 }
  0xb2   : > { %p5092_p9 = pneg %p5091_p7 }
  0xb4   : > { %p5099_p12 = pnand %p5098_p11, %p5092_p9 }
  0xb6   : > { %5102 = shalt.err (!%p5099_p12)
}
  0xb7   : > { %4804 = dma.hbm_to_vmem [thread:$0]  (!%p5401_p6), %s7017_s6, 16, %s296_s7, [#allocation13]  }
  0xb8   : > { %s3411_s30 = sadd.s32 4294967294, %s5267_s11   ;;  %s35_s18 = sadd.s32 1, %s5259_s9 }
  0xb9   : > { %s7095_s17 = sld [smem:[#allocation21_spill]]  ;;  %s38_s20 = sadd.s32 1, %s5263_s10 }
  0xba   : > { %p36_p8 = scmp.ge.s32.totalorder %s35_s18, 2  ;;  %s45_s0 = sadd.s32 1, %s5247_s29 }
  0xbb   : > { %p52_p13 = scmp.ne.s32.totalorder %s5247_s29, %s5243_s28  ;;  %p53_p0 = scmp.eq.s32.totalorder %s5267_s11, 0 }
  0xbc   : > { %s7197_s18 = smov (%p36_p8, %s35_s18), 0  ;;  %s7096_s24 = sld [smem:[#allocation24_spill]] }
  0xbd   : > { %s7199_s20 = smov (!%p36_p8, %s38_s20), %s5263_s10  ;;  %p5563_p3 = por %p53_p0, %p52_p13 }
  0xbe   : > { %p58_p6 = scmp.ne.s32.totalorder %s5243_s28, %s5239_s27  ;;  %p40_p1 = scmp.ge.s32.totalorder %s7199_s20, 2 }
  0xbf   : > { %s195_s22 = ssub.s32 %s5259_s9, %s7197_s18  ;;  %p7098_p2 = scmp.ne.s32.totalorder %s7084_s13, 0 }
  0xc0   : > { %s199_s12 = sadd.s32 1, %s5235_s26  ;;  %s7201_s20 = smov (%p40_p1, %s7199_s20), 0 }
  0xc1   : > { %p5573_p5 = por %p7098_p2, %p58_p6  ;;  %p209_p7 = scmp.ne.s32.totalorder %s5235_s26, %s5231_s25 }
  0xc2   : > { %p215_p9 = scmp.ne.s32.totalorder %s5231_s25, %s7095_s17  ;;  %s42_s19 = ssub.s32 %s5263_s10, %s7201_s20 }
  0xc3   : > { %p216_p4 = scmp.eq.s32.totalorder %s3411_s30, 3  ;;  %p43_p10 = scmp.eq.s32.totalorder %s42_s19, 0 }
  0xc4   : > { %s196_s27 = sor.u32 %s195_s22, %s42_s19  ;;  %p7100_p12 = scmp.ne.s32.totalorder %s7096_s24, 0 }
  0xc5   : > { %p197_p11 = scmp.eq.s32.totalorder %s196_s27, 0  ;;  %p5598_p13 = por %p216_p4, %p215_p9 }
  0xc6   : > { %p5588_p8 = por %p7100_p12, %p209_p7  ;;  %p4819_p0 = scmp.lt.s32.totalorder %s5267_s11, 4 }
  0xc7   : > { %s5593_s16 = scalar_select %p43_p10, %s5247_s29, %s45_s0  }
  0xc8   : > { %s7101_s15 = scalar_select %p5588_p8, 1, 0 }
  0xc9   : > { %s5596_s21 = scalar_select %p197_p11, %s5235_s26, %s199_s12  }
  0xca   : > { %s7102_s8 = scalar_select %p5598_p13, 1, 0 }
  0xcb   : > { %s306_s17 = sand.u32 1, %s5247_s29   ;;  %s4756_s23 = smul.u32 7680, %s5263_s10 }
  0xcc   : > { %s4755_s30 = smul.u32 480, %s306_s17  ;;  %p5607_p6 = pnand %p4819_p0, %p5563_p3 }
  0xcd   : > { %s7104_s27 = sld [smem:[#allocation53_spill]]  ;;  %s5618_s7 = scalar_lea.sflag [#allocation4], %s306_s17 }
  0xce   : > { %s310_s12 = scalar_lea.vmem [#allocation3], %s4755_s30  ;;  %p5105_p1 = pneg %p5607_p6 }
  0xcf   : > { %s317_s2 = sshll.u32 %s310_s12, 4  ;;  %s5616_s2 = int_to_ptr.vmem [resolvable:$true] %s317_s2 }
  0xd3   : > { %s7105_s1 = smov %s7104_s27  ;;  %s5614_s0 = scalar_lea.hbm %s7104_s27, %s4756_s23 }
  0xd4   : > { %s5103_s3 = scalar_lea.hbm %s5614_s0, 7680  ;;  %s5108_s19 = scalar_lea.hbm %s7105_s1, 15360 }
  0xd5   : > { %p5104_p3 = scmp.ne.s32.totalorder %s5614_s0, %s5103_s3  ;;  %p5109_p9 = scmp.lt.u32.totalorder %s5614_s0, %s7105_s1 }
  0xd6   : > { %p5110_p4 = scmp.lt.u32.totalorder %s5108_s19, %s5103_s3  ;;  %p5112_p11 = scmp.lt.u32.totalorder %s5103_s3, %s5614_s0 }
  0xd7   : > { %p5106_p2 = pnand %p5105_p1, %p5104_p3 }
  0xd8   : > { %p5111_p10 = por %p5110_p4, %p5109_p9 }
  0xd9   : > { %p5107_p7 = pneg %p5106_p2 }
  0xda   : > { %p5113_p12 = por %p5112_p11, %p5111_p10 }
  0xdc   : > { %p5114_p0 = pnand %p5113_p12, %p5107_p7 }
  0xde   : > { %5117 = shalt.err (!%p5114_p0)
}
  0xdf   : > { %s5118_s17 = scalar_lea.vmem %s5616_s2, 7680  ;;  %s5277_s30 = smov [#allocation3]  }
  0xe0   : > { %p5119_p3 = scmp.ne.s32.totalorder %s5616_s2, %s5118_s17  ;;  %s5123_s12 = sshll.u32 %s5277_s30, 4  ;;  %s5124_s12 = int_to_ptr.vmem [resolvable:$false] %s5123_s12 }
  0xe1   : > { %s5125_s4 = scalar_lea.vmem %s5124_s12, 15360  ;;  %p5126_p8 = scmp.lt.s32.totalorder %s5616_s2, %s5124_s12 }
  0xe2   : > { %p5121_p2 = pnand %p5119_p3, %p5105_p1  ;;  %p5127_p9 = scmp.lt.s32.totalorder %s5125_s4, %s5118_s17 }
  0xe4   : > { %p5122_p13 = pneg %p5121_p2  ;;  %p5128_p4 = por %p5127_p9, %p5126_p8 }
  0xe6   : > { %p5129_p10 = pnand %p5128_p4, %p5122_p13 }
  0xe8   : > { %5132 = shalt.err (!%p5129_p10)
}
  0xe9   : > { %s7106_s3 = smov 8   ;;  %s7107_s23 = smov 128  }
  0xea   : > { %4808 = dma.hbm_to_vmem [thread:$0]  (!%p5607_p6), %s5614_s0, 7680, %s5616_s2, %s5618_s7, %s7107_s23, %s7107_s23, %s7106_s3  }
  0xeb   : > { %s7108_s24 = sld [smem:[#allocation25_spill]] }
  0xf1   : > { %p7109_p1 = scmp.ne.s32.totalorder %s7108_s24, 0 }
  0xf3   : > { %329 = sbr.rel (%p7109_p1) target bundleno = 1194 (0x4aa), region = 48 }
  0xfa   : > { %s331_s19 = sand.u32 1, %s5243_s28  }
  0xfb   : > { %s5652_s27 = smul.u32 480, %s331_s19  ;;  %s332_s17 = scalar_lea.sflag [#allocation4], %s331_s19 }
  0xfd   : > { %s335_s30 = scalar_lea.vmem [#allocation3], %s5652_s27 }
  0xfe   : > { %5206 = dma.done.wait (%p5573_p5), %s332_s17, 7680  }
  0xff   : > { %5208 = vsyncadd (%p5573_p5), %s332_s17, 4294959616  ;;  %p7110_p8 = scmp.ne.s32.totalorder %s7084_s13, 0 }
 0x101   : > { %5210 = dma.done.wait (%p7110_p8), [#allocation7], 18448  }
 0x102   : > { %5212 = vsyncadd (%p7110_p8), [#allocation7], 4294948848 }
 0x103   : > { %5214 = dma.done.wait (%p7110_p8), [#allocation10], 18448  }
 0x104   : > { %5216 = vsyncadd (%p7110_p8), [#allocation10], 4294948848 }
 0x105   : > { %5218 = dma.done.wait (%p7110_p8), [#allocation13], 32  }
 0x106   : > { %5220 = vsyncadd (%p7110_p8), [#allocation13], 4294967264  ;;  %s387_s2 = sand.u32 1, %s5231_s25   ;;  %v5278_v0 = vmov 0.0   ;;  %v7040_v1 = vmov 0.0|0.0   ;;  %s7111_s14 = sld [smem:[#allocation22_spill]] }
 0x107   : > { %1866 = vst [vmem:[#allocation2] sm:$0x1] %v5278_v0  ;;  %1867 = vst [vmem:[#allocation2 + $0x18] sm:$0x1] %v5278_v0  ;;  %s5674_s13 = sshll.u32 %s387_s2, 7  ;;  %4243 = vmatprep.subr.bf16.mxu0 %v7040_v1  ;;  %v668_v2 = vld [vmem:[#allocation6 + $0x180] sm:$0xff] }
 0x108   : > { %1868 = vst [vmem:[#allocation2 + $0x30] sm:$0x1] %v5278_v0  ;;  %1869 = vst [vmem:[#allocation2 + $0x48] sm:$0x1] %v5278_v0  ;;  %v669_v3 = vld [vmem:[#allocation6 + $0x188] sm:$0xff]  ;;  %v700_v4 = vld [vmem:[#allocation6 + $0x280] sm:$0xff] }
 0x109   : > { %1870 = vst [vmem:[#allocation2 + $0x60] sm:$0x1] %v5278_v0  ;;  %1871 = vst [vmem:[#allocation2 + $0x78] sm:$0x1] %v5278_v0  ;;  %v4244_v5 = vpack.c.bf16 %v669_v3, %v668_v2  ;;  %v701_v6 = vld [vmem:[#allocation6 + $0x288] sm:$0xff]  ;;  %v670_v7 = vld [vmem:[#allocation6 + $0x190] sm:$0xff] }
 0x10a   : > { %1872 = vst [vmem:[#allocation2 + $0x90] sm:$0x1] %v5278_v0  ;;  %1873 = vst [vmem:[#allocation2 + $0xa8] sm:$0x1] %v5278_v0  ;;  %v671_v8 = vld [vmem:[#allocation6 + $0x198] sm:$0xff]  ;;  %v4291_v9 = vpack.c.bf16 %v701_v6, %v700_v4  ;;  %v702_v10 = vld [vmem:[#allocation6 + $0x290] sm:$0xff] }
 0x10b   : > { %1874 = vst [vmem:[#allocation2 + $0xc0] sm:$0x1] %v5278_v0  ;;  %1875 = vst [vmem:[#allocation2 + $0xd8] sm:$0x1] %v5278_v0  ;;  %v703_v11 = vld [vmem:[#allocation6 + $0x298] sm:$0xff]  ;;  %4245 = vmatpush1.bf16.msra.mxu0 %v4244_v5  ;;  %v4247_v12 = vpack.c.bf16 %v671_v8, %v670_v7  ;;  %v704_v14 = vld [vmem:[#allocation6 + $0x2a0] sm:$0xff] }
 0x10c   : > { %1876 = vst [vmem:[#allocation2 + $0x11] sm:$0x1] %v5278_v0  ;;  %1877 = vst [vmem:[#allocation2 + $0x29] sm:$0x1] %v5278_v0  ;;  %v4295_v13 = vpack.c.bf16 %v703_v11, %v702_v10  ;;  %v705_v15 = vld [vmem:[#allocation6 + $0x2a8] sm:$0xff]  ;;  %s3430_s22 = smul.u32 192, %s7111_s14  ;;  %4292 = vmatprep.subr.bf16.mxu1 %v4291_v9  ;;  %4246 = vmatprep.subr.bf16.mxu0 %v7040_v1 }
 0x10d   : > { %1878 = vst [vmem:[#allocation2 + $0x41] sm:$0x1] %v5278_v0  ;;  %1879 = vst [vmem:[#allocation2 + $0x59] sm:$0x1] %v5278_v0  ;;  %v672_v16 = vld [vmem:[#allocation6 + $0x1a0] sm:$0xff]  ;;  %v673_v17 = vld [vmem:[#allocation6 + $0x1a8] sm:$0xff]  ;;  %4294 = vmatpush3.bf16.msra.mxu1 %v4291_v9  ;;  %v4299_v18 = vpack.c.bf16 %v705_v15, %v704_v14 }
 0x10e   : > { %1880 = vst [vmem:[#allocation2 + $0x71] sm:$0x1] %v5278_v0  ;;  %1881 = vst [vmem:[#allocation2 + $0x89] sm:$0x1] %v5278_v0  ;;  %4296 = vmatprep.subr.bf16.mxu1 %v4295_v13  ;;  %v4250_v19 = vpack.c.bf16 %v673_v17, %v672_v16  ;;  %v706_v20 = vld [vmem:[#allocation6 + $0x2b0] sm:$0xff]  ;;  %v707_v21 = vld [vmem:[#allocation6 + $0x2b8] sm:$0xff]  ;;  %s5681_s0 = scalar_lea.vmem %s335_s30, %s3430_s22 [#allocation3] }
 0x10f   : > { %1882 = vst [vmem:[#allocation2 + $0xa1] sm:$0x1] %v5278_v0  ;;  %1883 = vst [vmem:[#allocation2 + $0xb9] sm:$0x1] %v5278_v0  ;;  %4248 = vmatpush1.bf16.msra.mxu0 %v4247_v12  ;;  %v674_v22 = vld [vmem:[#allocation6 + $0x1b0] sm:$0xff]  ;;  %v675_v23 = vld [vmem:[#allocation6 + $0x1b8] sm:$0xff]  ;;  %v4303_v24 = vpack.c.bf16 %v707_v21, %v706_v20 }
 0x110   : > { %1884 = vst [vmem:[#allocation2 + $0xd1] sm:$0x1] %v5278_v0  ;;  %1885 = vst [vmem:[#allocation2 + $0xe9] sm:$0x1] %v5278_v0  ;;  %4249 = vmatprep.subr.bf16.mxu0 %v7040_v1  ;;  %v5685_v25 = vld [vmem:[%s5681_s0 + $0x18] sm:$0xff]  ;;  %vm531_vm0 = vcmask 1045504   ;;  %v4253_v26 = vpack.c.bf16 %v675_v23, %v674_v22 }
 0x111   : > { %4298 = vmatpush3.bf16.msra.mxu1 %v4295_v13  ;;  %v708_v27 = vld [vmem:[#allocation6 + $0x2c0] sm:$0xff]  ;;  %v709_v28 = vld [vmem:[#allocation6 + $0x2c8] sm:$0xff]  ;;  %v5688_v29 = vld [vmem:[%s5681_s0 + $0x20] sm:$0xff]  ;;  %v537_v30 = vrot.slane %v5685_v25, 2  ;;  %vm460_vm1 = vcmask 1046528   ;;  %v466_v31 = vrot.slane %v5685_v25, 1 }
 0x112   : > { %4300 = vmatprep.subr.bf16.mxu1 %v4299_v18  ;;  %v676_v32 = vld [vmem:[#allocation6 + $0x1c0] sm:$0xff]  ;;  %v677_v33 = vld [vmem:[#allocation6 + $0x1c8] sm:$0xff]  ;;  %v538_v34 = vrot.slane %v5688_v29, 2  ;;  %v7031_v35 = vrot.slane %v5688_v29, 1  ;;  %v4307_v36 = vpack.c.bf16 %v709_v28, %v708_v27  ;;  %v710_v40 = vld [vmem:[#allocation6 + $0x2d0] sm:$0xff]  ;;  %s6359_s7 = scalar_lea.vmem [#allocation15], %s5674_s13 }
 0x113   : > { %4251 = vmatpush1.bf16.msra.mxu0 %v4250_v19  ;;  %v4256_v39 = vpack.c.bf16 %v677_v33, %v676_v32  ;;  %v711_v41 = vld [vmem:[#allocation6 + $0x2d8] sm:$0xff]  ;;  %v678_v42 = vld [vmem:[#allocation6 + $0x1d0] sm:$0xff]  ;;  %v712_v46 = vld [vmem:[#allocation6 + $0x2e0] sm:$0xff]  ;;  %p3433_p5 = scmp.ne.s32.totalorder %s7111_s14, 0 }
 0x114   : > { %4252 = vmatprep.subr.bf16.mxu0 %v7040_v1  ;;  %v5698_v37 = vsel %vm531_vm0, %v537_v30, %v538_v34  ;;  %v5703_v38 = vsel %vm460_vm1, %v466_v31, %v7031_v35  ;;  %v679_v43 = vld [vmem:[#allocation6 + $0x1d8] sm:$0xff]  ;;  %v4311_v44 = vpack.c.bf16 %v711_v41, %v710_v40  ;;  %v713_v47 = vld [vmem:[#allocation6 + $0x2e8] sm:$0xff]  ;;  %v680_v48 = vld [vmem:[#allocation6 + $0x1e0] sm:$0xff] }
 0x115   : > { %4302 = vmatpush3.bf16.msra.mxu1 %v4299_v18  ;;  %3921 = vmatprep.mubr.f32.mxu1 %v5698_v37  ;;  %v4259_v45 = vpack.c.bf16 %v679_v43, %v678_v42  ;;  %v681_v49 = vld [vmem:[#allocation6 + $0x1e8] sm:$0xff]  ;;  %v4315_v50 = vpack.c.bf16 %v713_v47, %v712_v46  ;;  %v714_v52 = vld [vmem:[#allocation6 + $0x2f0] sm:$0xff]  ;;  %v715_v53 = vld [vmem:[#allocation6 + $0x2f8] sm:$0xff] }
 0x116   : > { %4304 = vmatprep.subr.bf16.mxu1 %v4303_v24  ;;  %780 = vmatprep.mubr.f32.mxu0 %v5703_v38  ;;  %v4262_v51 = vpack.c.bf16 %v681_v49, %v680_v48  ;;  %v682_v54 = vld [vmem:[#allocation6 + $0x1f0] sm:$0xff]  ;;  %v683_v55 = vld [vmem:[#allocation6 + $0x1f8] sm:$0xff]  ;;  %v4319_v56 = vpack.c.bf16 %v715_v53, %v714_v52  ;;  %v5714_v59 = vld [vmem:[%s5681_s0 + $0x30] sm:$0xff] }
 0x117   : > { %4254 = vmatpush1.bf16.msra.mxu0 %v4253_v26  ;;  %v5711_v57 = vld [vmem:[%s5681_s0 + $0x28] sm:$0x3]  ;;  %v4265_v58 = vpack.c.bf16 %v683_v55, %v682_v54  ;;  %v5717_v60 = vld [vmem:[%s5681_s0 + $0x38] sm:$0xff]  ;;  %v684_v61 = vld [vmem:[#allocation6 + $0x200] sm:$0xff]  ;;  %v542_v3 = vrot.slane %v5714_v59, 2 }
 0x118   : > { %4255 = vmatprep.subr.bf16.mxu0 %v7040_v1  ;;  %v685_v62 = vld [vmem:[#allocation6 + $0x208] sm:$0xff]  ;;  %v540_v63 = vrot.slane %v5711_v57, 2  ;;  %v602_v0 = vld [vmem:[#allocation6] sm:$0xff]  ;;  %v543_v4 = vrot.slane %v5717_v60, 2  ;;  %v5724_v5 = vld [vmem:[%s5681_s0 + $0x40] sm:$0x3] }
 0x119   : > { %4306 = vmatpush3.bf16.msra.mxu1 %v4303_v24  ;;  %v603_v2 = vld [vmem:[#allocation6 + $0x8] sm:$0xff]  ;;  %v4268_v6 = vpack.c.bf16 %v685_v62, %v684_v61  ;;  %v5727_v7 = vld [vmem:[%s5681_s0 + $0x48] sm:$0xff]  ;;  %v5730_v8 = vld [vmem:[%s5681_s0 + $0x50] sm:$0xff]  ;;  %v545_v13 = vrot.slane %v5724_v5, 2  ;;  %v469_v35 = vrot.slane %v5711_v57, 1 }
 0x11a   : > { %4308 = vmatprep.subr.bf16.mxu1 %v4307_v36  ;;  %v686_v9 = vld [vmem:[#allocation6 + $0x210] sm:$0xff]  ;;  %v687_v10 = vld [vmem:[#allocation6 + $0x218] sm:$0xff]  ;;  %v5736_v11 = vsel %vm531_vm0, %v538_v34, %v540_v63  ;;  %v4324_v12 = vpack.c.bf16 %v603_v2, %v602_v0  ;;  %v5741_v16 = vsel %vm531_vm0, %v542_v3, %v543_v4  ;;  %v547_v17 = vrot.slane %v5727_v7, 2  ;;  %v5746_v19 = vld [vmem:[%s5681_s0 + $0x58] sm:$0x3] }
 0x11b   : > { %4257 = vmatpush1.bf16.msra.mxu0 %v4256_v39  ;;  %v604_v14 = vld [vmem:[#allocation6 + $0x10] sm:$0xff]  ;;  %v605_v15 = vld [vmem:[#allocation6 + $0x18] sm:$0xff]  ;;  %v548_v18 = vrot.slane %v5730_v8, 2  ;;  %v4271_v20 = vpack.c.bf16 %v687_v10, %v686_v9  ;;  %v688_v23 = vld [vmem:[#allocation6 + $0x220] sm:$0xff]  ;;  %v5758_v27 = vsel %vm531_vm0, %v543_v4, %v545_v13  ;;  %v550_v28 = vrot.slane %v5746_v19, 2 }
 0x11c   : > { %4258 = vmatprep.subr.bf16.mxu0 %v7040_v1  ;;  %v5749_v21 = vld [vmem:[%s5681_s0 + $0x60] sm:$0xff]  ;;  %v5752_v22 = vld [vmem:[%s5681_s0 + $0x68] sm:$0xff]  ;;  %v689_v24 = vld [vmem:[#allocation6 + $0x228] sm:$0xff]  ;;  %v4327_v26 = vpack.c.bf16 %v605_v15, %v604_v14 }
 0x11d   : > { %4310 = vmatpush3.bf16.msra.mxu1 %v4307_v36  ;;  %v606_v30 = vld [vmem:[#allocation6 + $0x20] sm:$0xff]  ;;  %v607_v31 = vld [vmem:[#allocation6 + $0x28] sm:$0xff]  ;;  %v5763_v32 = vsel %vm531_vm0, %v547_v17, %v548_v18  ;;  %v552_v33 = vrot.slane %v5749_v21, 2  ;;  %v553_v34 = vrot.slane %v5752_v22, 2  ;;  %v4274_v39 = vpack.c.bf16 %v689_v24, %v688_v23  ;;  %v5774_v41 = vld [vmem:[%s5681_s0 + $0x80] sm:$0xff] }
 0x11e   : > { %4312 = vmatprep.subr.bf16.mxu1 %v4311_v44  ;;  %v5768_v36 = vld [vmem:[%s5681_s0 + $0x70] sm:$0x3]  ;;  %v5771_v40 = vld [vmem:[%s5681_s0 + $0x78] sm:$0xff]  ;;  %v690_v42 = vld [vmem:[#allocation6 + $0x230] sm:$0xff] }
 0x11f   : > { %4260 = vmatpush1.bf16.msra.mxu0 %v4259_v45  ;;  %v691_v43 = vld [vmem:[#allocation6 + $0x238] sm:$0xff]  ;;  %v5780_v45 = vsel %vm531_vm0, %v548_v18, %v550_v28  ;;  %v555_v46 = vrot.slane %v5768_v36, 2  ;;  %v608_v47 = vld [vmem:[#allocation6 + $0x30] sm:$0xff]  ;;  %v5785_v49 = vsel %vm531_vm0, %v552_v33, %v553_v34  ;;  %v5793_v54 = vld [vmem:[%s5681_s0 + $0x90] sm:$0xff] }
 0x120   : > { %4261 = vmatprep.subr.bf16.mxu0 %v7040_v1  ;;  %v609_v48 = vld [vmem:[#allocation6 + $0x38] sm:$0xff]  ;;  %v4277_v53 = vpack.c.bf16 %v691_v43, %v690_v42  ;;  %v5796_v55 = vld [vmem:[%s5681_s0 + $0x98] sm:$0xff]  ;;  %v610_v0 = vld [vmem:[#allocation6 + $0x40] sm:$0xff]  ;;  %v562_v4 = vrot.slane %v5793_v54, 2 }
 0x121   : > { %4314 = vmatpush3.bf16.msra.mxu1 %v4311_v44  ;;  %v4330_v44 = vpack.c.bf16 %v607_v31, %v606_v30  ;;  %v5790_v52 = vld [vmem:[%s5681_s0 + $0x88] sm:$0x3]  ;;  %v4333_v61 = vpack.c.bf16 %v609_v48, %v608_v47  ;;  %v5802_v62 = vsel %vm531_vm0, %v553_v34, %v555_v46  ;;  %v611_v2 = vld [vmem:[#allocation6 + $0x48] sm:$0xff]  ;;  %v5812_v9 = vld [vmem:[%s5681_s0 + $0xa0] sm:$0x3] }
 0x122   : > { %4316 = vmatprep.subr.bf16.mxu1 %v4315_v50  ;;  %7112 = vst [vmem:[#allocation26_spill] sm:$0xff] %v5802_v62  ;;  %v560_v63 = vrot.slane %v5790_v52, 2  ;;  %v5818_v13 = vld [vmem:[%s5681_s0 + $0xb0] sm:$0xff]  ;;  %v694_v14 = vld [vmem:[#allocation6 + $0x250] sm:$0xff]  ;;  %v695_v15 = vld [vmem:[#allocation6 + $0x258] sm:$0xff]  ;;  %v4336_v17 = vpack.c.bf16 %v611_v2, %v610_v0 }
 0x123   : > { %4263 = vmatpush1.bf16.msra.mxu0 %v4262_v51  ;;  %v558_v51 = vrot.slane %v5774_v41, 2  ;;  %v612_v23 = vld [vmem:[#allocation6 + $0x50] sm:$0xff]  ;;  %v613_v24 = vld [vmem:[#allocation6 + $0x58] sm:$0xff]  ;;  %v568_v30 = vrot.slane %v5818_v13, 2  ;;  %v5834_v31 = vld [vmem:[%s5681_s0 + $0xb8] sm:$0x3]  ;;  %v4283_v33 = vpack.c.bf16 %v695_v15, %v694_v14 }
 0x124   : > { %4264 = vmatprep.subr.bf16.mxu0 %v7040_v1  ;;  %v5837_v34 = vld [vmem:[%s5681_s0 + $0xc0] sm:$0xff]  ;;  %v696_v43 = vld [vmem:[#allocation6 + $0x260] sm:$0xff]  ;;  %v5848_v46 = vld [vmem:[%s5681_s0 + $0x8] sm:$0xff]  ;;  %v4339_v48 = vpack.c.bf16 %v613_v24, %v612_v23 }
 0x125   : > { %4318 = vmatpush3.bf16.msra.mxu1 %v4315_v50  ;;  %v557_v50 = vrot.slane %v5771_v40, 2  ;;  %v5824_v18 = vsel %vm531_vm0, %v558_v51, %v560_v63  ;;  %v5843_v42 = vld [vmem:[%s5681_s0] sm:$0xff]  ;;  %v572_v63 = vrot.slane %v5837_v34, 2  ;;  %v5864_v2 = vld [vmem:[%s5681_s0 + $0xd0] sm:$0x3] }
 0x126   : > { %4320 = vmatprep.subr.bf16.mxu1 %v4319_v56  ;;  %7114 = vst [vmem:[#allocation28_spill] sm:$0xff] %v5824_v18  ;;  %v532_v47 = vrot.slane %v5843_v42, 2  ;;  %v698_v15 = vld [vmem:[#allocation6 + $0x270] sm:$0xff]  ;;  %v575_v24 = vrot.slane %v5864_v2, 2 }
 0x127   : > { %4266 = vmatpush1.bf16.msra.mxu0 %v4265_v58  ;;  %v693_v58 = vld [vmem:[#allocation6 + $0x248] sm:$0xff]  ;;  %v5807_v3 = vsel %vm531_vm0, %v557_v50, %v558_v51  ;;  %v570_v51 = vrot.slane %v5834_v31, 2 }
 0x128   : > { %4267 = vmatprep.subr.bf16.mxu0 %v7040_v1  ;;  %7113 = vst [vmem:[#allocation27_spill] sm:$0xff] %v5807_v3 }
 0x129   : > { %4322 = vmatpush3.bf16.msra.mxu1 %v4319_v56  ;;  %v692_v56 = vld [vmem:[#allocation6 + $0x240] sm:$0xff]  ;;  %v5881_v23 = vsel %vm531_vm0, %v568_v30, %v570_v51 }
 0x12a   : > { %4323 = vmatprep.subr.bf16.mxu1 %v7040_v1  ;;  %v4280_v10 = vpack.c.bf16 %v693_v58, %v692_v56  ;;  %v614_v56 = vld [vmem:[#allocation6 + $0x60] sm:$0xff]  ;;  %v615_v58 = vld [vmem:[#allocation6 + $0x68] sm:$0xff]  ;;  %7118 = vst [vmem:[#allocation32_spill] sm:$0xff] %v5881_v23 }
 0x12b   : > { %4269 = vmatpush1.bf16.msra.mxu0 %v4268_v6  ;;  %v563_v6 = vrot.slane %v5796_v55, 2  ;;  %v5894_v51 = vld [vmem:[%s5681_s0 + $0xf0] sm:$0xff] }
 0x12c   : > { %3922 = vmatmul.mubr.f32.vlgmr.msra.gmra.mrb[0].mxu1 %v5736_v11  ;;  %4270 = vmatprep.subr.bf16.mxu0 %v7040_v1 }
 0x12d   : > { %4325 = vmatpush1.bf16.msra.mxu1 %v4324_v12  ;;  %3924 = vmatprep.mubr.f32.mxu1 %v5741_v16  ;;  %v5815_v12 = vld [vmem:[%s5681_s0 + $0xa8] sm:$0xff] }
 0x12e   : > { %4326 = vmatprep.subr.bf16.mxu1 %v7040_v1  ;;  %v567_v28 = vrot.slane %v5815_v12, 2 }
 0x12f   : > { %4272 = vmatpush1.bf16.msra.mxu0 %v4271_v20  ;;  %v565_v20 = vrot.slane %v5812_v9, 2 }
 0x130   : > { %4273 = vmatprep.subr.bf16.mxu0 %v7040_v1  ;;  %3925 = vmatmul.mubr.f32.gmra.mrb[2].mxu1 %v5758_v27 }
 0x131   : > { %4328 = vmatpush1.bf16.msra.mxu1 %v4327_v26  ;;  %3927 = vmatprep.mubr.f32.mxu1 %v5763_v32  ;;  %v5829_v26 = vsel %vm531_vm0, %v562_v4, %v563_v6  ;;  %v5853_v50 = vsel %vm531_vm0, %v563_v6, %v565_v20  ;;  %v5867_v6 = vld [vmem:[%s5681_s0 + $0xd8] sm:$0xff]  ;;  %v4342_v20 = vpack.c.bf16 %v615_v58, %v614_v56  ;;  %v5891_v58 = vld [vmem:[%s5681_s0 + $0xe8] sm:$0x3] }
 0x132   : > { %4329 = vmatprep.subr.bf16.mxu1 %v7040_v1  ;;  %7115 = vst [vmem:[#allocation29_spill] sm:$0xff] %v5829_v26  ;;  %7116 = vst [vmem:[#allocation30_spill] sm:$0xff] %v5853_v50 }
 0x133   : > { %4275 = vmatpush1.bf16.msra.mxu0 %v4274_v39  ;;  %v5840_v39 = vld [vmem:[%s5681_s0 + $0xc8] sm:$0xff] }
 0x134   : > { %4276 = vmatprep.subr.bf16.mxu0 %v7040_v1  ;;  %3928 = vmatmul.mubr.f32.gmra.mrb[4].mxu1 %v5780_v45  ;;  %v573_v0 = vrot.slane %v5840_v39, 2 }
 0x135   : > { %4331 = vmatpush1.bf16.msra.mxu1 %v4330_v44  ;;  %3930 = vmatprep.mubr.f32.mxu1 %v5785_v49  ;;  %v697_v44 = vld [vmem:[#allocation6 + $0x268] sm:$0xff] }
 0x136   : > { %4332 = vmatprep.subr.bf16.mxu1 %v7040_v1  ;;  %v4286_v4 = vpack.c.bf16 %v697_v44, %v696_v43  ;;  %v616_v43 = vld [vmem:[#allocation6 + $0x70] sm:$0xff]  ;;  %v617_v44 = vld [vmem:[#allocation6 + $0x78] sm:$0xff] }
 0x137   : > { %4278 = vmatpush1.bf16.msra.mxu0 %v4277_v53  ;;  %v7030_v53 = vrot.slane %v5848_v46, 2 }
 0x138   : > { %4279 = vmatprep.subr.bf16.mxu0 %v7040_v1  ;;  %3931 = vmatmul.mubr.f32.gmra.mrb[6].mxu1 %v5802_v62  ;;  %v621_v62 = vld [vmem:[#allocation6 + $0x98] sm:$0xff] }
 0x139   : > { %4334 = vmatpush1.bf16.msra.mxu1 %v4333_v61  ;;  %3933 = vmatprep.mubr.f32.mxu1 %v5807_v3  ;;  %v5859_v61 = vsel %vm531_vm0, %v567_v28, %v568_v30  ;;  %v5875_v14 = vsel %vm531_vm0, %v532_v47, %v7030_v53  ;;  %v634_v28 = vld [vmem:[#allocation6 + $0x100] sm:$0xff]  ;;  %v5886_v47 = vsel %vm531_vm0, %v572_v63, %v573_v0  ;;  %v5897_v53 = vld [vmem:[%s5681_s0 + $0xf8] sm:$0xff]  ;;  %v620_v3 = vld [vmem:[#allocation6 + $0x90] sm:$0xff] }
 0x13a   : > { %4335 = vmatprep.subr.bf16.mxu1 %v7040_v1  ;;  %7117 = vst [vmem:[#allocation31_spill] sm:$0xff] %v5859_v61  ;;  %7119 = vst [vmem:[#allocation33_spill] sm:$0xff] %v5886_v47 }
 0x13b   : > { %4281 = vmatpush1.bf16.msra.mxu0 %v4280_v10  ;;  %v5870_v10 = vld [vmem:[%s5681_s0 + $0xe0] sm:$0xff] }
 0x13c   : > { %4282 = vmatprep.subr.bf16.mxu0 %v7040_v1  ;;  %3934 = vmatmul.mubr.f32.gmra.mrb[8].mxu1 %v5824_v18  ;;  %v578_v56 = vrot.slane %v5870_v10, 2  ;;  %v619_v18 = vld [vmem:[#allocation6 + $0x88] sm:$0xff] }
 0x13d   : > { %4337 = vmatpush1.bf16.msra.mxu1 %v4336_v17  ;;  %3936 = vmatprep.mubr.f32.mxu1 %v5829_v26  ;;  %v699_v17 = vld [vmem:[#allocation6 + $0x278] sm:$0xff]  ;;  %v618_v26 = vld [vmem:[#allocation6 + $0x80] sm:$0xff] }
 0x13e   : > { %4338 = vmatprep.subr.bf16.mxu1 %v7040_v1  ;;  %v4289_v30 = vpack.c.bf16 %v699_v17, %v698_v15  ;;  %v636_v15 = vld [vmem:[#allocation6 + $0x110] sm:$0xff]  ;;  %v637_v17 = vld [vmem:[#allocation6 + $0x118] sm:$0xff] }
 0x13f   : > { %4284 = vmatpush1.bf16.msra.mxu0 %v4283_v33  ;;  %v635_v33 = vld [vmem:[#allocation6 + $0x108] sm:$0xff] }
 0x140   : > { %4285 = vmatprep.subr.bf16.mxu0 %v7040_v1  ;;  %3937 = vmatmul.mubr.f32.gmra.mrb[10].mxu1 %v5853_v50  ;;  %v4371_v63 = vpack.c.bf16 %v635_v33, %v634_v28  ;;  %v5904_v50 = vsel %vm531_vm0, %v573_v0, %v575_v24  ;;  %v660_v28 = vrot.slane %v5894_v51, 2  ;;  %v5914_v33 = vld [vmem:[%s5681_s0 + $0x100] sm:$0x3]  ;;  %v7121_v0 = vrot.slane %v5688_v29, 1 }
 0x141   : > { %4340 = vmatpush1.bf16.msra.mxu1 %v4339_v48  ;;  %3939 = vmatprep.mubr.f32.mxu1 %v5859_v61  ;;  %v577_v48 = vrot.slane %v5867_v6, 2  ;;  %v4345_v61 = vpack.c.bf16 %v617_v44, %v616_v43  ;;  %7120 = vst [vmem:[#allocation34_spill] sm:$0xff] %v5904_v50  ;;  %v471_v43 = vrot.slane %v5714_v59, 1  ;;  %v472_v44 = vrot.slane %v5717_v60, 1 }
 0x142   : > { %4341 = vmatprep.subr.bf16.mxu1 %v7040_v1  ;;  %v5919_v24 = vsel %vm460_vm1, %v7121_v0, %v469_v35  ;;  %v639_v35 = vld [vmem:[#allocation6 + $0x128] sm:$0xff]  ;;  %v7123_v0 = vmov 0.0|0.0  }
 0x143   : > { %4287 = vmatpush1.bf16.msra.mxu0 %v4286_v4  ;;  %v580_v4 = vrot.slane %v5891_v58, 2  ;;  %v5909_v57 = vsel %vm531_vm0, %v577_v48, %v578_v56  ;;  %v4375_v48 = vpack.c.bf16 %v637_v17, %v636_v15  ;;  %v4351_v15 = vpack.c.bf16 %v621_v62, %v620_v3 }
 0x144   : > { %4288 = vmatprep.subr.bf16.mxu0 %v7040_v1  ;;  %3940 = vmatmul.mubr.f32.gmra.mrb[12].mxu1 %v5881_v23  ;;  %v638_v23 = vld [vmem:[#allocation6 + $0x120] sm:$0xff]  ;;  %v476_v62 = vrot.slane %v5727_v7, 1  ;;  %v477_v3 = vrot.slane %v5730_v8, 1 }
 0x145   : > { %4343 = vmatpush1.bf16.msra.mxu1 %v4342_v20  ;;  %3942 = vmatprep.mubr.f32.mxu1 %v5886_v47  ;;  %v661_v20 = vrot.slane %v5897_v53, 2  ;;  %v5926_v47 = vsel %vm531_vm0, %v578_v56, %v580_v4  ;;  %v474_v56 = vrot.slane %v5724_v5, 1  ;;  %v4379_v4 = vpack.c.bf16 %v639_v35, %v638_v23  ;;  %v643_v35 = vld [vmem:[#allocation6 + $0x148] sm:$0xff] }
 0x146   : > { %4344 = vmatprep.subr.bf16.mxu1 %v7040_v1  ;;  %v4348_v1 = vpack.c.bf16 %v619_v18, %v618_v26  ;;  %7122 = vst [vmem:[#allocation35_spill] sm:$0xff] %v5926_v47  ;;  %v461_v18 = vrot.slane %v5843_v42, 1  ;;  %v641_v26 = vld [vmem:[#allocation6 + $0x138] sm:$0xff]  ;;  %v7126_v5 = vrot.slane %v5848_v46, 1 }
 0x147   : > { %4290 = vmatpush1.bf16.msra.mxu0 %v4289_v30  ;;  %v663_v30 = vrot.slane %v5914_v33, 2 }
 0x148   : > { %3943 = vmatmul.mubr.f32.gmra.mrb[14].mxu1 %v5904_v50  ;;  %4372 = vmatprep.subr.bf16.mxu0 %v4371_v63  ;;  %v5932_v50 = vsel %vm531_vm0, %v660_v28, %v661_v20  ;;  %v640_v28 = vld [vmem:[#allocation6 + $0x130] sm:$0xff] }
 0x149   : > { %4346 = vmatpush1.bf16.msra.mxu1 %v4345_v61  ;;  %3945 = vmatprep.mubr.f32.mxu1 %v5909_v57  ;;  %v5938_v61 = vsel %vm460_vm1, %v471_v43, %v472_v44  ;;  %v5944_v17 = vsel %vm531_vm0, %v661_v20, %v663_v30  ;;  %v623_v43 = vld [vmem:[#allocation6 + $0xa8] sm:$0xff]  ;;  %v4383_v23 = vpack.c.bf16 %v641_v26, %v640_v28  ;;  %v642_v30 = vld [vmem:[#allocation6 + $0x140] sm:$0xff]  ;;  %v645_v28 = vld [vmem:[#allocation6 + $0x158] sm:$0xff] }
 0x14a   : > { %781 = vmatmul.mubr.f32.vlgmr.msra.gmra.mrb[0].mxu0 %v5685_v25  ;;  %4347 = vmatprep.subr.bf16.mxu1 %v7123_v0  ;;  %7124 = vst [vmem:[#allocation36_spill] sm:$0xff] %v5938_v61  ;;  %7125 = vst [vmem:[#allocation37_spill] sm:$0xff] %v5944_v17  ;;  %v4387_v26 = vpack.c.bf16 %v643_v35, %v642_v30  ;;  %v646_v30 = vld [vmem:[#allocation6 + $0x160] sm:$0xff]  ;;  %v647_v35 = vld [vmem:[#allocation6 + $0x168] sm:$0xff] }
 0x14b   : > { %785 = vmatprep.mubr.f32.mxu0 %v5919_v24  ;;  %4374 = vmatpush3.bf16.msra.mxu0 %v4371_v63  ;;  %v622_v63 = vld [vmem:[#allocation6 + $0xa0] sm:$0xff] }
 0x14c   : > { %3946 = vmatmul.mubr.f32.gmra.mrb[16].mxu1 %v5926_v47  ;;  %4376 = vmatprep.subr.bf16.mxu0 %v4375_v48  ;;  %v463_v47 = vsel %vm460_vm1, %v461_v18, %v7126_v5  ;;  %v4354_v20 = vpack.c.bf16 %v623_v43, %v622_v63  ;;  %v5962_v18 = vsel %vm460_vm1, %v476_v62, %v477_v3  ;;  %v626_v63 = vld [vmem:[#allocation6 + $0xc0] sm:$0xff]  ;;  %v627_v43 = vld [vmem:[#allocation6 + $0xc8] sm:$0xff]  ;;  %v482_v5 = vrot.slane %v5752_v22, 1 }
 0x14d   : > { %4349 = vmatpush1.bf16.msra.mxu1 %v4348_v1  ;;  %3948 = vmatprep.mubr.f32.mxu1 %v5932_v50  ;;  %v5953_v1 = vsel %vm460_vm1, %v472_v44, %v474_v56  ;;  %v625_v44 = vld [vmem:[#allocation6 + $0xb8] sm:$0xff]  ;;  %7128 = vst [vmem:[#allocation39_spill] sm:$0xff] %v5962_v18  ;;  %v479_v56 = vrot.slane %v5746_v19, 1  ;;  %v481_v19 = vrot.slane %v5749_v21, 1 }
 0x14e   : > { %786 = vmatmul.mubr.f32.gmra.mrb[2].mxu0 %v5688_v29  ;;  %4350 = vmatprep.subr.bf16.mxu1 %v7123_v0  ;;  %7127 = vst [vmem:[#allocation38_spill] sm:$0xff] %v5953_v1 }
 0x14f   : > { %790 = vmatprep.mubr.f32.mxu0 %v5938_v61  ;;  %4378 = vmatpush3.bf16.msra.mxu0 %v4375_v48  ;;  %v624_v48 = vld [vmem:[#allocation6 + $0xb0] sm:$0xff] }
 0x150   : > { %3949 = vmatmul.mubr.f32.gmra.mrb[18].mxu1 %v5944_v17  ;;  %4380 = vmatprep.subr.bf16.mxu0 %v4379_v4  ;;  %v633_v17 = vld [vmem:[#allocation6 + $0xf8] sm:$0xff] }
 0x151   : > { %4352 = vmatpush1.bf16.msra.mxu1 %v4351_v15  ;;  %1110 = vmatprep.mubr.f32.mxu1 %v463_v47  ;;  %v4357_v47 = vpack.c.bf16 %v625_v44, %v624_v48  ;;  %v644_v15 = vld [vmem:[#allocation6 + $0x150] sm:$0xff]  ;;  %v629_v44 = vld [vmem:[#allocation6 + $0xd8] sm:$0xff] }
 0x152   : > { %791 = vmatmul.mubr.f32.gmra.mrb[4].mxu0 %v5714_v59  ;;  %4353 = vmatprep.subr.bf16.mxu1 %v7123_v0  ;;  %v4391_v62 = vpack.c.bf16 %v645_v28, %v644_v15  ;;  %v628_v48 = vld [vmem:[#allocation6 + $0xd0] sm:$0xff]  ;;  %v649_v28 = vld [vmem:[#allocation6 + $0x178] sm:$0xff] }
 0x153   : > { %795 = vmatprep.mubr.f32.mxu0 %v5953_v1  ;;  %4382 = vmatpush3.bf16.msra.mxu0 %v4379_v4  ;;  %v5969_v4 = vsel %vm460_vm1, %v477_v3, %v479_v56  ;;  %v5977_v3 = vsel %vm460_vm1, %v481_v19, %v482_v5  ;;  %v4395_v56 = vpack.c.bf16 %v647_v35, %v646_v30  ;;  %v648_v15 = vld [vmem:[#allocation6 + $0x170] sm:$0xff]  ;;  %v487_v19 = vrot.slane %v5774_v41, 1  ;;  %v1426_v35 = vld [vmem:[#allocation6 + $0x400] sm:$0xff] }
 0x154   : > { %4384 = vmatprep.subr.bf16.mxu0 %v4383_v23  ;;  %7129 = vst [vmem:[#allocation40_spill] sm:$0xff] %v5969_v4  ;;  %7130 = vst [vmem:[#allocation41_spill] sm:$0xff] %v5977_v3 }
 0x155   : > { %4355 = vmatpush1.bf16.msra.mxu1 %v4354_v20  ;;  %v4360_v20 = vpack.c.bf16 %v627_v43, %v626_v63  ;;  %v630_v63 = vld [vmem:[#allocation6 + $0xe0] sm:$0xff]  ;;  %v631_v43 = vld [vmem:[#allocation6 + $0xe8] sm:$0xff] }
 0x156   : > { %796 = vmatmul.mubr.f32.gmra.mrb[6].mxu0 %v5717_v60  ;;  %4356 = vmatprep.subr.bf16.mxu1 %v7123_v0  ;;  %v4366_v30 = vpack.c.bf16 %v631_v43, %v630_v63  ;;  %v1395_v63 = vld [vmem:[#allocation6 + $0x308] sm:$0xff] }
 0x157   : > { %800 = vmatprep.mubr.f32.mxu0 %v5962_v18  ;;  %4386 = vmatpush3.bf16.msra.mxu0 %v4383_v23  ;;  %v484_v23 = vrot.slane %v5768_v36, 1  ;;  %v486_v36 = vrot.slane %v5771_v40, 1 }
 0x158   : > { %4388 = vmatprep.subr.bf16.mxu0 %v4387_v26 }
 0x159   : > { %4358 = vmatpush1.bf16.msra.mxu1 %v4357_v47  ;;  %v4363_v47 = vpack.c.bf16 %v629_v44, %v628_v48  ;;  %v1427_v48 = vld [vmem:[#allocation6 + $0x408] sm:$0xff]  ;;  %v632_v44 = vld [vmem:[#allocation6 + $0xf0] sm:$0xff] }
 0x15a   : > { %801 = vmatmul.mubr.f32.gmra.mrb[8].mxu0 %v5727_v7  ;;  %4359 = vmatprep.subr.bf16.mxu1 %v7123_v0 }
 0x15b   : > { %805 = vmatprep.mubr.f32.mxu0 %v5969_v4  ;;  %4390 = vmatpush3.bf16.msra.mxu0 %v4387_v26  ;;  %v5984_v26 = vsel %vm460_vm1, %v482_v5, %v484_v23  ;;  %v5992_v5 = vld [vmem:[%s5681_s0 + $0x10] sm:$0x3]  ;;  %v489_v23 = vrot.slane %v5790_v52, 1  ;;  %v491_v52 = vrot.slane %v5793_v54, 1 }
 0x15c   : > { %4392 = vmatprep.subr.bf16.mxu0 %v4391_v62  ;;  %7131 = vst [vmem:[#allocation42_spill] sm:$0xff] %v5984_v26  ;;  %v464_v43 = vrot.slane %v5992_v5, 1 }
 0x15d   : > { %4361 = vmatpush1.bf16.msra.mxu1 %v4360_v20  ;;  %v4399_v20 = vpack.c.bf16 %v649_v28, %v648_v15  ;;  %v4369_v15 = vpack.c.bf16 %v633_v17, %v632_v44  ;;  %v1394_v28 = vld [vmem:[#allocation6 + $0x300] sm:$0xff]  ;;  %v494_v44 = vrot.slane %v5812_v9, 1  ;;  %v497_v9 = vrot.slane %v5818_v13, 1 }
 0x15e   : > { %806 = vmatmul.mubr.f32.gmra.mrb[10].mxu0 %v5730_v8  ;;  %4362 = vmatprep.subr.bf16.mxu1 %v7123_v0  ;;  %v4404_v17 = vpack.c.bf16 %v1395_v63, %v1394_v28  ;;  %v1399_v28 = vld [vmem:[#allocation6 + $0x328] sm:$0xff]  ;;  %v496_v63 = vrot.slane %v5815_v12, 1 }
 0x15f   : > { %810 = vmatprep.mubr.f32.mxu0 %v5977_v3  ;;  %4394 = vmatpush3.bf16.msra.mxu0 %v4391_v62  ;;  %v5995_v62 = vsel %vm460_vm1, %v486_v36, %v487_v19  ;;  %v492_v36 = vrot.slane %v5796_v55, 1 }
 0x160   : > { %4396 = vmatprep.subr.bf16.mxu0 %v4395_v56  ;;  %7132 = vst [vmem:[#allocation43_spill] sm:$0xff] %v5995_v62 }
 0x161   : > { %4364 = vmatpush1.bf16.msra.mxu1 %v4363_v47  ;;  %v5998_v47 = vpack.c.bf16 %v1427_v48, %v1426_v35  ;;  %v1397_v48 = vld [vmem:[#allocation6 + $0x318] sm:$0xff] }
 0x162   : > { %811 = vmatmul.mubr.f32.gmra.mrb[12].mxu0 %v5749_v21  ;;  %4365 = vmatprep.subr.bf16.mxu1 %v7123_v0 }
 0x163   : > { %815 = vmatprep.mubr.f32.mxu0 %v5984_v26  ;;  %4398 = vmatpush3.bf16.msra.mxu0 %v4395_v56  ;;  %v6005_v56 = vsel %vm460_vm1, %v487_v19, %v489_v23  ;;  %v6018_v19 = vsel %vm460_vm1, %v491_v52, %v492_v36  ;;  %v1400_v52 = vld [vmem:[#allocation6 + $0x330] sm:$0xff] }
 0x164   : > { %4400 = vmatprep.subr.bf16.mxu0 %v4399_v20  ;;  %7133 = vst [vmem:[#allocation44_spill] sm:$0xff] %v6005_v56  ;;  %7135 = vst [vmem:[#allocation45_spill] sm:$0xff] %v6018_v19 }
 0x165   : > { %4367 = vmatpush1.bf16.msra.mxu1 %v4366_v30  ;;  %v7134_v30 = vrot.slane %v5848_v46, 1 }
 0x166   : > { %816 = vmatmul.mubr.f32.gmra.mrb[14].mxu0 %v5752_v22  ;;  %4368 = vmatprep.subr.bf16.mxu1 %v7123_v0 }
 0x167   : > { %820 = vmatprep.mubr.f32.mxu0 %v5995_v62  ;;  %4402 = vmatpush3.bf16.msra.mxu0 %v4399_v20  ;;  %v465_v35 = vsel %vm460_vm1, %v7134_v30, %v464_v43  ;;  %v1396_v20 = vld [vmem:[#allocation6 + $0x310] sm:$0xff]  ;;  %v499_v30 = vrot.slane %v5834_v31, 1  ;;  %v502_v31 = vrot.slane %v5840_v39, 1 }
 0x168   : > { %4452 = vmatprep.subr.bf16.mxu0 %v5998_v47  ;;  %v4407_v23 = vpack.c.bf16 %v1397_v48, %v1396_v20  ;;  %v1403_v20 = vld [vmem:[#allocation6 + $0x348] sm:$0xff]  ;;  %v501_v48 = vrot.slane %v5837_v34, 1 }
 0x169   : > { %4370 = vmatpush1.bf16.msra.mxu1 %v4369_v15  ;;  %v1398_v15 = vld [vmem:[#allocation6 + $0x320] sm:$0xff] }
 0x16a   : > { %821 = vmatmul.mubr.f32.gmra.mrb[16].mxu0 %v5771_v40  ;;  %4403 = vmatprep.subr.bf16.mxu1 %v7123_v0  ;;  %v4410_v43 = vpack.c.bf16 %v1399_v28, %v1398_v15  ;;  %v504_v15 = vrot.slane %v5864_v2, 1  ;;  %v507_v2 = vrot.slane %v5870_v10, 1 }
 0x16b   : > { %825 = vmatprep.mubr.f32.mxu0 %v6005_v56 }
 0x16c   : > { %1111 = vmatmul.mubr.f32.vlgmr.msra.gmra.mrb[20].mxu1 %v5843_v42  ;;  %v6026_v42 = vsel %vm460_vm1, %v492_v36, %v494_v44  ;;  %v6036_v36 = vsel %vm460_vm1, %v496_v63, %v497_v9  ;;  %v1404_v44 = vld [vmem:[#allocation6 + $0x350] sm:$0xff]  ;;  %v1406_v63 = vld [vmem:[#allocation6 + $0x360] sm:$0xff] }
 0x16d   : > { %4405 = vmatpush1.bf16.msra.mxu1 %v4404_v17  ;;  %1115 = vmatprep.mubr.f32.mxu1 %v465_v35  ;;  %7136 = vst [vmem:[#allocation46_spill] sm:$0xff] %v6026_v42  ;;  %v1401_v17 = vld [vmem:[#allocation6 + $0x338] sm:$0xff]  ;;  %7137 = vst [vmem:[#allocation47_spill] sm:$0xff] %v6036_v36  ;;  %v1402_v35 = vld [vmem:[#allocation6 + $0x340] sm:$0xff] }
 0x16e   : > { %826 = vmatmul.mubr.f32.gmra.mrb[18].mxu0 %v5774_v41  ;;  %4406 = vmatprep.subr.bf16.mxu1 %v7123_v0 }
 0x16f   : > { %830 = vmatprep.mubr.f32.mxu0 %v6018_v19 }
 0x170   : > { %1116 = vmatmul.mubr.f32.gmra.mrb[22].mxu1 %v5848_v46 }
 0x171   : > { %4408 = vmatpush1.bf16.msra.mxu1 %v4407_v23  ;;  %1120 = vmatprep.mubr.f32.mxu1 %v5703_v38  ;;  %v4413_v38 = vpack.c.bf16 %v1401_v17, %v1400_v52  ;;  %v1405_v23 = vld [vmem:[#allocation6 + $0x358] sm:$0xff]  ;;  %v1408_v17 = vld [vmem:[#allocation6 + $0x370] sm:$0xff] }
 0x172   : > { %831 = vmatmul.mubr.f32.gmra.mrb[20].mxu0 %v5793_v54  ;;  %4409 = vmatprep.subr.bf16.mxu1 %v7123_v0  ;;  %v4419_v28 = vpack.c.bf16 %v1405_v23, %v1404_v44  ;;  %v1412_v44 = vld [vmem:[#allocation6 + $0x390] sm:$0xff]  ;;  %v1413_v23 = vld [vmem:[#allocation6 + $0x398] sm:$0xff] }
 0x173   : > { %835 = vmatprep.mubr.f32.mxu0 %v6026_v42 }
 0x174   : > { %1121 = vmatmul.mubr.f32.gmra.mrb[24].mxu1 %v5685_v25  ;;  %v6045_v25 = vsel %vm460_vm1, %v497_v9, %v499_v30  ;;  %v1407_v9 = vld [vmem:[#allocation6 + $0x368] sm:$0xff]  ;;  %v1409_v30 = vld [vmem:[#allocation6 + $0x378] sm:$0xff] }
 0x175   : > { %1125 = vmatprep.mubr.f32.mxu1 %v5919_v24  ;;  %4411 = vmatpush1.bf16.msra.mxu1 %v4410_v43  ;;  %7138 = vst [vmem:[#allocation48_spill] sm:$0xff] %v6045_v25  ;;  %v4416_v24 = vpack.c.bf16 %v1403_v20, %v1402_v35  ;;  %v506_v43 = vrot.slane %v5867_v6, 1  ;;  %v4422_v52 = vpack.c.bf16 %v1407_v9, %v1406_v63  ;;  %v1410_v20 = vld [vmem:[#allocation6 + $0x380] sm:$0xff]  ;;  %v1415_v9 = vld [vmem:[#allocation6 + $0x3a8] sm:$0xff] }
 0x176   : > { %836 = vmatmul.mubr.f32.gmra.mrb[22].mxu0 %v5796_v55  ;;  %4412 = vmatprep.subr.bf16.mxu1 %v7123_v0  ;;  %v4425_v35 = vpack.c.bf16 %v1409_v30, %v1408_v17  ;;  %v1414_v63 = vld [vmem:[#allocation6 + $0x3a0] sm:$0xff]  ;;  %v1428_v17 = vld [vmem:[#allocation6 + $0x410] sm:$0xff]  ;;  %v1429_v30 = vld [vmem:[#allocation6 + $0x418] sm:$0xff] }
 0x177   : > { %840 = vmatprep.mubr.f32.mxu0 %v6036_v36 }
 0x178   : > { %1126 = vmatmul.mubr.f32.gmra.mrb[26].mxu1 %v5688_v29  ;;  %v6055_v29 = vsel %vm460_vm1, %v501_v48, %v502_v31  ;;  %v1411_v48 = vld [vmem:[#allocation6 + $0x388] sm:$0xff] }
 0x179   : > { %1130 = vmatprep.mubr.f32.mxu1 %v5938_v61  ;;  %4414 = vmatpush1.bf16.msra.mxu1 %v4413_v38  ;;  %7139 = vst [vmem:[#allocation49_spill] sm:$0xff] %v6055_v29  ;;  %v509_v38 = vrot.slane %v5891_v58, 1  ;;  %v654_v58 = vrot.slane %v5897_v53, 1 }
 0x17a   : > { %841 = vmatmul.mubr.f32.gmra.mrb[24].mxu0 %v5815_v12  ;;  %4415 = vmatprep.subr.bf16.mxu1 %v7123_v0 }
 0x17b   : > { %845 = vmatprep.mubr.f32.mxu0 %v6045_v25 }
 0x17c   : > { %1131 = vmatmul.mubr.f32.gmra.mrb[28].mxu1 %v5714_v59  ;;  %v6064_v59 = vsel %vm460_vm1, %v502_v31, %v504_v15  ;;  %v653_v31 = vrot.slane %v5894_v51, 1  ;;  %v656_v15 = vrot.slane %v5914_v33, 1  ;;  %v4434_v33 = vpack.c.bf16 %v1415_v9, %v1414_v63  ;;  %v1422_v63 = vld [vmem:[#allocation6 + $0x3e0] sm:$0xff]  ;;  %v1423_v9 = vld [vmem:[#allocation6 + $0x3e8] sm:$0xff] }
 0x17d   : > { %1135 = vmatprep.mubr.f32.mxu1 %v5953_v1  ;;  %4417 = vmatpush1.bf16.msra.mxu1 %v4416_v24  ;;  %7140 = vst [vmem:[#allocation50_spill] sm:$0xff] %v6064_v59  ;;  %v4428_v24 = vpack.c.bf16 %v1411_v48, %v1410_v20  ;;  %v4455_v48 = vpack.c.bf16 %v1429_v30, %v1428_v17  ;;  %v1437_v17 = vld [vmem:[#allocation6 + $0x458] sm:$0xff] }
 0x17e   : > { %846 = vmatmul.mubr.f32.gmra.mrb[26].mxu0 %v5818_v13  ;;  %4418 = vmatprep.subr.bf16.mxu1 %v7123_v0 }
 0x17f   : > { %850 = vmatprep.mubr.f32.mxu0 %v6055_v29 }
 0x180   : > { %1136 = vmatmul.mubr.f32.gmra.mrb[30].mxu1 %v5717_v60  ;;  %v6074_v60 = vsel %vm460_vm1, %v506_v43, %v507_v2  ;;  %v1416_v43 = vld [vmem:[#allocation6 + $0x3b0] sm:$0xff] }
 0x181   : > { %1140 = vmatprep.mubr.f32.mxu1 %v5962_v18  ;;  %4420 = vmatpush1.bf16.msra.mxu1 %v4419_v28  ;;  %7141 = vst [vmem:[#allocation51_spill] sm:$0xff] %v6074_v60  ;;  %v4431_v28 = vpack.c.bf16 %v1413_v23, %v1412_v44  ;;  %v1420_v44 = vld [vmem:[#allocation6 + $0x3d0] sm:$0xff]  ;;  %v1421_v23 = vld [vmem:[#allocation6 + $0x3d8] sm:$0xff] }
 0x182   : > { %851 = vmatmul.mubr.f32.gmra.mrb[28].mxu0 %v5837_v34  ;;  %4421 = vmatprep.subr.bf16.mxu1 %v7123_v0 }
 0x183   : > { %855 = vmatprep.mubr.f32.mxu0 %v6064_v59 }
 0x184   : > { %1141 = vmatmul.mubr.f32.gmra.mrb[32].mxu1 %v5727_v7  ;;  %v6083_v7 = vsel %vm460_vm1, %v507_v2, %v509_v38  ;;  %v1417_v2 = vld [vmem:[#allocation6 + $0x3b8] sm:$0xff]  ;;  %v1418_v38 = vld [vmem:[#allocation6 + $0x3c0] sm:$0xff] }
 0x185   : > { %1145 = vmatprep.mubr.f32.mxu1 %v5969_v4  ;;  %4423 = vmatpush1.bf16.msra.mxu1 %v4422_v52  ;;  %7142 = vst [vmem:[#allocation52_spill] sm:$0xff] %v6083_v7  ;;  %v535_v52 = vrot.slane %v5992_v5, 2  ;;  %v7143_v5 = vrot.slane %v5848_v46, 2 }
 0x186   : > { %856 = vmatmul.mubr.f32.gmra.mrb[30].mxu0 %v5840_v39  ;;  %4424 = vmatprep.subr.bf16.mxu1 %v7123_v0 }
 0x187   : > { %860 = vmatprep.mubr.f32.mxu0 %v6074_v60  ;;  %v536_v20 = vsel %vm531_vm0, %v7143_v5, %v535_v52  ;;  %v1439_v5 = vld [vmem:[#allocation6 + $0x468] sm:$0xff] }
 0x188   : > { %1146 = vmatmul.mubr.f32.gmra.mrb[34].mxu1 %v5730_v8  ;;  %v6093_v8 = vsel %vm460_vm1, %v653_v31, %v654_v58 }
 0x189   : > { %1150 = vmatprep.mubr.f32.mxu1 %v5977_v3  ;;  %4426 = vmatpush1.bf16.msra.mxu1 %v4425_v35  ;;  %v1419_v35 = vld [vmem:[#allocation6 + $0x3c8] sm:$0xff] }
 0x18a   : > { %861 = vmatmul.mubr.f32.gmra.mrb[32].mxu0 %v5867_v6  ;;  %4427 = vmatprep.subr.bf16.mxu1 %v7123_v0  ;;  %v4440_v31 = vpack.c.bf16 %v1419_v35, %v1418_v38  ;;  %v1438_v35 = vld [vmem:[#allocation6 + $0x460] sm:$0xff] }
 0x18b   : > { %865 = vmatprep.mubr.f32.mxu0 %v6083_v7 }
 0x18c   : > { %1151 = vmatmul.mubr.f32.gmra.mrb[36].mxu1 %v5749_v21  ;;  %v6102_v21 = vsel %vm460_vm1, %v654_v58, %v656_v15  ;;  %v1430_v58 = vld [vmem:[#allocation6 + $0x420] sm:$0xff]  ;;  %v1432_v15 = vld [vmem:[#allocation6 + $0x430] sm:$0xff] }
 0x18d   : > { %1155 = vmatprep.mubr.f32.mxu1 %v5984_v26  ;;  %4429 = vmatpush1.bf16.msra.mxu1 %v4428_v24  ;;  %v1431_v24 = vld [vmem:[#allocation6 + $0x428] sm:$0xff] }
 0x18e   : > { %866 = vmatmul.mubr.f32.gmra.mrb[34].mxu0 %v5870_v10  ;;  %4430 = vmatprep.subr.bf16.mxu1 %v7123_v0  ;;  %v4459_v46 = vpack.c.bf16 %v1431_v24, %v1430_v58  ;;  %v1441_v58 = vld [vmem:[#allocation6 + $0x478] sm:$0xff] }
 0x18f   : > { %870 = vmatprep.mubr.f32.mxu0 %v6093_v8  ;;  %v7146_v24 = vld [vmem:[#allocation28_spill] sm:$0xff] }
 0x190   : > { %1156 = vmatmul.mubr.f32.gmra.mrb[38].mxu1 %v5752_v22  ;;  %v4437_v22 = vpack.c.bf16 %v1417_v2, %v1416_v43  ;;  %v1435_v43 = vld [vmem:[#allocation6 + $0x448] sm:$0xff]  ;;  %v1425_v2 = vld [vmem:[#allocation6 + $0x3f8] sm:$0xff] }
 0x191   : > { %1160 = vmatprep.mubr.f32.mxu1 %v5995_v62  ;;  %4432 = vmatpush1.bf16.msra.mxu1 %v4431_v28  ;;  %v1433_v28 = vld [vmem:[#allocation6 + $0x438] sm:$0xff] }
 0x192   : > { %871 = vmatmul.mubr.f32.gmra.mrb[36].mxu0 %v5894_v51  ;;  %4433 = vmatprep.subr.bf16.mxu1 %v7123_v0 }
 0x193   : > { %875 = vmatprep.mubr.f32.mxu0 %v6102_v21 }
 0x194   : > { %1161 = vmatmul.mubr.f32.gmra.mrb[40].mxu1 %v5771_v40 }
 0x195   : > { %1165 = vmatprep.mubr.f32.mxu1 %v6005_v56  ;;  %4435 = vmatpush1.bf16.msra.mxu1 %v4434_v33  ;;  %v1434_v33 = vld [vmem:[#allocation6 + $0x440] sm:$0xff] }
 0x196   : > { %876 = vmatmul.mubr.f32.gmra.mrb[38].mxu0 %v5897_v53  ;;  %4436 = vmatprep.subr.bf16.mxu1 %v7123_v0  ;;  %v4467_v52 = vpack.c.bf16 %v1435_v43, %v1434_v33  ;;  %v4931_v33 = vld [vmem:[%s5681_s0 + $0x48] sm:$0xff]  ;;  %v4932_v43 = vld [vmem:[%s5681_s0 + $0x50] sm:$0xff] }
 0x197   : > { %3983 = vmatprep.mubr.f32.mxu0 %v5875_v14  ;;  %v4443_v14 = vpack.c.bf16 %v1421_v23, %v1420_v44  ;;  %v7147_v44 = vld [vmem:[#allocation29_spill] sm:$0xff] }
 0x198   : > { %1166 = vmatmul.mubr.f32.gmra.mrb[42].mxu1 %v5774_v41 }
 0x199   : > { %1170 = vmatprep.mubr.f32.mxu1 %v6018_v19  ;;  %4438 = vmatpush1.bf16.msra.mxu1 %v4437_v22  ;;  %v1436_v22 = vld [vmem:[#allocation6 + $0x450] sm:$0xff] }
 0x19a   : > { %3984 = vmatmul.mubr.f32.vlgmr.msra.gmra.mrb[40].mxu0 %v536_v20  ;;  %4439 = vmatprep.subr.bf16.mxu1 %v7123_v0  ;;  %v4471_v38 = vpack.c.bf16 %v1437_v17, %v1436_v22  ;;  %v7144_v20 = vld [vmem:[#allocation26_spill] sm:$0xff] }
 0x19b   : > { %3986 = vmatprep.mubr.f32.mxu0 %v5698_v37  ;;  %4454 = vmatpush3.bf16.msra.mxu0 %v5998_v47  ;;  %v4463_v37 = vpack.c.bf16 %v1433_v28, %v1432_v15  ;;  %v4446_v47 = vpack.c.bf16 %v1423_v9, %v1422_v63  ;;  %v7150_v15 = vld [vmem:[#allocation32_spill] sm:$0xff]  ;;  %v7151_v28 = vld [vmem:[#allocation33_spill] sm:$0xff]  ;;  %v7152_v63 = vld [vmem:[#allocation34_spill] sm:$0xff] }
 0x19c   : > { %1171 = vmatmul.mubr.f32.gmra.mrb[44].mxu1 %v5793_v54  ;;  %4456 = vmatprep.subr.bf16.mxu0 %v4455_v48  ;;  %v4929_v9 = vld [vmem:[%s5681_s0 + $0x30] sm:$0xff] }
 0x19d   : > { %1175 = vmatprep.mubr.f32.mxu1 %v6026_v42  ;;  %4441 = vmatpush1.bf16.msra.mxu1 %v4440_v31  ;;  %v1440_v31 = vld [vmem:[#allocation6 + $0x470] sm:$0xff] }
 0x19e   : > { %3987 = vmatmul.mubr.f32.gmra.mrb[42].mxu0 %v5736_v11  ;;  %4442 = vmatprep.subr.bf16.mxu1 %v7123_v0  ;;  %v1424_v11 = vld [vmem:[#allocation6 + $0x3f0] sm:$0xff]  ;;  %v4479_v23 = vpack.c.bf16 %v1441_v58, %v1440_v31 }
 0x19f   : > { %3989 = vmatprep.mubr.f32.mxu0 %v5741_v16  ;;  %4458 = vmatpush3.bf16.msra.mxu0 %v4455_v48  ;;  %v4449_v30 = vpack.c.bf16 %v1425_v2, %v1424_v11  ;;  %v7145_v48 = vld [vmem:[#allocation27_spill] sm:$0xff]  ;;  %v429_v11 = vld [vmem:[%s5681_s0 + $0x118] sm:$0x3] }
 0x1a0   : > { %1176 = vmatmul.mubr.f32.gmra.mrb[46].mxu1 %v5796_v55  ;;  %4460 = vmatprep.subr.bf16.mxu0 %v4459_v46 }
 0x1a1   : > { %1180 = vmatprep.mubr.f32.mxu1 %v6036_v36  ;;  %4444 = vmatpush1.bf16.msra.mxu1 %v4443_v14  ;;  %v7149_v14 = vld [vmem:[#allocation31_spill] sm:$0xff] }
 0x1a2   : > { %3990 = vmatmul.mubr.f32.gmra.mrb[44].mxu0 %v5758_v27  ;;  %4445 = vmatprep.subr.bf16.mxu1 %v7123_v0 }
 0x1a3   : > { %3992 = vmatprep.mubr.f32.mxu0 %v5763_v32  ;;  %4462 = vmatpush3.bf16.msra.mxu0 %v4459_v46  ;;  %v7148_v46 = vld [vmem:[#allocation30_spill] sm:$0xff] }
 0x1a4   : > { %1181 = vmatmul.mubr.f32.gmra.mrb[48].mxu1 %v5815_v12  ;;  %4464 = vmatprep.subr.bf16.mxu0 %v4463_v37 }
 0x1a5   : > { %1185 = vmatprep.mubr.f32.mxu1 %v6045_v25  ;;  %4447 = vmatpush1.bf16.msra.mxu1 %v4446_v47  ;;  %v4930_v47 = vld [vmem:[%s5681_s0 + $0x38] sm:$0xff] }
 0x1a6   : > { %3993 = vmatmul.mubr.f32.gmra.mrb[46].mxu0 %v5780_v45  ;;  %4448 = vmatprep.subr.bf16.mxu1 %v7123_v0  ;;  %v4475_v0 = vpack.c.bf16 %v1439_v5, %v1438_v35 }
 0x1a7   : > { %3995 = vmatprep.mubr.f32.mxu0 %v5785_v49  ;;  %4466 = vmatpush3.bf16.msra.mxu0 %v4463_v37  ;;  %v7153_v37 = vld [vmem:[#allocation35_spill] sm:$0xff] }
 0x1a8   : > { %1186 = vmatmul.mubr.f32.gmra.mrb[50].mxu1 %v5818_v13  ;;  %4468 = vmatprep.subr.bf16.mxu0 %v4467_v52 }
 0x1a9   : > { %1190 = vmatprep.mubr.f32.mxu1 %v6055_v29  ;;  %4450 = vmatpush1.bf16.msra.mxu1 %v4449_v30 }
 0x1aa   : > { %3996 = vmatmul.mubr.f32.gmra.mrb[48].mxu0 %v7144_v20 }
 0x1ab   : > { %3998 = vmatprep.mubr.f32.mxu0 %v7145_v48  ;;  %4470 = vmatpush3.bf16.msra.mxu0 %v4467_v52  ;;  %v7154_v52 = vld [vmem:[#allocation37_spill] sm:$0xff] }
 0x1ac   : > { %1191 = vmatmul.mubr.f32.gmra.mrb[52].mxu1 %v5837_v34  ;;  %4472 = vmatprep.subr.bf16.mxu0 %v4471_v38 }
 0x1ad   : > { %1195 = vmatprep.mubr.f32.mxu1 %v6064_v59 }
 0x1ae   : > { %3999 = vmatmul.mubr.f32.gmra.mrb[50].mxu0 %v7146_v24 }
 0x1af   : > { %4001 = vmatprep.mubr.f32.mxu0 %v7147_v44  ;;  %4474 = vmatpush3.bf16.msra.mxu0 %v4471_v38 }
 0x1b0   : > { %1196 = vmatmul.mubr.f32.gmra.mrb[54].mxu1 %v5840_v39  ;;  %4476 = vmatprep.subr.bf16.mxu0 %v4475_v0 }
 0x1b1   : > { %1200 = vmatprep.mubr.f32.mxu1 %v6074_v60 }
 0x1b2   : > { %4002 = vmatmul.mubr.f32.gmra.mrb[52].mxu0 %v7148_v46 }
 0x1b3   : > { %4004 = vmatprep.mubr.f32.mxu0 %v7149_v14  ;;  %4478 = vmatpush3.bf16.msra.mxu0 %v4475_v0 }
 0x1b4   : > { %1201 = vmatmul.mubr.f32.gmra.mrb[56].mxu1 %v5867_v6  ;;  %4480 = vmatprep.subr.bf16.mxu0 %v4479_v23 }
 0x1b5   : > { %1205 = vmatprep.mubr.f32.mxu1 %v6083_v7 }
 0x1b6   : > { %4005 = vmatmul.mubr.f32.gmra.mrb[54].mxu0 %v7150_v15 }
 0x1b7   : > { %4007 = vmatprep.mubr.f32.mxu0 %v7151_v28  ;;  %4482 = vmatpush3.bf16.msra.mxu0 %v4479_v23 }
 0x1b8   : > { %1206 = vmatmul.mubr.f32.gmra.mrb[58].mxu1 %v5870_v10 }
 0x1b9   : > { %1506 = vmatprep.mubr.f32.mxu1 %v5938_v61 }
 0x1ba   : > { %4008 = vmatmul.mubr.f32.gmra.mrb[56].mxu0 %v7152_v63 }
 0x1bb   : > { %4010 = vmatprep.mubr.f32.mxu0 %v5909_v57 }
 0x1bc   : > { %1507 = vmatmul.mubr.f32.vlgmr.msra.gmra.mrb[60].mxu1 %v4929_v9 }
 0x1bd   : > { %1511 = vmatprep.mubr.f32.mxu1 %v5953_v1 }
 0x1be   : > { %4011 = vmatmul.mubr.f32.gmra.mrb[58].mxu0 %v7153_v37 }
 0x1bf   : > { %4045 = vmatprep.mubr.f32.mxu0 %v5741_v16  ;;  %v4933_v16 = vld [vmem:[%s5681_s0 + $0x60] sm:$0xff] }
 0x1c0   : > { %1512 = vmatmul.mubr.f32.gmra.mrb[62].mxu1 %v4930_v47 }
 0x1c1   : > { %1516 = vmatprep.mubr.f32.mxu1 %v5962_v18 }
 0x1c2   : > { %4046 = vmatmul.mubr.f32.vlgmr.msra.gmra.mrb[60].mxu0 %v5758_v27  ;;  %v4934_v27 = vld [vmem:[%s5681_s0 + $0x68] sm:$0xff] }
 0x1c3   : > { %4048 = vmatprep.mubr.f32.mxu0 %v5763_v32  ;;  %v427_v32 = vld [vmem:[%s5681_s0 + $0x108] sm:$0xff] }
 0x1c4   : > { %1517 = vmatmul.mubr.f32.gmra.mrb[64].mxu1 %v4931_v33 }
 0x1c5   : > { %1521 = vmatprep.mubr.f32.mxu1 %v5969_v4 }
 0x1c6   : > { %4049 = vmatmul.mubr.f32.gmra.mrb[62].mxu0 %v5780_v45  ;;  %v428_v45 = vld [vmem:[%s5681_s0 + $0x110] sm:$0xff] }
 0x1c7   : > { %4051 = vmatprep.mubr.f32.mxu0 %v5785_v49  ;;  %v1386_v49 = vrot.slane %v427_v32, 2 }
 0x1c8   : > { %1522 = vmatmul.mubr.f32.gmra.mrb[66].mxu1 %v4932_v43 }
 0x1c9   : > { %1526 = vmatprep.mubr.f32.mxu1 %v5977_v3 }
 0x1ca   : > { %4052 = vmatmul.mubr.f32.gmra.mrb[64].mxu0 %v7144_v20 }
 0x1cb   : > { %4054 = vmatprep.mubr.f32.mxu0 %v7145_v48 }
 0x1cc   : > { %1527 = vmatmul.mubr.f32.gmra.mrb[68].mxu1 %v4933_v16 }
 0x1cd   : > { %1531 = vmatprep.mubr.f32.mxu1 %v5984_v26 }
 0x1ce   : > { %4055 = vmatmul.mubr.f32.gmra.mrb[66].mxu0 %v7146_v24 }
 0x1cf   : > { %4057 = vmatprep.mubr.f32.mxu0 %v7147_v44 }
 0x1d0   : > { %1532 = vmatmul.mubr.f32.gmra.mrb[70].mxu1 %v4934_v27 }
 0x1d1   : > { %1536 = vmatprep.mubr.f32.mxu1 %v5995_v62 }
 0x1d2   : > { %4058 = vmatmul.mubr.f32.gmra.mrb[68].mxu0 %v7148_v46 }
 0x1d3   : > { %4060 = vmatprep.mubr.f32.mxu0 %v7149_v14 }
 0x1d4   : > { %1537 = vmatmul.mubr.f32.gmra.mrb[72].mxu1 %v5771_v40  ;;  %v1387_v40 = vrot.slane %v428_v45, 2 }
 0x1d5   : > { %1541 = vmatprep.mubr.f32.mxu1 %v6005_v56 }
 0x1d6   : > { %4061 = vmatmul.mubr.f32.gmra.mrb[70].mxu0 %v7150_v15  ;;  %v1388_v2 = vsel %vm531_vm0, %v1386_v49, %v1387_v40 }
 0x1d7   : > { %4063 = vmatprep.mubr.f32.mxu0 %v7151_v28 }
 0x1d8   : > { %1542 = vmatmul.mubr.f32.gmra.mrb[74].mxu1 %v5774_v41  ;;  %v1389_v41 = vrot.slane %v429_v11, 2 }
 0x1d9   : > { %1546 = vmatprep.mubr.f32.mxu1 %v6018_v19 }
 0x1da   : > { %4064 = vmatmul.mubr.f32.gmra.mrb[72].mxu0 %v7152_v63 }
 0x1db   : > { %4066 = vmatprep.mubr.f32.mxu0 %v5909_v57 }
 0x1dc   : > { %1547 = vmatmul.mubr.f32.gmra.mrb[76].mxu1 %v5793_v54  ;;  %v1390_v54 = vsel %vm531_vm0, %v1387_v40, %v1389_v41 }
 0x1dd   : > { %1551 = vmatprep.mubr.f32.mxu1 %v6026_v42 }
 0x1de   : > { %4067 = vmatmul.mubr.f32.gmra.mrb[74].mxu0 %v7153_v37 }
 0x1df   : > { %4069 = vmatprep.mubr.f32.mxu0 %v5932_v50 }
 0x1e0   : > { %1552 = vmatmul.mubr.f32.gmra.mrb[78].mxu1 %v5796_v55  ;;  %v1379_v55 = vrot.slane %v427_v32, 1 }
 0x1e1   : > { %1556 = vmatprep.mubr.f32.mxu1 %v6036_v36 }
 0x1e2   : > { %4070 = vmatmul.mubr.f32.gmra.mrb[76].mxu0 %v7154_v52 }
 0x1e3   : > { %4072 = vmatprep.mubr.f32.mxu0 %v1388_v2 }
 0x1e4   : > { %1557 = vmatmul.mubr.f32.gmra.mrb[80].mxu1 %v5815_v12  ;;  %v1380_v12 = vrot.slane %v428_v45, 1 }
 0x1e5   : > { %1561 = vmatprep.mubr.f32.mxu1 %v6045_v25 }
 0x1e6   : > { %4073 = vmatmul.mubr.f32.gmra.mrb[78].mxu0 %v1390_v54 }
 0x1e8   : > { %1562 = vmatmul.mubr.f32.gmra.mrb[82].mxu1 %v5818_v13  ;;  %v1381_v13 = vsel %vm460_vm1, %v1379_v55, %v1380_v12 }
 0x1e9   : > { %1566 = vmatprep.mubr.f32.mxu1 %v6055_v29 }
 0x1ec   : > { %1567 = vmatmul.mubr.f32.gmra.mrb[84].mxu1 %v5837_v34  ;;  %v1382_v34 = vrot.slane %v429_v11, 1 }
 0x1ed   : > { %1571 = vmatprep.mubr.f32.mxu1 %v6064_v59 }
 0x1f0   : > { %1572 = vmatmul.mubr.f32.gmra.mrb[86].mxu1 %v5840_v39 }
 0x1f1   : > { %1576 = vmatprep.mubr.f32.mxu1 %v6074_v60 }
 0x1f4   : > { %1577 = vmatmul.mubr.f32.gmra.mrb[88].mxu1 %v5867_v6  ;;  %v1383_v6 = vsel %vm460_vm1, %v1380_v12, %v1382_v34 }
 0x1f5   : > { %1581 = vmatprep.mubr.f32.mxu1 %v6083_v7 }
 0x1f8   : > { %1582 = vmatmul.mubr.f32.gmra.mrb[90].mxu1 %v5870_v10 }
 0x1f9   : > { %1586 = vmatprep.mubr.f32.mxu1 %v6093_v8 }
 0x1fc   : > { %1587 = vmatmul.mubr.f32.gmra.mrb[92].mxu1 %v5894_v51 }
 0x1fd   : > { %1591 = vmatprep.mubr.f32.mxu1 %v6102_v21 }
 0x1ff   : > { %v3923_v39 = vpop.f32.mrb[0].mxu1 }
 0x200   : > { %v947_v50 = vpop.f32.mrb[1].mxu1  ;;  %1592 = vmatmul.mubr.f32.gmra.mrb[94].mxu1 %v5897_v53 }
 0x201   : > { %1596 = vmatprep.mubr.f32.mxu1 %v1381_v13 }
 0x203   : > { %v3926_v57 = vpop.f32.mrb[2].mxu1 }
 0x204   : > { %1597 = vmatmul.mubr.f32.gmra.mrb[96].mxu1 %v427_v32  ;;  %v957_v10 = vpop.f32.mrb[3].mxu1 }
 0x205   : > { %1601 = vmatprep.mubr.f32.mxu1 %v1383_v6 }
 0x207   : > { %v3929_v8 = vpop.f32.mrb[4].mxu1 }
 0x208   : > { %1602 = vmatmul.mubr.f32.gmra.mrb[98].mxu1 %v428_v45  ;;  %v967_v22 = vpop.f32.mrb[5].mxu1 }
 0x20b   : > { %v3932_v51 = vpop.f32.mrb[6].mxu1 }
 0x20c   : > { %v977_v17 = vpop.f32.mrb[7].mxu1 }
 0x20f   : > { %v3935_v21 = vpop.f32.mrb[8].mxu1 }
 0x210   : > { %v987_v30 = vpop.f32.mrb[9].mxu1 }
 0x213   : > { %v3938_v38 = vpop.f32.mrb[10].mxu1 }
 0x214   : > { %v997_v35 = vpop.f32.mrb[11].mxu1 }
 0x217   : > { %v6218_v5 = vpop.f32.mrb[12].mxu1 }
 0x218   : > { %v1007_v20 = vpop.f32.mrb[13].mxu1 }
 0x21b   : > { %v6220_v53 = vpop.f32.mrb[14].mxu1 }
 0x21c   : > { %v6222_v48 = vpop.f32.mrb[15].mxu1 }
 0x21d   : > { %v782_v0 = vpop.f32.mrb[0].mxu0 }
 0x21e   : > { %v948_v31 = vadd.f32 %v947_v50, %v782_v0  ;;  %v784_v58 = vpop.f32.mrb[1].mxu0 }
 0x21f   : > { %v6224_v24 = vpop.f32.mrb[16].mxu1 }
 0x220   : > { %v6226_v44 = vpop.f32.mrb[17].mxu1 }
 0x221   : > { %v787_v23 = vpop.f32.mrb[2].mxu0 }
 0x222   : > { %v953_v46 = vadd.f32 %v3923_v39, %v787_v23  ;;  %v789_v14 = vpop.f32.mrb[3].mxu0 }
 0x223   : > { %v6228_v15 = vpop.f32.mrb[18].mxu1 }
 0x224   : > { %v6230_v28 = vpop.f32.mrb[19].mxu1 }
 0x225   : > { %v792_v63 = vpop.f32.mrb[4].mxu0 }
 0x226   : > { %v958_v9 = vadd.f32 %v957_v10, %v792_v63  ;;  %v794_v37 = vpop.f32.mrb[5].mxu0 }
 0x229   : > { %v797_v47 = vpop.f32.mrb[6].mxu0 }
 0x22a   : > { %v963_v33 = vadd.f32 %v3926_v57, %v797_v47  ;;  %v799_v43 = vpop.f32.mrb[7].mxu0 }
 0x22d   : > { %v802_v16 = vpop.f32.mrb[8].mxu0 }
 0x22e   : > { %v968_v27 = vadd.f32 %v967_v22, %v802_v16  ;;  %v804_v32 = vpop.f32.mrb[9].mxu0 }
 0x231   : > { %v807_v45 = vpop.f32.mrb[10].mxu0 }
 0x232   : > { %v973_v49 = vadd.f32 %v3929_v8, %v807_v45  ;;  %v809_v40 = vpop.f32.mrb[11].mxu0 }
 0x235   : > { %v812_v11 = vpop.f32.mrb[12].mxu0 }
 0x236   : > { %v978_v41 = vadd.f32 %v977_v17, %v812_v11  ;;  %v814_v2 = vpop.f32.mrb[13].mxu0 }
 0x239   : > { %v817_v52 = vpop.f32.mrb[14].mxu0 }
 0x23a   : > { %v983_v54 = vadd.f32 %v3932_v51, %v817_v52  ;;  %v819_v55 = vpop.f32.mrb[15].mxu0 }
 0x23d   : > { %v822_v12 = vpop.f32.mrb[16].mxu0 }
 0x23e   : > { %v988_v13 = vadd.f32 %v987_v30, %v822_v12  ;;  %v824_v34 = vpop.f32.mrb[17].mxu0 }
 0x23f   : > { %v1112_v39 = vpop.f32.mrb[20].mxu1 }
 0x240   : > { %v6232_v50 = vadd.f32 %v1112_v39, %v948_v31  ;;  %v1114_v6 = vpop.f32.mrb[21].mxu1 }
 0x241   : > { %v827_v57 = vpop.f32.mrb[18].mxu0 }
 0x242   : > { %v993_v10 = vadd.f32 %v3935_v21, %v827_v57  ;;  %v829_v22 = vpop.f32.mrb[19].mxu0 }
 0x243   : > { %v1117_v0 = vpop.f32.mrb[22].mxu1 }
 0x244   : > { %v6234_v58 = vadd.f32 %v1117_v0, %v953_v46  ;;  %v1119_v8 = vpop.f32.mrb[23].mxu1 }
 0x245   : > { %v832_v23 = vpop.f32.mrb[20].mxu0 }
 0x246   : > { %v998_v17 = vadd.f32 %v997_v35, %v832_v23  ;;  %v834_v14 = vpop.f32.mrb[21].mxu0 }
 0x247   : > { %v1122_v63 = vpop.f32.mrb[24].mxu1 }
 0x248   : > { %v6236_v51 = vadd.f32 %v1122_v63, %v958_v9  ;;  %v1124_v37 = vpop.f32.mrb[25].mxu1 }
 0x249   : > { %v837_v30 = vpop.f32.mrb[22].mxu0 }
 0x24a   : > { %v1003_v47 = vadd.f32 %v3938_v38, %v837_v30  ;;  %v839_v43 = vpop.f32.mrb[23].mxu0 }
 0x24b   : > { %v1127_v31 = vpop.f32.mrb[26].mxu1 }
 0x24c   : > { %v1128_v16 = vadd.f32 %v1127_v31, %v963_v33  ;;  %v1129_v32 = vpop.f32.mrb[27].mxu1 }
 0x24d   : > { %v842_v45 = vpop.f32.mrb[24].mxu0 }
 0x24e   : > { %v1008_v21 = vadd.f32 %v1007_v20, %v842_v45  ;;  %v844_v40 = vpop.f32.mrb[25].mxu0 }
 0x24f   : > { %v1132_v11 = vpop.f32.mrb[28].mxu1 }
 0x250   : > { %v1133_v46 = vadd.f32 %v1132_v11, %v968_v27  ;;  %v1134_v2 = vpop.f32.mrb[29].mxu1 }
 0x251   : > { %v847_v52 = vpop.f32.mrb[26].mxu0 }
 0x252   : > { %v1013_v35 = vadd.f32 %v6218_v5, %v847_v52  ;;  %v849_v55 = vpop.f32.mrb[27].mxu0 }
 0x253   : > { %v1137_v12 = vpop.f32.mrb[30].mxu1 }
 0x254   : > { %v1138_v9 = vadd.f32 %v1137_v12, %v973_v49  ;;  %v1139_v34 = vpop.f32.mrb[31].mxu1 }
 0x255   : > { %v852_v39 = vpop.f32.mrb[28].mxu0 }
 0x256   : > { %v1018_v38 = vadd.f32 %v6222_v48, %v852_v39  ;;  %v854_v6 = vpop.f32.mrb[29].mxu0 }
 0x257   : > { %v1142_v57 = vpop.f32.mrb[32].mxu1 }
 0x258   : > { %v1143_v33 = vadd.f32 %v1142_v57, %v978_v41  ;;  %v1144_v22 = vpop.f32.mrb[33].mxu1 }
 0x259   : > { %v857_v0 = vpop.f32.mrb[30].mxu0 }
 0x25a   : > { %v1023_v20 = vadd.f32 %v6220_v53, %v857_v0  ;;  %v859_v8 = vpop.f32.mrb[31].mxu0 }
 0x25b   : > { %v1147_v27 = vpop.f32.mrb[34].mxu1 }
 0x25c   : > { %v1148_v23 = vadd.f32 %v1147_v27, %v983_v54  ;;  %v1149_v14 = vpop.f32.mrb[35].mxu1 }
 0x25d   : > { %v862_v63 = vpop.f32.mrb[32].mxu0 }
 0x25e   : > { %v1028_v5 = vadd.f32 %v6226_v44, %v862_v63  ;;  %v864_v37 = vpop.f32.mrb[33].mxu0 }
 0x25f   : > { %v1152_v49 = vpop.f32.mrb[36].mxu1 }
 0x260   : > { %v1153_v30 = vadd.f32 %v1152_v49, %v988_v13  ;;  %v1154_v43 = vpop.f32.mrb[37].mxu1 }
 0x261   : > { %v867_v31 = vpop.f32.mrb[34].mxu0 }
 0x262   : > { %v1033_v48 = vadd.f32 %v6224_v24, %v867_v31  ;;  %v869_v32 = vpop.f32.mrb[35].mxu0 }
 0x263   : > { %v1157_v41 = vpop.f32.mrb[38].mxu1 }
 0x264   : > { %v1158_v45 = vadd.f32 %v1157_v41, %v993_v10  ;;  %v1159_v40 = vpop.f32.mrb[39].mxu1 }
 0x265   : > { %v872_v11 = vpop.f32.mrb[36].mxu0 }
 0x266   : > { %v1038_v53 = vadd.f32 %v6230_v28, %v872_v11  ;;  %v874_v2 = vpop.f32.mrb[37].mxu0 }
 0x267   : > { %v1162_v54 = vpop.f32.mrb[40].mxu1 }
 0x268   : > { %v1163_v52 = vadd.f32 %v1162_v54, %v998_v17  ;;  %v1164_v55 = vpop.f32.mrb[41].mxu1 }
 0x269   : > { %v877_v12 = vpop.f32.mrb[38].mxu0 }
 0x26a   : > { %v1043_v44 = vadd.f32 %v6228_v15, %v877_v12  ;;  %v879_v34 = vpop.f32.mrb[39].mxu0 }
 0x26b   : > { %v1167_v13 = vpop.f32.mrb[42].mxu1 }
 0x26c   : > { %v1168_v39 = vadd.f32 %v1167_v13, %v1003_v47  ;;  %v1169_v6 = vpop.f32.mrb[43].mxu1 }
 0x26d   : > { %v3985_v57 = vpop.f32.mrb[40].mxu0 }
 0x26e   : > { %v6246_v24 = vadd.f32 %v3985_v57, %v6234_v58  ;;  %v1277_v10 = vpop.f32.mrb[41].mxu0 }
 0x26f   : > { %v1172_v22 = vpop.f32.mrb[44].mxu1  ;;  %v6249_v0 = vadd.f32 %v1277_v10, %v6232_v50 }
 0x270   : > { %v1173_v28 = vadd.f32 %v1172_v22, %v1008_v21  ;;  %v1174_v8 = vpop.f32.mrb[45].mxu1 }
 0x271   : > { %v3988_v17 = vpop.f32.mrb[42].mxu0 }
 0x272   : > { %v6251_v27 = vadd.f32 %v3988_v17, %v1128_v16  ;;  %v1287_v14 = vpop.f32.mrb[43].mxu0 }
 0x273   : > { %v1177_v15 = vpop.f32.mrb[46].mxu1  ;;  %v6254_v63 = vadd.f32 %v1287_v14, %v6236_v51 }
 0x274   : > { %v1178_v47 = vadd.f32 %v1177_v15, %v1013_v35  ;;  %v1179_v37 = vpop.f32.mrb[47].mxu1 }
 0x275   : > { %v3991_v49 = vpop.f32.mrb[44].mxu0 }
 0x276   : > { %v6256_v58 = vadd.f32 %v3991_v49, %v1138_v9  ;;  %v1297_v43 = vpop.f32.mrb[45].mxu0 }
 0x277   : > { %v1182_v31 = vpop.f32.mrb[48].mxu1  ;;  %v6258_v32 = vadd.f32 %v1297_v43, %v1133_v46 }
 0x278   : > { %v1183_v50 = vadd.f32 %v1182_v31, %v1018_v38  ;;  %v1184_v21 = vpop.f32.mrb[49].mxu1 }
 0x279   : > { %v3994_v41 = vpop.f32.mrb[46].mxu0 }
 0x27a   : > { %v6260_v40 = vadd.f32 %v3994_v41, %v1148_v23  ;;  %v1307_v16 = vpop.f32.mrb[47].mxu0 }
 0x27b   : > { %v1187_v11 = vpop.f32.mrb[50].mxu1  ;;  %v6262_v2 = vadd.f32 %v1307_v16, %v1143_v33 }
 0x27c   : > { %v1188_v51 = vadd.f32 %v1187_v11, %v1023_v20  ;;  %v1189_v54 = vpop.f32.mrb[51].mxu1 }
 0x27d   : > { %v3997_v35 = vpop.f32.mrb[48].mxu0 }
 0x27e   : > { %v6264_v55 = vadd.f32 %v3997_v35, %v1158_v45  ;;  %v1317_v9 = vpop.f32.mrb[49].mxu0 }
 0x27f   : > { %v1192_v12 = vpop.f32.mrb[52].mxu1  ;;  %v6266_v34 = vadd.f32 %v1317_v9, %v1153_v30 }
 0x280   : > { %v1193_v46 = vadd.f32 %v1192_v12, %v1028_v5  ;;  %v1194_v13 = vpop.f32.mrb[53].mxu1 }
 0x281   : > { %v4000_v38 = vpop.f32.mrb[50].mxu0  ;;  %v6288_v13 = vld [vmem:[#allocation8] ss:$0 sm:$0xff] }
 0x282   : > { %v6268_v6 = vadd.f32 %v4000_v38, %v1168_v39  ;;  %v1327_v23 = vpop.f32.mrb[51].mxu0 }
 0x283   : > { %v1197_v57 = vpop.f32.mrb[54].mxu1  ;;  %v6270_v10 = vadd.f32 %v1327_v23, %v1163_v52 }
 0x284   : > { %v1198_v33 = vadd.f32 %v1197_v57, %v1033_v48  ;;  %v1199_v22 = vpop.f32.mrb[55].mxu1 }
 0x285   : > { %v4003_v20 = vpop.f32.mrb[52].mxu0 }
 0x286   : > { %v6272_v8 = vadd.f32 %v4003_v20, %v1178_v47  ;;  %v1337_v45 = vpop.f32.mrb[53].mxu0 }
 0x287   : > { %v1202_v17 = vpop.f32.mrb[56].mxu1  ;;  %v6274_v14 = vadd.f32 %v1337_v45, %v1173_v28 }
 0x288   : > { %v1203_v30 = vadd.f32 %v1202_v17, %v1038_v53  ;;  %v1204_v15 = vpop.f32.mrb[57].mxu1 }
 0x289   : > { %v4006_v5 = vpop.f32.mrb[54].mxu0 }
 0x28a   : > { %v6276_v37 = vadd.f32 %v4006_v5, %v1188_v51  ;;  %v1347_v39 = vpop.f32.mrb[55].mxu0 }
 0x28b   : > { %v1207_v49 = vpop.f32.mrb[58].mxu1  ;;  %v6278_v43 = vadd.f32 %v1347_v39, %v1183_v50 }
 0x28c   : > { %v1208_v52 = vadd.f32 %v1207_v49, %v1043_v44  ;;  %v1209_v31 = vpop.f32.mrb[59].mxu1 }
 0x28d   : > { %v4009_v48 = vpop.f32.mrb[56].mxu0 }
 0x28e   : > { %v6280_v21 = vadd.f32 %v4009_v48, %v1198_v33  ;;  %v1357_v47 = vpop.f32.mrb[57].mxu0  ;;  %v6291_v33 = vld [vmem:[#allocation9] ss:$0 sm:$0xff] }
 0x28f   : > { %v6282_v41 = vadd.f32 %v1357_v47, %v1193_v46  ;;  %v1508_v16 = vpop.f32.mrb[60].mxu1 }
 0x290   : > { %v1510_v28 = vpop.f32.mrb[61].mxu1 }
 0x291   : > { %v4012_v11 = vpop.f32.mrb[58].mxu0 }
 0x292   : > { %v6284_v53 = vadd.f32 %v4012_v11, %v1208_v52  ;;  %v1367_v54 = vpop.f32.mrb[59].mxu0 }
 0x293   : > { %v6286_v51 = vadd.f32 %v1367_v54, %v1203_v30  ;;  %v1513_v35 = vpop.f32.mrb[62].mxu1 }
 0x294   : > { %v1515_v9 = vpop.f32.mrb[63].mxu1 }
 0x295   : > { %v4047_v50 = vpop.f32.mrb[60].mxu0 }
 0x296   : > { %v1679_v12 = vadd.f32 %v4047_v50, %v1513_v35  ;;  %v1673_v44 = vpop.f32.mrb[61].mxu0 }
 0x297   : > { %v1518_v38 = vpop.f32.mrb[64].mxu1  ;;  %v1674_v23 = vadd.f32 %v1673_v44, %v1508_v16 }
 0x298   : > { %v1773_v46 = vadd.f32 %v1679_v12, %v6246_v24  ;;  %v1520_v57 = vpop.f32.mrb[65].mxu1 }
 0x299   : > { %v1772_v22 = vadd.f32 %v1674_v23, %v6249_v0  ;;  %v4050_v20 = vpop.f32.mrb[62].mxu0 }
 0x29a   : > { %v1800_v45 = vmul.f32 %v6288_v13, %v1773_v46  ;;  %v1683_v17 = vpop.f32.mrb[63].mxu0 }
 0x29b   : > { %v1799_v30 = vmul.f32 %v6288_v13, %v1772_v22  ;;  %v1523_v15 = vpop.f32.mrb[66].mxu1  ;;  %v1684_v5 = vadd.f32 %v1683_v17, %v1518_v38 }
 0x29c   : > { %v1827_v39 = vadd.f32 %v6291_v33, %v1800_v45  ;;  %v1689_v49 = vadd.f32 %v4050_v20, %v1523_v15  ;;  %v1525_v52 = vpop.f32.mrb[67].mxu1 }
 0x29d   : > { %v1826_v31 = vadd.f32 %v6291_v33, %v1799_v30  ;;  %v1774_v24 = vadd.f32 %v1684_v5, %v6254_v63  ;;  %v4053_v48 = vpop.f32.mrb[64].mxu0 }
 0x29e   : > { %v1847_v47 = vmax.f32 %v1827_v39, 0.0  ;;  %v1775_v0 = vadd.f32 %v1689_v49, %v6251_v27  ;;  %v1693_v16 = vpop.f32.mrb[65].mxu0 }
 0x29f   : > { %v1846_v28 = vmax.f32 %v1826_v31, 0.0  ;;  %v1801_v11 = vmul.f32 %v6288_v13, %v1774_v24  ;;  %v1528_v54 = vpop.f32.mrb[68].mxu1 }
 0x2a0   : > { %1887 = vst [vmem:[#allocation2 + $0x9] sm:$0xff] %v1847_v47  ;;  %v1802_v35 = vmul.f32 %v6288_v13, %v1775_v0  ;;  %v1694_v9 = vadd.f32 %v1693_v16, %v1528_v54  ;;  %v1530_v50 = vpop.f32.mrb[69].mxu1 }
 0x2a1   : > { %1886 = vst [vmem:[#allocation2 + $0x1] sm:$0xff] %v1846_v28  ;;  %v1828_v12 = vadd.f32 %v6291_v33, %v1801_v11  ;;  %v4056_v44 = vpop.f32.mrb[66].mxu0 }
 0x2a2   : > { %v1829_v63 = vadd.f32 %v6291_v33, %v1802_v35  ;;  %v1776_v38 = vadd.f32 %v1694_v9, %v6258_v32  ;;  %v1703_v23 = vpop.f32.mrb[67].mxu0 }
 0x2a3   : > { %v1848_v27 = vmax.f32 %v1828_v12, 0.0  ;;  %v1533_v46 = vpop.f32.mrb[70].mxu1 }
 0x2a4   : > { %v1849_v57 = vmax.f32 %v1829_v63, 0.0  ;;  %v1803_v22 = vmul.f32 %v6288_v13, %v1776_v38  ;;  %v1699_v20 = vadd.f32 %v4053_v48, %v1533_v46  ;;  %v1535_v45 = vpop.f32.mrb[71].mxu1 }
 0x2a5   : > { %1888 = vst [vmem:[#allocation2 + $0x19] sm:$0xff] %v1848_v27  ;;  %v4059_v17 = vpop.f32.mrb[68].mxu0 }
 0x2a6   : > { %1889 = vst [vmem:[#allocation2 + $0x21] sm:$0xff] %v1849_v57  ;;  %v1830_v30 = vadd.f32 %v6291_v33, %v1803_v22  ;;  %v1777_v15 = vadd.f32 %v1699_v20, %v6256_v58  ;;  %v1713_v5 = vpop.f32.mrb[69].mxu0 }
 0x2a7   : > { %v1538_v39 = vpop.f32.mrb[72].mxu1 }
 0x2a8   : > { %v1850_v49 = vmax.f32 %v1830_v30, 0.0  ;;  %v1804_v32 = vmul.f32 %v6288_v13, %v1777_v15  ;;  %v1704_v52 = vadd.f32 %v1703_v23, %v1538_v39  ;;  %v1540_v31 = vpop.f32.mrb[73].mxu1 }
 0x2a9   : > { %v4062_v24 = vpop.f32.mrb[70].mxu0 }
 0x2aa   : > { %1890 = vst [vmem:[#allocation2 + $0x31] sm:$0xff] %v1850_v49  ;;  %v1831_v47 = vadd.f32 %v6291_v33, %v1804_v32  ;;  %v1778_v48 = vadd.f32 %v1704_v52, %v6262_v2  ;;  %v1723_v0 = vpop.f32.mrb[71].mxu0 }
 0x2ab   : > { %v1543_v16 = vpop.f32.mrb[74].mxu1 }
 0x2ac   : > { %v1851_v28 = vmax.f32 %v1831_v47, 0.0  ;;  %v1805_v11 = vmul.f32 %v6288_v13, %v1778_v48  ;;  %v1709_v54 = vadd.f32 %v4056_v44, %v1543_v16  ;;  %v1545_v58 = vpop.f32.mrb[75].mxu1 }
 0x2ad   : > { %v4065_v35 = vpop.f32.mrb[72].mxu0 }
 0x2ae   : > { %1891 = vst [vmem:[#allocation2 + $0x39] sm:$0xff] %v1851_v28  ;;  %v1832_v9 = vadd.f32 %v6291_v33, %v1805_v11  ;;  %v1779_v50 = vadd.f32 %v1709_v54, %v6260_v40  ;;  %v1733_v12 = vpop.f32.mrb[73].mxu0 }
 0x2af   : > { %v1548_v63 = vpop.f32.mrb[76].mxu1 }
 0x2b0   : > { %v1852_v38 = vmax.f32 %v1832_v9, 0.0  ;;  %v1806_v23 = vmul.f32 %v6288_v13, %v1779_v50  ;;  %v1714_v27 = vadd.f32 %v1713_v5, %v1548_v63  ;;  %v1550_v2 = vpop.f32.mrb[77].mxu1 }
 0x2b1   : > { %v4068_v46 = vpop.f32.mrb[74].mxu0 }
 0x2b2   : > { %1892 = vst [vmem:[#allocation2 + $0x49] sm:$0xff] %v1852_v38  ;;  %v1833_v57 = vadd.f32 %v6291_v33, %v1806_v23  ;;  %v1780_v44 = vadd.f32 %v1714_v27, %v6266_v34  ;;  %v1743_v22 = vpop.f32.mrb[75].mxu0 }
 0x2b3   : > { %v1553_v20 = vpop.f32.mrb[78].mxu1 }
 0x2b4   : > { %v1853_v45 = vmax.f32 %v1833_v57, 0.0  ;;  %v1807_v30 = vmul.f32 %v6288_v13, %v1780_v44  ;;  %v1719_v15 = vadd.f32 %v4059_v17, %v1553_v20  ;;  %v1555_v40 = vpop.f32.mrb[79].mxu1 }
 0x2b5   : > { %v6318_v39 = vpop.f32.mrb[76].mxu0 }
 0x2b6   : > { %1893 = vst [vmem:[#allocation2 + $0x51] sm:$0xff] %v1853_v45  ;;  %v1834_v49 = vadd.f32 %v6291_v33, %v1807_v30  ;;  %v1781_v5 = vadd.f32 %v1719_v15, %v6264_v55  ;;  %v1753_v32 = vpop.f32.mrb[77].mxu0 }
 0x2b7   : > { %v1558_v52 = vpop.f32.mrb[80].mxu1 }
 0x2b8   : > { %v1854_v31 = vmax.f32 %v1834_v49, 0.0  ;;  %v1808_v47 = vmul.f32 %v6288_v13, %v1781_v5  ;;  %v1724_v34 = vadd.f32 %v1723_v0, %v1558_v52  ;;  %v1560_v48 = vpop.f32.mrb[81].mxu1 }
 0x2b9   : > { %v6323_v16 = vpop.f32.mrb[78].mxu0 }
 0x2ba   : > { %1894 = vst [vmem:[#allocation2 + $0x61] sm:$0xff] %v1854_v31  ;;  %v1835_v17 = vadd.f32 %v6291_v33, %v1808_v47  ;;  %v1782_v28 = vadd.f32 %v1724_v34, %v6270_v10  ;;  %v1763_v11 = vpop.f32.mrb[79].mxu0 }
 0x2bb   : > { %v1563_v54 = vpop.f32.mrb[82].mxu1 }
 0x2bc   : > { %v1855_v58 = vmax.f32 %v1835_v17, 0.0  ;;  %v1809_v9 = vmul.f32 %v6288_v13, %v1782_v28  ;;  %v1729_v55 = vadd.f32 %v4062_v24, %v1563_v54  ;;  %v1565_v50 = vpop.f32.mrb[83].mxu1 }
 0x2be   : > { %1895 = vst [vmem:[#allocation2 + $0x69] sm:$0xff] %v1855_v58  ;;  %v1836_v63 = vadd.f32 %v6291_v33, %v1809_v9  ;;  %v1783_v0 = vadd.f32 %v1729_v55, %v6268_v6 }
 0x2bf   : > { %v1568_v38 = vpop.f32.mrb[84].mxu1 }
 0x2c0   : > { %v1856_v23 = vmax.f32 %v1836_v63, 0.0  ;;  %v1810_v27 = vmul.f32 %v6288_v13, %v1783_v0  ;;  %v1734_v2 = vadd.f32 %v1733_v12, %v1568_v38  ;;  %v1570_v57 = vpop.f32.mrb[85].mxu1 }
 0x2c2   : > { %1896 = vst [vmem:[#allocation2 + $0x79] sm:$0xff] %v1856_v23  ;;  %v1837_v10 = vadd.f32 %v6291_v33, %v1810_v27  ;;  %v1784_v44 = vadd.f32 %v1734_v2, %v6274_v14 }
 0x2c3   : > { %v1573_v20 = vpop.f32.mrb[86].mxu1 }
 0x2c4   : > { %v1857_v45 = vmax.f32 %v1837_v10, 0.0  ;;  %v1811_v24 = vmul.f32 %v6288_v13, %v1784_v44  ;;  %v1739_v30 = vadd.f32 %v4065_v35, %v1573_v20  ;;  %v1575_v15 = vpop.f32.mrb[87].mxu1 }
 0x2c6   : > { %1897 = vst [vmem:[#allocation2 + $0x81] sm:$0xff] %v1857_v45  ;;  %v1838_v6 = vadd.f32 %v6291_v33, %v1811_v24  ;;  %v1785_v40 = vadd.f32 %v1739_v30, %v6272_v8 }
 0x2c7   : > { %v1578_v49 = vpop.f32.mrb[88].mxu1 }
 0x2c8   : > { %v1858_v5 = vmax.f32 %v1838_v6, 0.0  ;;  %v1812_v12 = vmul.f32 %v6288_v13, %v1785_v40  ;;  %v1744_v52 = vadd.f32 %v1743_v22, %v1578_v49  ;;  %v1580_v31 = vpop.f32.mrb[89].mxu1 }
 0x2ca   : > { %1898 = vst [vmem:[#allocation2 + $0x91] sm:$0xff] %v1858_v5  ;;  %v1839_v14 = vadd.f32 %v6291_v33, %v1812_v12  ;;  %v1786_v47 = vadd.f32 %v1744_v52, %v6278_v43 }
 0x2cb   : > { %v1583_v34 = vpop.f32.mrb[90].mxu1 }
 0x2cc   : > { %v1859_v48 = vmax.f32 %v1839_v14, 0.0  ;;  %v1813_v35 = vmul.f32 %v6288_v13, %v1786_v47  ;;  %v1749_v17 = vadd.f32 %v4068_v46, %v1583_v34  ;;  %v1585_v28 = vpop.f32.mrb[91].mxu1 }
 0x2ce   : > { %1899 = vst [vmem:[#allocation2 + $0x99] sm:$0xff] %v1859_v48  ;;  %v1840_v8 = vadd.f32 %v6291_v33, %v1813_v35  ;;  %v1787_v54 = vadd.f32 %v1749_v17, %v6276_v37 }
 0x2cf   : > { %v1588_v58 = vpop.f32.mrb[92].mxu1 }
 0x2d0   : > { %v1860_v9 = vmax.f32 %v1840_v8, 0.0  ;;  %v1814_v22 = vmul.f32 %v6288_v13, %v1787_v54  ;;  %v1754_v55 = vadd.f32 %v1753_v32, %v1588_v58  ;;  %v1590_v50 = vpop.f32.mrb[93].mxu1 }
 0x2d2   : > { %1900 = vst [vmem:[#allocation2 + $0xa9] sm:$0xff] %v1860_v9  ;;  %v1841_v43 = vadd.f32 %v6291_v33, %v1814_v22  ;;  %v1788_v63 = vadd.f32 %v1754_v55, %v6282_v41 }
 0x2d3   : > { %v1593_v0 = vpop.f32.mrb[94].mxu1 }
 0x2d4   : > { %v1861_v38 = vmax.f32 %v1841_v43, 0.0  ;;  %v1815_v46 = vmul.f32 %v6288_v13, %v1788_v63  ;;  %v1759_v23 = vadd.f32 %v6318_v39, %v1593_v0  ;;  %v1595_v27 = vpop.f32.mrb[95].mxu1 }
 0x2d6   : > { %1901 = vst [vmem:[#allocation2 + $0xb1] sm:$0xff] %v1861_v38  ;;  %v1842_v37 = vadd.f32 %v6291_v33, %v1815_v46  ;;  %v1789_v2 = vadd.f32 %v1759_v23, %v6280_v21 }
 0x2d7   : > { %v1598_v57 = vpop.f32.mrb[96].mxu1 }
 0x2d8   : > { %v1862_v32 = vmax.f32 %v1842_v37, 0.0  ;;  %v1816_v10 = vmul.f32 %v6288_v13, %v1789_v2  ;;  %v1764_v44 = vadd.f32 %v1763_v11, %v1598_v57  ;;  %v1600_v20 = vpop.f32.mrb[97].mxu1 }
 0x2da   : > { %1902 = vst [vmem:[#allocation2 + $0xc1] sm:$0xff] %v1862_v32  ;;  %v1843_v41 = vadd.f32 %v6291_v33, %v1816_v10  ;;  %v1790_v45 = vadd.f32 %v1764_v44, %v6286_v51  ;;  %v5280_v51 = vmov (!%p3433_p5), 0.0  }
 0x2db   : > { %v1603_v24 = vpop.f32.mrb[98].mxu1  ;;  %1910 = vst [vmem:[#allocation2] sm:$0xff] (!%p3433_p5), %v5280_v51  ;;  %1911 = vst [vmem:[#allocation2 + $0x8] sm:$0xff] (!%p3433_p5), %v5280_v51 }
 0x2dc   : > { %v1863_v39 = vmax.f32 %v1843_v41, 0.0  ;;  %v1817_v30 = vmul.f32 %v6288_v13, %v1790_v45  ;;  %v1769_v15 = vadd.f32 %v6323_v16, %v1603_v24  ;;  %v1605_v6 = vpop.f32.mrb[99].mxu1  ;;  %1912 = vst [vmem:[#allocation2 + $0x10] sm:$0x3] (!%p3433_p5), %v5280_v51 }
 0x2de   : > { %1903 = vst [vmem:[#allocation2 + $0xc9] sm:$0xff] %v1863_v39  ;;  %v1844_v21 = vadd.f32 %v6291_v33, %v1817_v30  ;;  %v1791_v40 = vadd.f32 %v1769_v15, %v6284_v53 }
 0x2e0   : > { %v1864_v11 = vmax.f32 %v1844_v21, 0.0  ;;  %v1818_v49 = vmul.f32 %v6288_v13, %v1791_v40  ;;  %1909 = sbr.rel (%p3433_p5) target bundleno = 743 (0x2e7), region = 80 }
 0x2e2   : > { %1904 = vst [vmem:[#allocation2 + $0xd9] sm:$0xff] %v1864_v11  ;;  %v1845_v5 = vadd.f32 %v6291_v33, %v1818_v49 }
 0x2e4   : > { %v1865_v12 = vmax.f32 %v1845_v5, 0.0 }
 0x2e6   : > { %1905 = vst [vmem:[#allocation2 + $0xe1] sm:$0xff] %v1865_v12 }
 0x2e7 PF: > { %s7155_s12 = sld [smem:[#allocation22_spill]] }
 0x2ed   : > { %p3434_p13 = scmp.ne.s32.totalorder %s7155_s12, 1 }
 0x2ee   : > { %v5281_v53 = vmov (!%p3434_p13), 0.0  }
 0x2ef   : > { %1916 = sbr.rel (%p3434_p13) target bundleno = 758 (0x2f6), region = 84  ;;  %1918 = vst [vmem:[#allocation2 + $0xd8] sm:$0xff] (!%p3434_p13), %v5281_v53  ;;  %1919 = vst [vmem:[#allocation2 + $0xe0] sm:$0xff] (!%p3434_p13), %v5281_v53 }
 0x2f0   : > { %1920 = vst [vmem:[#allocation2 + $0xe8] sm:$0x3] (!%p3434_p13), %v5281_v53 }
 0x2f6 PF: > { %v2169_v13 = vld [vmem:[#allocation11 + $0x200] sm:$0xff]  ;;  %v2170_v33 = vld [vmem:[#allocation11 + $0x208] sm:$0xff]  ;;  %v2171_v35 = vld [vmem:[#allocation11 + $0x210] sm:$0xff]  ;;  %s7176_s4 = sld [smem:[#allocation22_spill]]  ;;  %s7177_s3 = sld [smem:[#allocation23_spill]] }
 0x2f7   : > { %v2119_v16 = vld [vmem:[#allocation11 + $0x100] sm:$0xff]  ;;  %v4483_v52 = vpack.c.bf16 %v2170_v33, %v2169_v13  ;;  %v2120_v31 = vld [vmem:[#allocation11 + $0x108] sm:$0xff]  ;;  %v2172_v17 = vld [vmem:[#allocation11 + $0x218] sm:$0xff]  ;;  %s3264_s17 = sshll.u32 %s6359_s7, 4  ;;  %s7182_s14 = sld [smem:[#allocation58_spill]]  ;;  %s6945_s17 = int_to_ptr.vmem [resolvable:$true] %s3264_s17 }
 0x2f8   : > { %v2153_v14 = vld [vmem:[#allocation11 + $0x180] sm:$0xff]  ;;  %v2154_v47 = vld [vmem:[#allocation11 + $0x188] sm:$0xff]  ;;  %v4579_v34 = vpack.c.bf16 %v2120_v31, %v2119_v16  ;;  %v2121_v28 = vld [vmem:[#allocation11 + $0x110] sm:$0xff]  ;;  %v4487_v8 = vpack.c.bf16 %v2172_v17, %v2171_v35  ;;  %s6950_s0 = scalar_lea.sflag [#allocation5], %s387_s2  ;;  %s5133_s12 = scalar_lea.vmem %s6945_s17, 2048 }
 0x2f9   : > { %v4485_v48 = vpack.c.bf16 %v2154_v47, %v2153_v14  ;;  %4484 = vmatprep.subr.bf16.mxu0 %v4483_v52  ;;  %v2122_v54 = vld [vmem:[#allocation11 + $0x118] sm:$0xff]  ;;  %v2155_v58 = vld [vmem:[#allocation11 + $0x190] sm:$0xff]  ;;  %v2173_v50 = vld [vmem:[#allocation11 + $0x220] sm:$0xff]  ;;  %p5134_p6 = scmp.ne.s32.totalorder %s6945_s17, %s5133_s12  ;;  %p7183_p7 = scmp.ne.s32.totalorder %s7101_s15, 0 }
 0x2fa   : > { %v2156_v9 = vld [vmem:[#allocation11 + $0x198] sm:$0xff]  ;;  %4580 = vmatprep.subr.bf16.mxu1 %v4579_v34  ;;  %v4583_v22 = vpack.c.bf16 %v2122_v54, %v2121_v28  ;;  %v2174_v43 = vld [vmem:[#allocation11 + $0x228] sm:$0xff]  ;;  %v2123_v63 = vld [vmem:[#allocation11 + $0x120] sm:$0xff] }
 0x2fb   : > { %4486 = vmatpush3.bf16.msra.mxu0 %v4485_v48  ;;  %v4489_v55 = vpack.c.bf16 %v2156_v9, %v2155_v58  ;;  %4582 = vmatpush3.bf16.msra.mxu1 %v4579_v34  ;;  %v4491_v0 = vpack.c.bf16 %v2174_v43, %v2173_v50  ;;  %v2124_v38 = vld [vmem:[#allocation11 + $0x128] sm:$0xff]  ;;  %v2157_v46 = vld [vmem:[#allocation11 + $0x1a0] sm:$0xff]  ;;  %v2175_v37 = vld [vmem:[#allocation11 + $0x230] sm:$0xff]  ;;  %p5135_p11 = pnand %p5134_p6, %p7183_p7 }
 0x2fc   : > { %4488 = vmatprep.subr.bf16.mxu0 %v4487_v8  ;;  %v2158_v23 = vld [vmem:[#allocation11 + $0x1a8] sm:$0xff]  ;;  %4584 = vmatprep.subr.bf16.mxu1 %v4583_v22  ;;  %v4587_v27 = vpack.c.bf16 %v2124_v38, %v2123_v63  ;;  %v2176_v2 = vld [vmem:[#allocation11 + $0x238] sm:$0xff]  ;;  %v2125_v57 = vld [vmem:[#allocation11 + $0x130] sm:$0xff]  ;;  %s3444_s23 = sshll.u32 %s7176_s4, 4  ;;  %s3440_s24 = sshll.u32 %s7177_s3, 5 }
 0x2fd   : > { %v2126_v32 = vld [vmem:[#allocation11 + $0x138] sm:$0xff]  ;;  %v4493_v10 = vpack.c.bf16 %v2158_v23, %v2157_v46  ;;  %v4495_v44 = vpack.c.bf16 %v2176_v2, %v2175_v37  ;;  %v2159_v20 = vld [vmem:[#allocation11 + $0x1b0] sm:$0xff]  ;;  %v2177_v24 = vld [vmem:[#allocation11 + $0x240] sm:$0xff]  ;;  %s3261_s19 = sadd.s32 %s3444_s23, %s3440_s24  ;;  %p5136_p12 = pneg %p5135_p11 }
 0x2fe   : > { %v2160_v41 = vld [vmem:[#allocation11 + $0x1b8] sm:$0xff]  ;;  %v4591_v45 = vpack.c.bf16 %v2126_v32, %v2125_v57  ;;  %v2178_v39 = vld [vmem:[#allocation11 + $0x248] sm:$0xff]  ;;  %v2127_v30 = vld [vmem:[#allocation11 + $0x140] sm:$0xff]  ;;  %s3441_s27 = sshll.u32 %s3261_s19, 7  ;;  %s5282_s4 = smov [#allocation15]  }
 0x2ff   : > { %4490 = vmatpush3.bf16.msra.mxu0 %v4489_v55  ;;  %4586 = vmatpush3.bf16.msra.mxu1 %v4583_v22  ;;  %v2128_v15 = vld [vmem:[#allocation11 + $0x148] sm:$0xff]  ;;  %v4497_v6 = vpack.c.bf16 %v2160_v41, %v2159_v20  ;;  %v4499_v21 = vpack.c.bf16 %v2178_v39, %v2177_v24  ;;  %v2161_v40 = vld [vmem:[#allocation11 + $0x1c0] sm:$0xff]  ;;  %v2179_v5 = vld [vmem:[#allocation11 + $0x250] sm:$0xff]  ;;  %s6943_s22 = scalar_lea.hbm %s7182_s14, %s3441_s27  ;;  %s5137_s3 = sshll.u32 %s5282_s4, 4  ;;  %s5138_s3 = int_to_ptr.vmem [resolvable:$false] %s5137_s3 }
 0x300   : > { %4492 = vmatprep.subr.bf16.mxu0 %v4491_v0  ;;  %4588 = vmatprep.subr.bf16.mxu1 %v4587_v27  ;;  %v2162_v11 = vld [vmem:[#allocation11 + $0x1c8] sm:$0xff]  ;;  %v4595_v49 = vpack.c.bf16 %v2128_v15, %v2127_v30  ;;  %v2180_v12 = vld [vmem:[#allocation11 + $0x258] sm:$0xff]  ;;  %v2129_v51 = vld [vmem:[#allocation11 + $0x150] sm:$0xff]  ;;  %s5139_s23 = scalar_lea.vmem %s5138_s3, 4096  ;;  %p5140_p0 = scmp.lt.s32.totalorder %s6945_s17, %s5138_s3 }
 0x301   : > { %v2130_v53 = vld [vmem:[#allocation11 + $0x158] sm:$0xff]  ;;  %v4501_v13 = vpack.c.bf16 %v2162_v11, %v2161_v40  ;;  %v6363_v33 = vld [vmem:[#allocation2 + $0x18] sm:$0xff]  ;;  %v6365_v16 = vld [vmem:[#allocation2 + $0x20] sm:$0xff]  ;;  %v4503_v31 = vpack.c.bf16 %v2180_v12, %v2179_v5  ;;  %p5141_p3 = scmp.lt.s32.totalorder %s5139_s23, %s5133_s12 }
 0x302   : > { %v6367_v52 = vld [vmem:[#allocation2] sm:$0xff]  ;;  %v2164_v47 = vld [vmem:[#allocation11 + $0x1d8] sm:$0xff]  ;;  %v1980_v34 = vrot.slane %v6363_v33, 1  ;;  %v1981_v48 = vrot.slane %v6365_v16, 1  ;;  %v4599_v28 = vpack.c.bf16 %v2130_v53, %v2129_v51  ;;  %v2181_v8 = vld [vmem:[#allocation11 + $0x260] sm:$0xff] }
 0x303   : > { %4494 = vmatpush3.bf16.msra.mxu0 %v4493_v10  ;;  %4590 = vmatpush3.bf16.msra.mxu1 %v4587_v27  ;;  %v2163_v14 = vld [vmem:[#allocation11 + $0x1d0] sm:$0xff]  ;;  %v2031_v17 = vrot.slane %v6367_v52, 2  ;;  %v2182_v54 = vld [vmem:[#allocation11 + $0x268] sm:$0xff]  ;;  %v2131_v9 = vld [vmem:[#allocation11 + $0x160] sm:$0xff]  ;;  %p5142_p2 = por %p5141_p3, %p5140_p0 }
 0x304   : > { %4496 = vmatprep.subr.bf16.mxu0 %v4495_v44  ;;  %4592 = vmatprep.subr.bf16.mxu1 %v4591_v45  ;;  %v6371_v35 = vld [vmem:[#allocation2 + $0x8] sm:$0xff]  ;;  %v2132_v22 = vld [vmem:[#allocation11 + $0x168] sm:$0xff]  ;;  %v6378_v55 = vsel %vm460_vm1, %v1980_v34, %v1981_v48  ;;  %v4505_v50 = vpack.c.bf16 %v2164_v47, %v2163_v14  ;;  %v4507_v63 = vpack.c.bf16 %v2182_v54, %v2181_v8  ;;  %v2165_v0 = vld [vmem:[#allocation11 + $0x1e0] sm:$0xff] }
 0x305   : > { %v2032_v58 = vrot.slane %v6371_v35, 2  ;;  %2265 = vmatprep.mubr.f32.mxu0 %v6378_v55  ;;  %v2166_v38 = vld [vmem:[#allocation11 + $0x1e8] sm:$0xff]  ;;  %v4603_v46 = vpack.c.bf16 %v2132_v22, %v2131_v9  ;;  %v2183_v23 = vld [vmem:[#allocation11 + $0x270] sm:$0xff]  ;;  %v2184_v27 = vld [vmem:[#allocation11 + $0x278] sm:$0xff]  ;;  %p5143_p9 = pnand %p5142_p2, %p5136_p12 }
 0x306   : > { %v2133_v37 = vld [vmem:[#allocation11 + $0x170] sm:$0xff]  ;;  %v2134_v2 = vld [vmem:[#allocation11 + $0x178] sm:$0xff]  ;;  %v4509_v57 = vpack.c.bf16 %v2166_v38, %v2165_v0  ;;  %v4511_v32 = vpack.c.bf16 %v2184_v27, %v2183_v23  ;;  %v2185_v41 = vld [vmem:[#allocation11 + $0x280] sm:$0xff] }
 0x307   : > { %4498 = vmatpush3.bf16.msra.mxu0 %v4497_v6  ;;  %4594 = vmatpush3.bf16.msra.mxu1 %v4591_v45  ;;  %v2033_v43 = vsel %vm531_vm0, %v2031_v17, %v2032_v58  ;;  %v2167_v10 = vld [vmem:[#allocation11 + $0x1f0] sm:$0xff]  ;;  %v2168_v44 = vld [vmem:[#allocation11 + $0x1f8] sm:$0xff]  ;;  %v4607_v20 = vpack.c.bf16 %v2134_v2, %v2133_v37  ;;  %v2186_v45 = vld [vmem:[#allocation11 + $0x288] sm:$0xff] }
 0x308   : > { %4500 = vmatprep.subr.bf16.mxu0 %v4499_v21  ;;  %4596 = vmatprep.subr.bf16.mxu1 %v4595_v49  ;;  %v6382_v24 = vld [vmem:[#allocation2 + $0x10] sm:$0x3]  ;;  %v2815_v39 = vld [vmem:[#allocation11 + $0x380] sm:$0xff]  ;;  %v2816_v30 = vld [vmem:[#allocation11 + $0x388] sm:$0xff]  ;;  %v4513_v6 = vpack.c.bf16 %v2168_v44, %v2167_v10  ;;  %v4515_v21 = vpack.c.bf16 %v2186_v45, %v2185_v41 }
 0x309   : > { %4163 = vmatprep.mubr.f32.mxu1 %v2033_v43  ;;  %v1926_v15 = vld [vmem:[#allocation2 + $0x28] sm:$0x3]  ;;  %v2034_v40 = vrot.slane %v6382_v24, 2  ;;  %v2799_v11 = vld [vmem:[#allocation11 + $0x300] sm:$0xff]  ;;  %v4611_v5 = vpack.c.bf16 %v2816_v30, %v2815_v39  ;;  %v2818_v47 = vld [vmem:[#allocation11 + $0x398] sm:$0xff] }
 0x30a   : > { %v1983_v12 = vrot.slane %v1926_v15, 1  ;;  %v6385_v51 = vld [vmem:[#allocation2 + $0x30] sm:$0xff]  ;;  %v6387_v53 = vld [vmem:[#allocation2 + $0x38] sm:$0xff]  ;;  %v2817_v14 = vld [vmem:[#allocation11 + $0x390] sm:$0xff]  ;;  %v2039_v54 = vrot.slane %v1926_v15, 2 }
 0x30b   : > { %4502 = vmatpush3.bf16.msra.mxu0 %v4501_v13  ;;  %4598 = vmatpush3.bf16.msra.mxu1 %v4595_v49  ;;  %v2800_v49 = vld [vmem:[#allocation11 + $0x308] sm:$0xff]  ;;  %v2036_v13 = vrot.slane %v6363_v33, 2  ;;  %v2187_v17 = vld [vmem:[#allocation11 + $0x290] sm:$0xff]  ;;  %v2035_v8 = vsel %vm531_vm0, %v2032_v58, %v2034_v40  ;;  %v1985_v9 = vrot.slane %v6385_v51, 1  ;;  %v1986_v22 = vrot.slane %v6387_v53, 1  ;;  %v2802_v38 = vld [vmem:[#allocation11 + $0x318] sm:$0xff] }
 0x30c   : > { %4504 = vmatprep.subr.bf16.mxu0 %v4503_v31  ;;  %4600 = vmatprep.subr.bf16.mxu1 %v4599_v28  ;;  %v2037_v31 = vrot.slane %v6365_v16, 2  ;;  %v4613_v34 = vpack.c.bf16 %v2800_v49, %v2799_v11  ;;  %v6397_v43 = vsel %vm460_vm1, %v1981_v48, %v1983_v12  ;;  %v2801_v0 = vld [vmem:[#allocation11 + $0x310] sm:$0xff]  ;;  %v2042_v23 = vrot.slane %v6387_v53, 2  ;;  %v2819_v58 = vld [vmem:[#allocation11 + $0x3a0] sm:$0xff]  ;;  %v2820_v2 = vld [vmem:[#allocation11 + $0x3a8] sm:$0xff] }
 0x30d   : > { %v2189_v10 = vld [vmem:[#allocation11 + $0x2a0] sm:$0xff]  ;;  %v2190_v44 = vld [vmem:[#allocation11 + $0x2a8] sm:$0xff]  ;;  %v4617_v41 = vpack.c.bf16 %v2802_v38, %v2801_v0  ;;  %v6414_v45 = vsel %vm460_vm1, %v1985_v9, %v1986_v22  ;;  %v2822_v12 = vld [vmem:[#allocation11 + $0x3b8] sm:$0xff] }
 0x30e   : > { %v6403_v27 = vsel %vm531_vm0, %v2036_v13, %v2037_v31  ;;  %v2803_v39 = vld [vmem:[#allocation11 + $0x320] sm:$0xff]  ;;  %v2804_v30 = vld [vmem:[#allocation11 + $0x328] sm:$0xff]  ;;  %v2809_v29 = vld [vmem:[#allocation11 + $0x350] sm:$0xff] }
 0x30f   : > { %4506 = vmatpush3.bf16.msra.mxu0 %v4505_v50  ;;  %4602 = vmatpush3.bf16.msra.mxu1 %v4599_v28  ;;  %v2188_v28 = vld [vmem:[#allocation11 + $0x298] sm:$0xff]  ;;  %v1929_v50 = vld [vmem:[#allocation2 + $0x40] sm:$0x3]  ;;  %v6422_v49 = vld [vmem:[#allocation2 + $0x58] sm:$0x3] }
 0x310   : > { %4508 = vmatprep.subr.bf16.mxu0 %v4507_v63  ;;  %4604 = vmatprep.subr.bf16.mxu1 %v4603_v46  ;;  %v4615_v63 = vpack.c.bf16 %v2818_v47, %v2817_v14  ;;  %v4519_v37 = vpack.c.bf16 %v2188_v28, %v2187_v17  ;;  %v2044_v48 = vrot.slane %v1929_v50, 2  ;;  %v1988_v15 = vrot.slane %v1929_v50, 1  ;;  %v6425_v13 = vld [vmem:[#allocation2 + $0x60] sm:$0xff]  ;;  %v2192_v28 = vld [vmem:[#allocation11 + $0x2b8] sm:$0xff]  ;;  %v2811_v62 = vld [vmem:[#allocation11 + $0x360] sm:$0xff] }
 0x311   : > { %v4523_v14 = vpack.c.bf16 %v2190_v44, %v2189_v10  ;;  %v2191_v17 = vld [vmem:[#allocation11 + $0x2b0] sm:$0xff]  ;;  %v6449_v10 = vld [vmem:[#allocation2 + $0x78] sm:$0xff]  ;;  %v6498_v42 = vld [vmem:[#allocation2 + $0xb0] sm:$0xff] }
 0x312   : > { %v6432_v47 = vsel %vm531_vm0, %v2042_v23, %v2044_v48  ;;  %v2824_v48 = vld [vmem:[#allocation11 + $0x3c8] sm:$0xff]  ;;  %v6496_v36 = vld [vmem:[#allocation2 + $0xa8] sm:$0xff]  ;;  %7157 = vst [vmem:[#allocation27_spill] sm:$0xff] %v6498_v42  ;;  %v2067_v26 = vrot.slane %v6498_v42, 2  ;;  %v2115_v1 = vld [vmem:[#allocation11 + $0xe0] sm:$0xff] }
 0x313   : > { %4510 = vmatpush3.bf16.msra.mxu0 %v4509_v57  ;;  %4606 = vmatpush3.bf16.msra.mxu1 %v4603_v46  ;;  %v2041_v46 = vrot.slane %v6385_v51, 2  ;;  %v6405_v57 = vld [vmem:[#allocation2 + $0x48] sm:$0xff]  ;;  %v6451_v44 = vld [vmem:[#allocation2 + $0x80] sm:$0xff]  ;;  %7156 = vst [vmem:[#allocation26_spill] sm:$0xff] %v6496_v36 }
 0x314   : > { %4512 = vmatprep.subr.bf16.mxu0 %v4511_v32  ;;  %4608 = vmatprep.subr.bf16.mxu1 %v4607_v20  ;;  %v6407_v32 = vld [vmem:[#allocation2 + $0x50] sm:$0xff]  ;;  %v2046_v40 = vrot.slane %v6405_v57, 2  ;;  %v1990_v9 = vrot.slane %v6405_v57, 1  ;;  %v2057_v60 = vrot.slane %v6451_v44, 2  ;;  %v2813_v4 = vld [vmem:[#allocation11 + $0x370] sm:$0xff]  ;;  %v2116_v61 = vld [vmem:[#allocation11 + $0xe8] sm:$0xff] }
 0x315   : > { %v2047_v11 = vrot.slane %v6407_v32, 2  ;;  %v1991_v50 = vrot.slane %v6407_v32, 1  ;;  %v2814_v18 = vld [vmem:[#allocation11 + $0x378] sm:$0xff] }
 0x317   : > { %4514 = vmatpush3.bf16.msra.mxu0 %v4513_v6  ;;  %4610 = vmatpush3.bf16.msra.mxu1 %v4607_v20  ;;  %v6411_v20 = vsel %vm531_vm0, %v2037_v31, %v2039_v54  ;;  %v6418_v6 = vsel %vm531_vm0, %v2041_v46, %v2042_v23  ;;  %v6427_v31 = vld [vmem:[#allocation2 + $0x68] sm:$0xff]  ;;  %v2049_v54 = vrot.slane %v6422_v49, 2  ;;  %v6444_v0 = vsel %vm531_vm0, %v2046_v40, %v2047_v11 }
 0x318   : > { %4516 = vmatprep.subr.bf16.mxu0 %v4515_v21  ;;  %4612 = vmatprep.subr.bf16.mxu1 %v4611_v5  ;;  %v2821_v5 = vld [vmem:[#allocation11 + $0x3b0] sm:$0xff]  ;;  %v2806_v23 = vld [vmem:[#allocation11 + $0x338] sm:$0xff]  ;;  %v6461_v40 = vsel %vm460_vm1, %v1990_v9, %v1991_v50  ;;  %v1996_v25 = vrot.slane %v6427_v31, 1 }
 0x319   : > { %v4623_v38 = vpack.c.bf16 %v2822_v12, %v2821_v5  ;;  %v2805_v46 = vld [vmem:[#allocation11 + $0x330] sm:$0xff]  ;;  %v2807_v5 = vld [vmem:[#allocation11 + $0x340] sm:$0xff]  ;;  %v2808_v12 = vld [vmem:[#allocation11 + $0x348] sm:$0xff] }
 0x31a   : > { %2266 = vmatmul.mubr.f32.vlgmr.msra.gmra.mrb[80].mxu0 %v6363_v33  ;;  %4164 = vmatmul.mubr.f32.vlgmr.msra.gmra.mrb[100].mxu1 %v2035_v8  ;;  %v6436_v8 = vsel %vm460_vm1, %v1986_v22, %v1988_v15  ;;  %v2052_v22 = vrot.slane %v6427_v31, 2  ;;  %v6458_v15 = vsel %vm531_vm0, %v2047_v11, %v2049_v54  ;;  %v6469_v11 = vld [vmem:[#allocation2 + $0x88] sm:$0x3]  ;;  %v2826_v9 = vld [vmem:[#allocation11 + $0x3d8] sm:$0xff] }
 0x31b   : > { %4518 = vmatpush3.bf16.msra.mxu0 %v4515_v21  ;;  %4614 = vmatpush3.bf16.msra.mxu1 %v4613_v34  ;;  %v4619_v21 = vpack.c.bf16 %v2820_v2, %v2819_v58  ;;  %v4621_v34 = vpack.c.bf16 %v2804_v30, %v2803_v39  ;;  %v2051_v58 = vrot.slane %v6425_v13, 2  ;;  %v2823_v2 = vld [vmem:[#allocation11 + $0x3c0] sm:$0xff]  ;;  %v2194_v30 = vld [vmem:[#allocation11 + $0x2c8] sm:$0xff]  ;;  %v2825_v54 = vld [vmem:[#allocation11 + $0x3d0] sm:$0xff]  ;;  %v2059_v59 = vrot.slane %v6469_v11, 2 }
 0x31c   : > { %2270 = vmatprep.mubr.f32.mxu0 %v6397_v43  ;;  %4166 = vmatprep.mubr.f32.mxu1 %v6403_v27  ;;  %v2193_v39 = vld [vmem:[#allocation11 + $0x2c0] sm:$0xff]  ;;  %v4627_v7 = vpack.c.bf16 %v2824_v48, %v2823_v2  ;;  %v2196_v2 = vld [vmem:[#allocation11 + $0x2d8] sm:$0xff] }
 0x31d   : > { %4616 = vmatprep.subr.bf16.mxu1 %v4615_v63  ;;  %4520 = vmatprep.subr.bf16.mxu0 %v4519_v37  ;;  %v6441_v63 = vld [vmem:[#allocation2 + $0x70] sm:$0x3] }
 0x31e   : > { %2271 = vmatmul.mubr.f32.gmra.mrb[82].mxu0 %v6365_v16  ;;  %4167 = vmatmul.mubr.f32.gmra.mrb[102].mxu1 %v6411_v20 }
 0x31f   : > { %2275 = vmatprep.mubr.f32.mxu0 %v6414_v45  ;;  %4618 = vmatpush3.bf16.msra.mxu1 %v4617_v41  ;;  %v2054_v41 = vrot.slane %v6441_v63, 2 }
 0x320   : > { %4169 = vmatprep.mubr.f32.mxu1 %v6418_v6  ;;  %4620 = vmatprep.subr.bf16.mxu1 %v4619_v21  ;;  %v4625_v21 = vpack.c.bf16 %v2806_v23, %v2805_v46  ;;  %v6472_v46 = vld [vmem:[#allocation2 + $0x90] sm:$0xff]  ;;  %v6474_v23 = vld [vmem:[#allocation2 + $0x98] sm:$0xff] }
 0x321   : > { %4522 = vmatpush3.bf16.msra.mxu0 %v4519_v37  ;;  %v4527_v37 = vpack.c.bf16 %v2192_v28, %v2191_v17  ;;  %v1993_v17 = vrot.slane %v6422_v49, 1  ;;  %v6465_v28 = vsel %vm531_vm0, %v2051_v58, %v2052_v22  ;;  %v4531_v49 = vpack.c.bf16 %v2194_v30, %v2193_v39  ;;  %v2195_v58 = vld [vmem:[#allocation11 + $0x2d0] sm:$0xff]  ;;  %v2810_v39 = vld [vmem:[#allocation11 + $0x358] sm:$0xff] }
 0x322   : > { %2276 = vmatmul.mubr.f32.gmra.mrb[84].mxu0 %v6385_v51  ;;  %4524 = vmatprep.subr.bf16.mxu0 %v4523_v14  ;;  %v1995_v30 = vrot.slane %v6425_v13, 1 }
 0x323   : > { %4170 = vmatmul.mubr.f32.gmra.mrb[104].mxu1 %v6432_v47  ;;  %2280 = vmatprep.mubr.f32.mxu0 %v6436_v8  ;;  %v6483_v48 = vsel %vm460_vm1, %v1991_v50, %v1993_v17  ;;  %v2827_v50 = vld [vmem:[#allocation11 + $0x3e0] sm:$0xff]  ;;  %v2828_v17 = vld [vmem:[#allocation11 + $0x3e8] sm:$0xff] }
 0x324   : > { %4622 = vmatpush3.bf16.msra.mxu1 %v4621_v34  ;;  %4172 = vmatprep.mubr.f32.mxu1 %v6444_v0  ;;  %v2056_v34 = vrot.slane %v6449_v10, 2  ;;  %v6507_v19 = vsel %vm460_vm1, %v1995_v30, %v1996_v25  ;;  %v2830_v30 = vld [vmem:[#allocation11 + $0x3f8] sm:$0xff] }
 0x325   : > { %4624 = vmatprep.subr.bf16.mxu1 %v4623_v38  ;;  %4526 = vmatpush3.bf16.msra.mxu0 %v4523_v14  ;;  %v6479_v14 = vsel %vm531_vm0, %v2052_v22, %v2054_v41  ;;  %v4629_v38 = vpack.c.bf16 %v2808_v12, %v2807_v5  ;;  %v4631_v41 = vpack.c.bf16 %v2826_v9, %v2825_v54  ;;  %v2062_v5 = vrot.slane %v6474_v23, 2  ;;  %v6493_v12 = vld [vmem:[#allocation2 + $0xa0] sm:$0x3]  ;;  %v2197_v54 = vld [vmem:[#allocation11 + $0x2e0] sm:$0xff] }
 0x326   : > { %2281 = vmatmul.mubr.f32.gmra.mrb[86].mxu0 %v6387_v53  ;;  %4528 = vmatprep.subr.bf16.mxu0 %v4527_v37  ;;  %v6489_v22 = vsel %vm531_vm0, %v2056_v34, %v2057_v60  ;;  %v4633_v34 = vpack.c.bf16 %v2810_v39, %v2809_v29  ;;  %v2198_v9 = vld [vmem:[#allocation11 + $0x2e8] sm:$0xff]  ;;  %v2064_v56 = vrot.slane %v6493_v12, 2  ;;  %v4635_v39 = vpack.c.bf16 %v2828_v17, %v2827_v50  ;;  %v2200_v50 = vld [vmem:[#allocation11 + $0x2f8] sm:$0xff] }
 0x327   : > { %4173 = vmatmul.mubr.f32.gmra.mrb[106].mxu1 %v6458_v15  ;;  %2285 = vmatprep.mubr.f32.mxu0 %v6461_v40  ;;  %v4539_v3 = vpack.c.bf16 %v2198_v9, %v2197_v54  ;;  %v2001_v9 = vrot.slane %v6451_v44, 1 }
 0x328   : > { %4626 = vmatpush3.bf16.msra.mxu1 %v4625_v21  ;;  %4175 = vmatprep.mubr.f32.mxu1 %v6465_v28  ;;  %v2061_v21 = vrot.slane %v6472_v46, 2 }
 0x329   : > { %4628 = vmatprep.subr.bf16.mxu1 %v4627_v7  ;;  %4530 = vmatpush3.bf16.msra.mxu0 %v4527_v37  ;;  %v4535_v7 = vpack.c.bf16 %v2196_v2, %v2195_v58  ;;  %v6504_v37 = vsel %vm531_vm0, %v2057_v60, %v2059_v59  ;;  %v2812_v58 = vld [vmem:[#allocation11 + $0x368] sm:$0xff]  ;;  %v1998_v2 = vrot.slane %v6441_v63, 1  ;;  %v6516_v59 = vld [vmem:[#allocation2 + $0xb8] sm:$0x3]  ;;  %v2829_v60 = vld [vmem:[#allocation11 + $0x3f0] sm:$0xff] }
 0x32a   : > { %2286 = vmatmul.mubr.f32.gmra.mrb[88].mxu0 %v6405_v57  ;;  %4532 = vmatprep.subr.bf16.mxu0 %v4531_v49  ;;  %v6512_v29 = vsel %vm531_vm0, %v2061_v21, %v2062_v5  ;;  %v4637_v63 = vpack.c.bf16 %v2812_v58, %v2811_v62  ;;  %v2199_v21 = vld [vmem:[#allocation11 + $0x2f0] sm:$0xff]  ;;  %v2069_v54 = vrot.slane %v6516_v59, 2  ;;  %v4639_v58 = vpack.c.bf16 %v2830_v30, %v2829_v60 }
 0x32b   : > { %4176 = vmatmul.mubr.f32.gmra.mrb[108].mxu1 %v6479_v14  ;;  %2290 = vmatprep.mubr.f32.mxu0 %v6483_v48  ;;  %v6527_v17 = vsel %vm460_vm1, %v1996_v25, %v1998_v2  ;;  %v2103_v25 = vld [vmem:[#allocation11 + $0x80] sm:$0xff]  ;;  %v2104_v2 = vld [vmem:[#allocation11 + $0x88] sm:$0xff]  ;;  %v2003_v60 = vrot.slane %v6469_v11, 1 }
 0x32c   : > { %4630 = vmatpush3.bf16.msra.mxu1 %v4629_v38  ;;  %4178 = vmatprep.mubr.f32.mxu1 %v6489_v22  ;;  %v2066_v38 = vrot.slane %v6496_v36, 2  ;;  %v2835_v11 = vld [vmem:[#allocation11 + $0x420] sm:$0xff] }
 0x32d   : > { %4632 = vmatprep.subr.bf16.mxu1 %v4631_v41  ;;  %4534 = vmatpush3.bf16.msra.mxu0 %v4531_v49  ;;  %v2000_v41 = vrot.slane %v6449_v10, 1  ;;  %v6524_v49 = vsel %vm531_vm0, %v2062_v5, %v2064_v56  ;;  %v4543_v56 = vpack.c.bf16 %v2200_v50, %v2199_v21  ;;  %v2831_v5 = vld [vmem:[#allocation11 + $0x400] sm:$0xff]  ;;  %v4547_v21 = vpack.c.bf16 %v2104_v2, %v2103_v25  ;;  %v2833_v50 = vld [vmem:[#allocation11 + $0x410] sm:$0xff] }
 0x32e   : > { %2291 = vmatmul.mubr.f32.gmra.mrb[90].mxu0 %v6407_v32  ;;  %4536 = vmatprep.subr.bf16.mxu0 %v4535_v7  ;;  %v6532_v62 = vsel %vm531_vm0, %v2066_v38, %v2067_v26  ;;  %v4641_v38 = vpack.c.bf16 %v2814_v18, %v2813_v4  ;;  %v6550_v18 = vsel %vm460_vm1, %v2001_v9, %v2003_v60  ;;  %v2005_v4 = vrot.slane %v6472_v46, 1  ;;  %v2840_v60 = vld [vmem:[#allocation11 + $0x448] sm:$0xff] }
 0x32f   : > { %4179 = vmatmul.mubr.f32.gmra.mrb[110].mxu1 %v6504_v37  ;;  %2295 = vmatprep.mubr.f32.mxu0 %v6507_v19  ;;  %v2010_v25 = vrot.slane %v6496_v36, 1 }
 0x330   : > { %4634 = vmatpush3.bf16.msra.mxu1 %v4633_v34  ;;  %4181 = vmatprep.mubr.f32.mxu1 %v6512_v29  ;;  %v2832_v34 = vld [vmem:[#allocation11 + $0x408] sm:$0xff] }
 0x331   : > { %4636 = vmatprep.subr.bf16.mxu1 %v4635_v39  ;;  %4538 = vmatpush3.bf16.msra.mxu0 %v4535_v7  ;;  %v6539_v39 = vsel %vm531_vm0, %v2067_v26, %v2069_v54  ;;  %v6542_v7 = vsel %vm460_vm1, %v2000_v41, %v2001_v9  ;;  %v4643_v30 = vpack.c.bf16 %v2832_v34, %v2831_v5  ;;  %v2836_v41 = vld [vmem:[#allocation11 + $0x428] sm:$0xff]  ;;  %v2008_v9 = vrot.slane %v6493_v12, 1  ;;  %v2838_v5 = vld [vmem:[#allocation11 + $0x438] sm:$0xff] }
 0x332   : > { %2296 = vmatmul.mubr.f32.gmra.mrb[92].mxu0 %v6425_v13  ;;  %4540 = vmatprep.subr.bf16.mxu0 %v4539_v3  ;;  %v2011_v12 = vrot.slane %v6498_v42, 1 }
 0x333   : > { %4182 = vmatmul.mubr.f32.gmra.mrb[112].mxu1 %v6524_v49  ;;  %2300 = vmatprep.mubr.f32.mxu0 %v6527_v17 }
 0x334   : > { %4638 = vmatpush3.bf16.msra.mxu1 %v4637_v63  ;;  %4184 = vmatprep.mubr.f32.mxu1 %v6532_v62  ;;  %v2834_v63 = vld [vmem:[#allocation11 + $0x418] sm:$0xff] }
 0x335   : > { %4640 = vmatprep.subr.bf16.mxu1 %v4639_v58  ;;  %4542 = vmatpush3.bf16.msra.mxu0 %v4539_v3  ;;  %v2006_v3 = vrot.slane %v6474_v23, 1  ;;  %v4647_v26 = vpack.c.bf16 %v2834_v63, %v2833_v50  ;;  %v4651_v58 = vpack.c.bf16 %v2836_v41, %v2835_v11  ;;  %v6579_v50 = vld [vmem:[#allocation2 + $0xc0] sm:$0xff]  ;;  %v6581_v63 = vld [vmem:[#allocation2 + $0xc8] sm:$0xff] }
 0x336   : > { %2301 = vmatmul.mubr.f32.gmra.mrb[94].mxu0 %v6427_v31  ;;  %4544 = vmatprep.subr.bf16.mxu0 %v4543_v56  ;;  %v2139_v41 = vrot.slane %v6581_v63, 1 }
 0x337   : > { %4185 = vmatmul.mubr.f32.gmra.mrb[114].mxu1 %v6539_v39  ;;  %2305 = vmatprep.mubr.f32.mxu0 %v6542_v7  ;;  %v6559_v54 = vsel %vm460_vm1, %v2005_v4, %v2006_v3  ;;  %v6567_v34 = vsel %vm460_vm1, %v2006_v3, %v2008_v9  ;;  %v2841_v3 = vld [vmem:[#allocation11 + $0x450] sm:$0xff]  ;;  %v6592_v9 = vld [vmem:[#allocation2 + $0xd0] sm:$0x3] }
 0x338   : > { %4642 = vmatpush3.bf16.msra.mxu1 %v4641_v38  ;;  %2911 = vmatprep.mubr.f32.mxu1 %v6414_v45  ;;  %v2839_v38 = vld [vmem:[#allocation11 + $0x440] sm:$0xff] }
 0x339   : > { %4546 = vmatpush3.bf16.msra.mxu0 %v4543_v56  ;;  %4644 = vmatprep.subr.bf16.mxu1 %v4643_v30  ;;  %v2837_v56 = vld [vmem:[#allocation11 + $0x430] sm:$0xff]  ;;  %v4659_v4 = vpack.c.bf16 %v2840_v60, %v2839_v38  ;;  %v2846_v60 = vld [vmem:[#allocation11 + $0x478] sm:$0xff] }
 0x33a   : > { %2306 = vmatmul.mubr.f32.gmra.mrb[96].mxu0 %v6449_v10  ;;  %4548 = vmatprep.subr.bf16.mxu0 %v4547_v21  ;;  %v4655_v2 = vpack.c.bf16 %v2838_v5, %v2837_v56  ;;  %v2013_v21 = vrot.slane %v6516_v59, 1  ;;  %v2138_v59 = vrot.slane %v6579_v50, 1  ;;  %v2843_v56 = vld [vmem:[#allocation11 + $0x460] sm:$0xff]  ;;  %v2844_v5 = vld [vmem:[#allocation11 + $0x468] sm:$0xff]  ;;  %v2845_v38 = vld [vmem:[#allocation11 + $0x470] sm:$0xff] }
 0x33b   : > { %2912 = vmatmul.mubr.f32.vlgmr.msra.gmra.mrb[116].mxu1 %v6385_v51  ;;  %2310 = vmatprep.mubr.f32.mxu0 %v6550_v18 }
 0x33c   : > { %2916 = vmatprep.mubr.f32.mxu1 %v6436_v8  ;;  %4646 = vmatpush3.bf16.msra.mxu1 %v4643_v30  ;;  %v6576_v30 = vsel %vm460_vm1, %v2010_v25, %v2011_v12  ;;  %v6588_v11 = vsel %vm460_vm1, %v2011_v12, %v2013_v21  ;;  %v6599_v25 = vsel %vm460_vm1, %v2138_v59, %v2139_v41  ;;  %v2141_v12 = vrot.slane %v6592_v9, 1  ;;  %v2105_v59 = vld [vmem:[#allocation11 + $0x90] sm:$0xff] }
 0x33d   : > { %4648 = vmatprep.subr.bf16.mxu1 %v4647_v26  ;;  %7158 = vst [vmem:[#allocation28_spill] sm:$0xff] %v6576_v30  ;;  %7159 = vst [vmem:[#allocation29_spill] sm:$0xff] %v6588_v11 }
 0x33e   : > { %2311 = vmatmul.mubr.f32.gmra.mrb[98].mxu0 %v6451_v44  ;;  %v6607_v21 = vsel %vm460_vm1, %v2139_v41, %v2141_v12  ;;  %v2106_v41 = vld [vmem:[#allocation11 + $0x98] sm:$0xff] }
 0x33f   : > { %2917 = vmatmul.mubr.f32.gmra.mrb[118].mxu1 %v6387_v53  ;;  %2315 = vmatprep.mubr.f32.mxu0 %v6559_v54  ;;  %v4551_v12 = vpack.c.bf16 %v2106_v41, %v2105_v59  ;;  %v2110_v59 = vld [vmem:[#allocation11 + $0xb8] sm:$0xff]  ;;  %v2093_v41 = vld [vmem:[#allocation11 + $0x30] sm:$0xff] }
 0x340   : > { %2921 = vmatprep.mubr.f32.mxu1 %v6461_v40  ;;  %4650 = vmatpush3.bf16.msra.mxu1 %v4647_v26  ;;  %v2842_v26 = vld [vmem:[#allocation11 + $0x458] sm:$0xff] }
 0x341   : > { %4652 = vmatprep.subr.bf16.mxu1 %v4651_v58 }
 0x342   : > { %2316 = vmatmul.mubr.f32.gmra.mrb[100].mxu0 %v6472_v46 }
 0x343   : > { %2922 = vmatmul.mubr.f32.gmra.mrb[120].mxu1 %v6405_v57  ;;  %2320 = vmatprep.mubr.f32.mxu0 %v6567_v34 }
 0x344   : > { %2926 = vmatprep.mubr.f32.mxu1 %v6483_v48  ;;  %4654 = vmatpush3.bf16.msra.mxu1 %v4651_v58  ;;  %v4663_v58 = vpack.c.bf16 %v2842_v26, %v2841_v3  ;;  %v4671_v3 = vpack.c.bf16 %v2846_v60, %v2845_v38  ;;  %v2088_v26 = vld [vmem:[#allocation11 + $0x8] sm:$0xff]  ;;  %v2107_v38 = vld [vmem:[#allocation11 + $0xa0] sm:$0xff] }
 0x345   : > { %4656 = vmatprep.subr.bf16.mxu1 %v4655_v2 }
 0x346   : > { %2321 = vmatmul.mubr.f32.gmra.mrb[102].mxu0 %v6474_v23 }
 0x347   : > { %2927 = vmatmul.mubr.f32.gmra.mrb[122].mxu1 %v6407_v32  ;;  %2325 = vmatprep.mubr.f32.mxu0 %v6576_v30 }
 0x348   : > { %2931 = vmatprep.mubr.f32.mxu1 %v6507_v19  ;;  %4658 = vmatpush3.bf16.msra.mxu1 %v4655_v2  ;;  %v4667_v2 = vpack.c.bf16 %v2844_v5, %v2843_v56  ;;  %v2089_v56 = vld [vmem:[#allocation11 + $0x10] sm:$0xff]  ;;  %v2090_v5 = vld [vmem:[#allocation11 + $0x18] sm:$0xff] }
 0x349   : > { %4660 = vmatprep.subr.bf16.mxu1 %v4659_v4  ;;  %v4553_v60 = vpack.c.bf16 %v2090_v5, %v2089_v56  ;;  %v2111_v5 = vld [vmem:[#allocation11 + $0xc0] sm:$0xff] }
 0x34a   : > { %2326 = vmatmul.mubr.f32.gmra.mrb[104].mxu0 %v6496_v36 }
 0x34b   : > { %2932 = vmatmul.mubr.f32.gmra.mrb[124].mxu1 %v6425_v13  ;;  %2330 = vmatprep.mubr.f32.mxu0 %v6588_v11 }
 0x34c   : > { %2936 = vmatprep.mubr.f32.mxu1 %v6527_v17  ;;  %4662 = vmatpush3.bf16.msra.mxu1 %v4659_v4  ;;  %v2087_v4 = vld [vmem:[#allocation11] sm:$0xff] }
 0x34d   : > { %4664 = vmatprep.subr.bf16.mxu1 %v4663_v58 }
 0x34e   : > { %2331 = vmatmul.mubr.f32.gmra.mrb[106].mxu0 %v6498_v42 }
 0x34f   : > { %2937 = vmatmul.mubr.f32.gmra.mrb[126].mxu1 %v6427_v31  ;;  %2335 = vmatprep.mubr.f32.mxu0 %v6599_v25 }
 0x350   : > { %2941 = vmatprep.mubr.f32.mxu1 %v6542_v7  ;;  %4666 = vmatpush3.bf16.msra.mxu1 %v4663_v58  ;;  %v4549_v58 = vpack.c.bf16 %v2088_v26, %v2087_v4  ;;  %v2092_v4 = vld [vmem:[#allocation11 + $0x28] sm:$0xff] }
 0x351   : > { %4668 = vmatprep.subr.bf16.mxu1 %v4667_v2 }
 0x352   : > { %2336 = vmatmul.mubr.f32.gmra.mrb[108].mxu0 %v6579_v50 }
 0x353   : > { %2942 = vmatmul.mubr.f32.gmra.mrb[128].mxu1 %v6449_v10  ;;  %2340 = vmatprep.mubr.f32.mxu0 %v6607_v21 }
 0x354   : > { %2946 = vmatprep.mubr.f32.mxu1 %v6550_v18  ;;  %4670 = vmatpush3.bf16.msra.mxu1 %v4667_v2  ;;  %v2108_v2 = vld [vmem:[#allocation11 + $0xa8] sm:$0xff] }
 0x355   : > { %4672 = vmatprep.subr.bf16.mxu1 %v4671_v3  ;;  %v4555_v26 = vpack.c.bf16 %v2108_v2, %v2107_v38  ;;  %v2095_v2 = vld [vmem:[#allocation11 + $0x40] sm:$0xff] }
 0x356   : > { %2341 = vmatmul.mubr.f32.gmra.mrb[110].mxu0 %v6581_v63 }
 0x357   : > { %2947 = vmatmul.mubr.f32.gmra.mrb[130].mxu1 %v6451_v44  ;;  %4107 = vmatprep.mubr.f32.mxu0 %v6403_v27  ;;  %v2091_v27 = vld [vmem:[#allocation11 + $0x20] sm:$0xff] }
 0x358   : > { %2951 = vmatprep.mubr.f32.mxu1 %v6559_v54  ;;  %4674 = vmatpush3.bf16.msra.mxu1 %v4671_v3  ;;  %v2109_v3 = vld [vmem:[#allocation11 + $0xb0] sm:$0xff] }
 0x359   : > { %v4559_v56 = vpack.c.bf16 %v2110_v59, %v2109_v3  ;;  %v6630_v3 = vld [vmem:[#allocation2 + $0xd8] sm:$0xff]  ;;  %v6632_v59 = vld [vmem:[#allocation2 + $0xe0] sm:$0xff] }
 0x35a   : > { %4108 = vmatmul.mubr.f32.vlgmr.msra.gmra.mrb[112].mxu0 %v6411_v20  ;;  %v4557_v20 = vpack.c.bf16 %v2092_v4, %v2091_v27  ;;  %v2113_v4 = vld [vmem:[#allocation11 + $0xd0] sm:$0xff] }
 0x35b   : > { %2952 = vmatmul.mubr.f32.gmra.mrb[132].mxu1 %v6472_v46  ;;  %4550 = vmatpush3.bf16.msra.mxu0 %v4549_v58  ;;  %v2094_v58 = vld [vmem:[#allocation11 + $0x38] sm:$0xff] }
 0x35c   : > { %4110 = vmatprep.mubr.f32.mxu0 %v6418_v6  ;;  %2956 = vmatprep.mubr.f32.mxu1 %v6567_v34  ;;  %v4561_v38 = vpack.c.bf16 %v2094_v58, %v2093_v41  ;;  %v2097_v41 = vld [vmem:[#allocation11 + $0x50] sm:$0xff]  ;;  %v2098_v58 = vld [vmem:[#allocation11 + $0x58] sm:$0xff] }
 0x35d   : > { %4552 = vmatprep.subr.bf16.mxu0 %v4551_v12  ;;  %v2112_v12 = vld [vmem:[#allocation11 + $0xc8] sm:$0xff] }
 0x35e   : > { %4111 = vmatmul.mubr.f32.gmra.mrb[114].mxu0 %v6432_v47  ;;  %v4563_v27 = vpack.c.bf16 %v2112_v12, %v2111_v5  ;;  %v2784_v5 = vrot.slane %v6630_v3, 1  ;;  %v2785_v12 = vrot.slane %v6632_v59, 1 }
 0x35f   : > { %2957 = vmatmul.mubr.f32.gmra.mrb[134].mxu1 %v6474_v23  ;;  %4554 = vmatpush3.bf16.msra.mxu0 %v4553_v60  ;;  %v2096_v60 = vld [vmem:[#allocation11 + $0x48] sm:$0xff] }
 0x360   : > { %4113 = vmatprep.mubr.f32.mxu0 %v6444_v0  ;;  %2961 = vmatprep.mubr.f32.mxu1 %v6576_v30  ;;  %v1976_v30 = vrot.slane %v6371_v35, 1 }
 0x361   : > { %4556 = vmatprep.subr.bf16.mxu0 %v4555_v26  ;;  %v2114_v26 = vld [vmem:[#allocation11 + $0xd8] sm:$0xff] }
 0x362   : > { %4114 = vmatmul.mubr.f32.gmra.mrb[116].mxu0 %v6458_v15 }
 0x363   : > { %2962 = vmatmul.mubr.f32.gmra.mrb[136].mxu1 %v6496_v36  ;;  %4558 = vmatpush3.bf16.msra.mxu0 %v4557_v20  ;;  %v4565_v20 = vpack.c.bf16 %v2096_v60, %v2095_v2  ;;  %v2100_v2 = vld [vmem:[#allocation11 + $0x68] sm:$0xff]  ;;  %v2145_v60 = vrot.slane %v6579_v50, 2 }
 0x364   : > { %4116 = vmatprep.mubr.f32.mxu0 %v6465_v28  ;;  %2966 = vmatprep.mubr.f32.mxu1 %v6588_v11  ;;  %v6640_v11 = vld [vmem:[#allocation2 + $0xe8] sm:$0x3] }
 0x365   : > { %4560 = vmatprep.subr.bf16.mxu0 %v4559_v56  ;;  %v4567_v56 = vpack.c.bf16 %v2114_v26, %v2113_v4  ;;  %v4571_v4 = vpack.c.bf16 %v2116_v61, %v2115_v1  ;;  %v2146_v26 = vrot.slane %v6581_v63, 2  ;;  %v1975_v61 = vrot.slane %v6367_v52, 1 }
 0x366   : > { %4117 = vmatmul.mubr.f32.gmra.mrb[118].mxu0 %v6479_v14 }
 0x367   : > { %2967 = vmatmul.mubr.f32.gmra.mrb[138].mxu1 %v6498_v42  ;;  %4562 = vmatpush3.bf16.msra.mxu0 %v4561_v38  ;;  %v4569_v38 = vpack.c.bf16 %v2098_v58, %v2097_v41  ;;  %v2787_v42 = vrot.slane %v6640_v11, 1  ;;  %v2118_v41 = vld [vmem:[#allocation11 + $0xf8] sm:$0xff]  ;;  %v2148_v58 = vrot.slane %v6592_v9, 2  ;;  %v2147_v1 = vsel %vm531_vm0, %v2145_v60, %v2146_v26 }
 0x368   : > { %4119 = vmatprep.mubr.f32.mxu0 %v6489_v22  ;;  %2971 = vmatprep.mubr.f32.mxu1 %v6599_v25  ;;  %v2099_v25 = vld [vmem:[#allocation11 + $0x60] sm:$0xff] }
 0x369   : > { %4564 = vmatprep.subr.bf16.mxu0 %v4563_v27  ;;  %v2786_v27 = vsel %vm460_vm1, %v2784_v5, %v2785_v12  ;;  %v2788_v5 = vsel %vm460_vm1, %v2785_v12, %v2787_v42 }
 0x36a   : > { %4120 = vmatmul.mubr.f32.gmra.mrb[120].mxu0 %v6504_v37 }
 0x36b   : > { %2972 = vmatmul.mubr.f32.gmra.mrb[140].mxu1 %v6579_v50  ;;  %4566 = vmatpush3.bf16.msra.mxu0 %v4565_v20  ;;  %v2117_v20 = vld [vmem:[#allocation11 + $0xf0] sm:$0xff] }
 0x36c   : > { %4122 = vmatprep.mubr.f32.mxu0 %v6512_v29  ;;  %2976 = vmatprep.mubr.f32.mxu1 %v6607_v21  ;;  %v4573_v21 = vpack.c.bf16 %v2100_v2, %v2099_v25  ;;  %v2101_v50 = vld [vmem:[#allocation11 + $0x70] sm:$0xff]  ;;  %v4575_v36 = vpack.c.bf16 %v2118_v41, %v2117_v20  ;;  %v1977_v25 = vsel %vm460_vm1, %v1975_v61, %v1976_v30 }
 0x36d   : > { %4568 = vmatprep.subr.bf16.mxu0 %v4567_v56  ;;  %v2102_v56 = vld [vmem:[#allocation11 + $0x78] sm:$0xff] }
 0x36e   : > { %4123 = vmatmul.mubr.f32.gmra.mrb[122].mxu0 %v6524_v49  ;;  %v4577_v9 = vpack.c.bf16 %v2102_v56, %v2101_v50 }
 0x36f   : > { %2977 = vmatmul.mubr.f32.gmra.mrb[142].mxu1 %v6581_v63  ;;  %4570 = vmatpush3.bf16.msra.mxu0 %v4569_v38  ;;  %v2149_v63 = vsel %vm531_vm0, %v2146_v26, %v2148_v58  ;;  %v1978_v38 = vrot.slane %v6382_v24, 1  ;;  %v7162_v24 = vld [vmem:[#allocation29_spill] sm:$0xff] }
 0x370   : > { %4125 = vmatprep.mubr.f32.mxu0 %v6532_v62  ;;  %2981 = vmatprep.mubr.f32.mxu1 %v2786_v27 }
 0x371   : > { %4572 = vmatprep.subr.bf16.mxu0 %v4571_v4  ;;  %v1979_v42 = vsel %vm460_vm1, %v1976_v30, %v1978_v38 }
 0x372   : > { %4126 = vmatmul.mubr.f32.gmra.mrb[124].mxu0 %v6539_v39 }
 0x373   : > { %2982 = vmatmul.mubr.f32.gmra.mrb[144].mxu1 %v6630_v3  ;;  %4574 = vmatpush3.bf16.msra.mxu0 %v4573_v21 }
 0x374   : > { %4128 = vmatprep.mubr.f32.mxu0 %v2147_v1  ;;  %2986 = vmatprep.mubr.f32.mxu1 %v2788_v5 }
 0x375   : > { %4576 = vmatprep.subr.bf16.mxu0 %v4575_v36  ;;  %v2791_v36 = vrot.slane %v6630_v3, 2 }
 0x376   : > { %4129 = vmatmul.mubr.f32.gmra.mrb[126].mxu0 %v2149_v63 }
 0x377   : > { %2987 = vmatmul.mubr.f32.gmra.mrb[146].mxu1 %v6632_v59  ;;  %4578 = vmatpush3.bf16.msra.mxu0 %v4577_v9 }
 0x378   : > { %2555 = vmatprep.mubr.f32.mxu0 %v1977_v25  ;;  %4219 = vmatprep.mubr.f32.mxu1 %v6418_v6 }
 0x37a   : > { %2556 = vmatmul.mubr.f32.vlgmr.msra.gmra.mrb[128].mxu0 %v6367_v52 }
 0x37b   : > { %4220 = vmatmul.mubr.f32.vlgmr.msra.gmra.mrb[100].mxu1 %v6432_v47  ;;  %2560 = vmatprep.mubr.f32.mxu0 %v1979_v42 }
 0x37c   : > { %4222 = vmatprep.mubr.f32.mxu1 %v6444_v0 }
 0x37e   : > { %2561 = vmatmul.mubr.f32.gmra.mrb[130].mxu0 %v6371_v35 }
 0x37f   : > { %4223 = vmatmul.mubr.f32.gmra.mrb[102].mxu1 %v6458_v15  ;;  %2565 = vmatprep.mubr.f32.mxu0 %v6378_v55  ;;  %v7161_v55 = vld [vmem:[#allocation26_spill] sm:$0xff] }
 0x380   : > { %4225 = vmatprep.mubr.f32.mxu1 %v6465_v28 }
 0x382   : > { %2566 = vmatmul.mubr.f32.gmra.mrb[132].mxu0 %v6363_v33  ;;  %v2792_v33 = vrot.slane %v6632_v59, 2 }
 0x383   : > { %4226 = vmatmul.mubr.f32.gmra.mrb[104].mxu1 %v6479_v14  ;;  %2570 = vmatprep.mubr.f32.mxu0 %v6397_v43 }
 0x384   : > { %4228 = vmatprep.mubr.f32.mxu1 %v6489_v22  ;;  %v2793_v52 = vsel %vm531_vm0, %v2791_v36, %v2792_v33 }
 0x386   : > { %2571 = vmatmul.mubr.f32.gmra.mrb[134].mxu0 %v6365_v16  ;;  %v2794_v16 = vrot.slane %v6640_v11, 2 }
 0x387   : > { %4229 = vmatmul.mubr.f32.gmra.mrb[106].mxu1 %v6504_v37  ;;  %2575 = vmatprep.mubr.f32.mxu0 %v6414_v45 }
 0x388   : > { %4231 = vmatprep.mubr.f32.mxu1 %v6512_v29  ;;  %v2795_v35 = vsel %vm531_vm0, %v2792_v33, %v2794_v16 }
 0x38a   : > { %2576 = vmatmul.mubr.f32.gmra.mrb[136].mxu0 %v6385_v51  ;;  %v7163_v51 = vld [vmem:[#allocation27_spill] sm:$0xff] }
 0x38b   : > { %4232 = vmatmul.mubr.f32.gmra.mrb[108].mxu1 %v6524_v49  ;;  %2580 = vmatprep.mubr.f32.mxu0 %v6436_v8 }
 0x38c   : > { %4234 = vmatprep.mubr.f32.mxu1 %v6532_v62 }
 0x38e   : > { %2581 = vmatmul.mubr.f32.gmra.mrb[138].mxu0 %v6387_v53 }
 0x38f   : > { %4235 = vmatmul.mubr.f32.gmra.mrb[110].mxu1 %v6539_v39  ;;  %2585 = vmatprep.mubr.f32.mxu0 %v6461_v40 }
 0x390   : > { %4237 = vmatprep.mubr.f32.mxu1 %v2147_v1 }
 0x392   : > { %2586 = vmatmul.mubr.f32.gmra.mrb[140].mxu0 %v6405_v57 }
 0x393   : > { %4238 = vmatmul.mubr.f32.gmra.mrb[112].mxu1 %v2149_v63  ;;  %2590 = vmatprep.mubr.f32.mxu0 %v6483_v48 }
 0x394   : > { %4240 = vmatprep.mubr.f32.mxu1 %v2793_v52 }
 0x396   : > { %2591 = vmatmul.mubr.f32.gmra.mrb[142].mxu0 %v6407_v32 }
 0x397   : > { %4241 = vmatmul.mubr.f32.gmra.mrb[114].mxu1 %v2795_v35  ;;  %2595 = vmatprep.mubr.f32.mxu0 %v6507_v19  ;;  %v7160_v19 = vld [vmem:[#allocation28_spill] sm:$0xff] }
 0x39a   : > { %2596 = vmatmul.mubr.f32.gmra.mrb[144].mxu0 %v6425_v13 }
 0x39b   : > { %2600 = vmatprep.mubr.f32.mxu0 %v6527_v17 }
 0x39e   : > { %2601 = vmatmul.mubr.f32.gmra.mrb[146].mxu0 %v6427_v31 }
 0x39f   : > { %2605 = vmatprep.mubr.f32.mxu0 %v6542_v7 }
 0x3a2   : > { %2606 = vmatmul.mubr.f32.gmra.mrb[148].mxu0 %v6449_v10 }
 0x3a3   : > { %2610 = vmatprep.mubr.f32.mxu0 %v6550_v18 }
 0x3a6   : > { %2611 = vmatmul.mubr.f32.gmra.mrb[150].mxu0 %v6451_v44 }
 0x3a7   : > { %2615 = vmatprep.mubr.f32.mxu0 %v6559_v54 }
 0x3aa   : > { %2616 = vmatmul.mubr.f32.gmra.mrb[152].mxu0 %v6472_v46 }
 0x3ab   : > { %2620 = vmatprep.mubr.f32.mxu0 %v6567_v34 }
 0x3ae   : > { %2621 = vmatmul.mubr.f32.gmra.mrb[154].mxu0 %v6474_v23 }
 0x3af   : > { %2625 = vmatprep.mubr.f32.mxu0 %v7160_v19 }
 0x3b2   : > { %2626 = vmatmul.mubr.f32.gmra.mrb[156].mxu0 %v7161_v55 }
 0x3b3   : > { %2630 = vmatprep.mubr.f32.mxu0 %v7162_v24 }
 0x3b6   : > { %2631 = vmatmul.mubr.f32.gmra.mrb[158].mxu0 %v7163_v51 }
 0x3ed   : > { %v3585_v53 = vpop.f32.mrb[80].mxu0 }
 0x3ee   : > { %v3586_v43 = vpop.f32.mrb[81].mxu0 }
 0x3ef   : > { %v6711_v57 = vadd.f32 %v3586_v43, %v3585_v53 }
 0x3f1   : > { %v3588_v32 = vpop.f32.mrb[82].mxu0 }
 0x3f2   : > { %v3589_v45 = vpop.f32.mrb[83].mxu0 }
 0x3f3   : > { %v6713_v6 = vadd.f32 %v3589_v45, %v3588_v32 }
 0x3f5   : > { %v3591_v13 = vpop.f32.mrb[84].mxu0 }
 0x3f6   : > { %v3592_v31 = vpop.f32.mrb[85].mxu0 }
 0x3f7   : > { %v6715_v47 = vadd.f32 %v3592_v31, %v3591_v13 }
 0x3f9   : > { %v3594_v8 = vpop.f32.mrb[86].mxu0 }
 0x3fa   : > { %v3595_v0 = vpop.f32.mrb[87].mxu0 }
 0x3fb   : > { %v6717_v10 = vadd.f32 %v3595_v0, %v3594_v8 }
 0x3fd   : > { %v3597_v44 = vpop.f32.mrb[88].mxu0 }
 0x3fe   : > { %v3598_v15 = vpop.f32.mrb[89].mxu0 }
 0x3ff   : > { %v6719_v40 = vadd.f32 %v3598_v15, %v3597_v44 }
 0x401   : > { %v3600_v28 = vpop.f32.mrb[90].mxu0 }
 0x402   : > { %v3601_v46 = vpop.f32.mrb[91].mxu0 }
 0x403   : > { %v6721_v23 = vadd.f32 %v3601_v46, %v3600_v28 }
 0x405   : > { %v3603_v14 = vpop.f32.mrb[92].mxu0 }
 0x406   : > { %v3604_v48 = vpop.f32.mrb[93].mxu0 }
 0x407   : > { %v6723_v22 = vadd.f32 %v3604_v48, %v3603_v14 }
 0x409   : > { %v3606_v37 = vpop.f32.mrb[94].mxu0 }
 0x40a   : > { %v3607_v29 = vpop.f32.mrb[95].mxu0 }
 0x40b   : > { %v6725_v49 = vadd.f32 %v3607_v29, %v3606_v37 }
 0x40d   : > { %v3609_v17 = vpop.f32.mrb[96].mxu0 }
 0x40e   : > { %v3610_v62 = vpop.f32.mrb[97].mxu0  ;;  %v3809_v39 = vpop.f32.mrb[116].mxu1 }
 0x40f   : > { %v6727_v7 = vadd.f32 %v3610_v62, %v3609_v17  ;;  %v3810_v18 = vpop.f32.mrb[117].mxu1 }
 0x410   : > { %v6729_v54 = vadd.f32 %v3810_v18, %v3809_v39 }
 0x411   : > { %v3612_v34 = vpop.f32.mrb[98].mxu0 }
 0x412   : > { %v3613_v30 = vpop.f32.mrb[99].mxu0  ;;  %v3812_v11 = vpop.f32.mrb[118].mxu1 }
 0x413   : > { %v6731_v3 = vadd.f32 %v3613_v30, %v3612_v34  ;;  %v3813_v59 = vpop.f32.mrb[119].mxu1 }
 0x414   : > { %v6733_v12 = vadd.f32 %v3813_v59, %v3812_v11 }
 0x415   : > { %v3615_v2 = vpop.f32.mrb[100].mxu0 }
 0x416   : > { %v3616_v60 = vpop.f32.mrb[101].mxu0  ;;  %v3815_v27 = vpop.f32.mrb[120].mxu1 }
 0x417   : > { %v6735_v4 = vadd.f32 %v3616_v60, %v3615_v2  ;;  %v3816_v26 = vpop.f32.mrb[121].mxu1 }
 0x418   : > { %v6737_v20 = vadd.f32 %v3816_v26, %v3815_v27 }
 0x419   : > { %v3618_v41 = vpop.f32.mrb[102].mxu0 }
 0x41a   : > { %v3619_v21 = vpop.f32.mrb[103].mxu0  ;;  %v3818_v58 = vpop.f32.mrb[122].mxu1 }
 0x41b   : > { %v6739_v50 = vadd.f32 %v3619_v21, %v3618_v41  ;;  %v3819_v56 = vpop.f32.mrb[123].mxu1 }
 0x41c   : > { %v6741_v61 = vadd.f32 %v3819_v56, %v3818_v58 }
 0x41d   : > { %v3621_v1 = vpop.f32.mrb[104].mxu0 }
 0x41e   : > { %v3622_v5 = vpop.f32.mrb[105].mxu0  ;;  %v3821_v63 = vpop.f32.mrb[124].mxu1 }
 0x41f   : > { %v6743_v9 = vadd.f32 %v3622_v5, %v3621_v1  ;;  %v3822_v38 = vpop.f32.mrb[125].mxu1 }
 0x420   : > { %v6745_v25 = vadd.f32 %v3822_v38, %v3821_v63 }
 0x421   : > { %v3624_v42 = vpop.f32.mrb[106].mxu0 }
 0x422   : > { %v3625_v36 = vpop.f32.mrb[107].mxu0  ;;  %v3824_v33 = vpop.f32.mrb[126].mxu1 }
 0x423   : > { %v3626_v16 = vadd.f32 %v3625_v36, %v3624_v42  ;;  %v3825_v52 = vpop.f32.mrb[127].mxu1 }
 0x424   : > { %v6747_v35 = vadd.f32 %v3825_v52, %v3824_v33 }
 0x425   : > { %v3627_v19 = vpop.f32.mrb[108].mxu0 }
 0x426   : > { %v3628_v55 = vpop.f32.mrb[109].mxu0  ;;  %v3827_v24 = vpop.f32.mrb[128].mxu1 }
 0x427   : > { %v3629_v51 = vadd.f32 %v3628_v55, %v3627_v19  ;;  %v3828_v53 = vpop.f32.mrb[129].mxu1 }
 0x428   : > { %v6749_v43 = vadd.f32 %v3828_v53, %v3827_v24 }
 0x429   : > { %v3630_v32 = vpop.f32.mrb[110].mxu0 }
 0x42a   : > { %v3631_v45 = vpop.f32.mrb[111].mxu0  ;;  %v3830_v13 = vpop.f32.mrb[130].mxu1 }
 0x42b   : > { %v3632_v31 = vadd.f32 %v3631_v45, %v3630_v32  ;;  %v3831_v8 = vpop.f32.mrb[131].mxu1 }
 0x42c   : > { %v6751_v0 = vadd.f32 %v3831_v8, %v3830_v13 }
 0x42d   : > { %v4109_v44 = vpop.f32.mrb[112].mxu0 }
 0x42e   : > { %v6754_v15 = vadd.f32 %v4109_v44, %v6713_v6  ;;  %v2412_v28 = vpop.f32.mrb[113].mxu0  ;;  %v3833_v46 = vpop.f32.mrb[132].mxu1 }
 0x42f   : > { %v2413_v14 = vadd.f32 %v6711_v57, %v2412_v28  ;;  %v3834_v48 = vpop.f32.mrb[133].mxu1 }
 0x430   : > { %v6757_v37 = vadd.f32 %v3834_v48, %v3833_v46 }
 0x431   : > { %v4112_v29 = vpop.f32.mrb[114].mxu0 }
 0x432   : > { %v6760_v17 = vadd.f32 %v4112_v29, %v6717_v10  ;;  %v2422_v62 = vpop.f32.mrb[115].mxu0  ;;  %v3836_v39 = vpop.f32.mrb[134].mxu1 }
 0x433   : > { %v6763_v18 = vadd.f32 %v6715_v47, %v2422_v62  ;;  %v3837_v34 = vpop.f32.mrb[135].mxu1 }
 0x434   : > { %v6765_v30 = vadd.f32 %v3837_v34, %v3836_v39 }
 0x435   : > { %v4115_v6 = vpop.f32.mrb[116].mxu0 }
 0x436   : > { %v6768_v11 = vadd.f32 %v4115_v6, %v6721_v23  ;;  %v2432_v57 = vpop.f32.mrb[117].mxu0  ;;  %v3839_v59 = vpop.f32.mrb[136].mxu1 }
 0x437   : > { %v6771_v2 = vadd.f32 %v6719_v40, %v2432_v57  ;;  %v3840_v60 = vpop.f32.mrb[137].mxu1 }
 0x438   : > { %v6773_v10 = vadd.f32 %v3840_v60, %v3839_v59 }
 0x439   : > { %v4118_v27 = vpop.f32.mrb[118].mxu0 }
 0x43a   : > { %v6776_v26 = vadd.f32 %v4118_v27, %v6725_v49  ;;  %v2442_v47 = vpop.f32.mrb[119].mxu0  ;;  %v3842_v41 = vpop.f32.mrb[138].mxu1 }
 0x43b   : > { %v6779_v21 = vadd.f32 %v6723_v22, %v2442_v47  ;;  %v3843_v58 = vpop.f32.mrb[139].mxu1  ;;  %v6813_v47 = vld [vmem:[#allocation12] ss:$0 sm:$0xff] }
 0x43c   : > { %v6781_v23 = vadd.f32 %v3843_v58, %v3842_v41 }
 0x43d   : > { %v4121_v56 = vpop.f32.mrb[120].mxu0 }
 0x43e   : > { %v6784_v1 = vadd.f32 %v4121_v56, %v6731_v3  ;;  %v2452_v40 = vpop.f32.mrb[121].mxu0  ;;  %v3845_v5 = vpop.f32.mrb[140].mxu1  ;;  %v6816_v56 = vld [vmem:[#allocation14] ss:$0 sm:$0xff] }
 0x43f   : > { %v6787_v63 = vadd.f32 %v6727_v7, %v2452_v40  ;;  %v3846_v38 = vpop.f32.mrb[141].mxu1 }
 0x440   : > { %v6789_v49 = vadd.f32 %v3846_v38, %v3845_v5 }
 0x441   : > { %v4124_v42 = vpop.f32.mrb[122].mxu0 }
 0x442   : > { %v6792_v36 = vadd.f32 %v4124_v42, %v6739_v50  ;;  %v2462_v22 = vpop.f32.mrb[123].mxu0  ;;  %v3848_v33 = vpop.f32.mrb[142].mxu1 }
 0x443   : > { %v6795_v52 = vadd.f32 %v6735_v4, %v2462_v22  ;;  %v3849_v19 = vpop.f32.mrb[143].mxu1 }
 0x444   : > { %v6797_v3 = vadd.f32 %v3849_v19, %v3848_v33 }
 0x445   : > { %v4127_v55 = vpop.f32.mrb[124].mxu0 }
 0x446   : > { %v6799_v24 = vadd.f32 %v4127_v55, %v3626_v16  ;;  %v2472_v7 = vpop.f32.mrb[125].mxu0  ;;  %v3851_v53 = vpop.f32.mrb[144].mxu1 }
 0x447   : > { %v6802_v32 = vadd.f32 %v6743_v9, %v2472_v7  ;;  %v3852_v45 = vpop.f32.mrb[145].mxu1 }
 0x448   : > { %v6804_v13 = vadd.f32 %v3852_v45, %v3851_v53  ;;  %v7164_v53 = vld [vmem:[#allocation36_spill] sm:$0xff] }
 0x449   : > { %v4130_v50 = vpop.f32.mrb[126].mxu0 }
 0x44a   : > { %v6806_v8 = vadd.f32 %v4130_v50, %v3632_v31  ;;  %v2482_v44 = vpop.f32.mrb[127].mxu0  ;;  %v3854_v4 = vpop.f32.mrb[146].mxu1 }
 0x44b   : > { %v6808_v28 = vadd.f32 %v3629_v51, %v2482_v44  ;;  %v3855_v46 = vpop.f32.mrb[147].mxu1 }
 0x44c   : > { %v6810_v48 = vadd.f32 %v3855_v46, %v3854_v4 }
 0x44d   : > { %v3697_v16 = vpop.f32.mrb[128].mxu0 }
 0x44e   : > { %v4221_v29 = vpop.f32.mrb[100].mxu1  ;;  %v3698_v62 = vpop.f32.mrb[129].mxu0 }
 0x44f   : > { %v3699_v39 = vadd.f32 %v3698_v62, %v3697_v16  ;;  %v3058_v34 = vpop.f32.mrb[101].mxu1 }
 0x451   : > { %v2558_v9 = vadd.f32 %v3699_v39, %v2413_v14  ;;  %v3700_v6 = vpop.f32.mrb[130].mxu0 }
 0x452   : > { %v4224_v57 = vpop.f32.mrb[102].mxu1  ;;  %v3701_v59 = vpop.f32.mrb[131].mxu0 }
 0x453   : > { %v4681_v60 = vadd.f32 %v6729_v54, %v2558_v9  ;;  %v3702_v31 = vadd.f32 %v3701_v59, %v3700_v6  ;;  %v3068_v27 = vpop.f32.mrb[103].mxu1  ;;  %v7165_v9 = vld [vmem:[#allocation38_spill] sm:$0xff] }
 0x455   : > { %v4682_v51 = vadd.f32 %v4681_v60, %v3058_v34  ;;  %v2563_v41 = vadd.f32 %v3702_v31, %v6754_v15  ;;  %v3703_v58 = vpop.f32.mrb[132].mxu0 }
 0x456   : > { %v4227_v40 = vpop.f32.mrb[104].mxu1  ;;  %v3704_v5 = vpop.f32.mrb[133].mxu0 }
 0x457   : > { %v3160_v38 = vmul.f32 %v4682_v51, %v6813_v47  ;;  %v4677_v14 = vadd.f32 %v6733_v12, %v2563_v41  ;;  %v3705_v42 = vadd.f32 %v3704_v5, %v3703_v58  ;;  %v3078_v22 = vpop.f32.mrb[105].mxu1 }
 0x459   : > { %v3183_v54 = vadd.f32 %v6816_v56, %v3160_v38  ;;  %v4678_v33 = vadd.f32 %v4677_v14, %v4221_v29  ;;  %v2568_v19 = vadd.f32 %v3705_v42, %v6763_v18  ;;  %v3706_v55 = vpop.f32.mrb[134].mxu0  ;;  %v7166_v14 = vld [vmem:[#allocation39_spill] sm:$0xff] }
 0x45a   : > { %v6822_v7 = vpop.f32.mrb[106].mxu1  ;;  %v3707_v15 = vpop.f32.mrb[135].mxu0 }
 0x45b   : > { %v3199_v45 = vadd.f32 %v3183_v54, %v7164_v53  ;;  %v3161_v50 = vmul.f32 %v4678_v33, %v6813_v47  ;;  %v4689_v44 = vadd.f32 %v6737_v20, %v2568_v19  ;;  %v3708_v4 = vadd.f32 %v3707_v15, %v3706_v55  ;;  %v3088_v12 = vpop.f32.mrb[107].mxu1 }
 0x45d   : > { %v3215_v46 = vmax.f32 %v3199_v45, 0.0  ;;  %v3184_v16 = vadd.f32 %v6816_v56, %v3161_v50  ;;  %v4690_v62 = vadd.f32 %v4689_v44, %v3068_v27  ;;  %v2573_v29 = vadd.f32 %v3708_v4, %v6760_v17  ;;  %v3709_v18 = vpop.f32.mrb[136].mxu0  ;;  %v7167_v44 = vld [vmem:[#allocation40_spill] sm:$0xff] }
 0x45e   : > { %v6829_v39 = vpop.f32.mrb[108].mxu1  ;;  %v3710_v34 = vpop.f32.mrb[137].mxu0 }
 0x45f   : > { %3231 = vst [vmem:[%s6359_s7] sm:$0xff] %v3215_v46  ;;  %v3200_v6 = vadd.f32 %v3184_v16, %v7165_v9  ;;  %v3162_v59 = vmul.f32 %v4690_v62, %v6813_v47  ;;  %v4685_v20 = vadd.f32 %v6741_v61, %v2573_v29  ;;  %v3711_v60 = vadd.f32 %v3710_v34, %v3709_v18  ;;  %v6835_v31 = vpop.f32.mrb[109].mxu1 }
 0x461   : > { %v3216_v51 = vmax.f32 %v3200_v6, 0.0  ;;  %v3185_v27 = vadd.f32 %v6816_v56, %v3162_v59  ;;  %v4686_v41 = vadd.f32 %v4685_v20, %v4224_v57  ;;  %v2578_v17 = vadd.f32 %v3711_v60, %v6771_v2  ;;  %v3712_v58 = vpop.f32.mrb[138].mxu0  ;;  %v7168_v59 = vld [vmem:[#allocation41_spill] sm:$0xff] }
 0x462   : > { %v6839_v5 = vpop.f32.mrb[110].mxu1  ;;  %v3713_v38 = vpop.f32.mrb[139].mxu0 }
 0x463   : > { %3232 = vst [vmem:[%s6359_s7 + $0x8] sm:$0xff] %v3216_v51  ;;  %v3201_v42 = vadd.f32 %v3185_v27, %v7166_v14  ;;  %v3163_v54 = vmul.f32 %v4686_v41, %v6813_v47  ;;  %v4697_v61 = vadd.f32 %v6745_v25, %v2578_v17  ;;  %v3714_v33 = vadd.f32 %v3713_v38, %v3712_v58  ;;  %v6845_v19 = vpop.f32.mrb[111].mxu1  ;;  %v7169_v14 = vld [vmem:[#allocation42_spill] sm:$0xff] }
 0x465   : > { %v3217_v55 = vmax.f32 %v3201_v42, 0.0  ;;  %v3186_v57 = vadd.f32 %v6816_v56, %v3163_v54  ;;  %v4698_v15 = vadd.f32 %v4697_v61, %v3078_v22  ;;  %v2583_v2 = vadd.f32 %v3714_v33, %v6768_v11  ;;  %v3715_v53 = vpop.f32.mrb[140].mxu0 }
 0x466   : > { %v6849_v45 = vpop.f32.mrb[112].mxu1  ;;  %v3716_v50 = vpop.f32.mrb[141].mxu0 }
 0x467   : > { %3233 = vst [vmem:[%s6359_s7 + $0x10] sm:$0xff] %v3217_v55  ;;  %v3202_v4 = vadd.f32 %v3186_v57, %v7167_v44  ;;  %v3164_v46 = vmul.f32 %v4698_v15, %v6813_v47  ;;  %v4693_v25 = vadd.f32 %v6747_v35, %v2583_v2  ;;  %v3717_v16 = vadd.f32 %v3716_v50, %v3715_v53  ;;  %v6855_v62 = vpop.f32.mrb[113].mxu1  ;;  %v7170_v2 = vld [vmem:[#allocation43_spill] sm:$0xff] }
 0x469   : > { %v3218_v29 = vmax.f32 %v3202_v4, 0.0  ;;  %v3187_v22 = vadd.f32 %v6816_v56, %v3164_v46  ;;  %v4694_v18 = vadd.f32 %v4693_v25, %v4227_v40  ;;  %v2588_v11 = vadd.f32 %v3717_v16, %v6779_v21  ;;  %v3718_v34 = vpop.f32.mrb[142].mxu0 }
 0x46a   : > { %v6859_v9 = vpop.f32.mrb[114].mxu1  ;;  %v3719_v6 = vpop.f32.mrb[143].mxu0 }
 0x46b   : > { %3234 = vst [vmem:[%s6359_s7 + $0x18] sm:$0xff] %v3218_v29  ;;  %v3203_v20 = vadd.f32 %v3187_v22, %v7168_v59  ;;  %v3165_v60 = vmul.f32 %v4694_v18, %v6813_v47  ;;  %v4705_v35 = vadd.f32 %v6749_v43, %v2588_v11  ;;  %v3720_v51 = vadd.f32 %v3719_v6, %v3718_v34  ;;  %v6865_v27 = vpop.f32.mrb[115].mxu1  ;;  %v7171_v29 = vld [vmem:[#allocation44_spill] sm:$0xff] }
 0x46d   : > { %v3219_v41 = vmax.f32 %v3203_v20, 0.0  ;;  %v3188_v40 = vadd.f32 %v6816_v56, %v3165_v60  ;;  %v4706_v21 = vadd.f32 %v4705_v35, %v3088_v12  ;;  %v2593_v17 = vadd.f32 %v3720_v51, %v6776_v26  ;;  %v3721_v58 = vpop.f32.mrb[144].mxu0  ;;  %v7172_v60 = vld [vmem:[#allocation45_spill] sm:$0xff] }
 0x46e   : > { %v3722_v38 = vpop.f32.mrb[145].mxu0 }
 0x46f   : > { %3235 = vst [vmem:[%s6359_s7 + $0x20] sm:$0xff] %v3219_v41  ;;  %v3204_v42 = vadd.f32 %v3188_v40, %v7169_v14  ;;  %v3166_v54 = vmul.f32 %v4706_v21, %v6813_v47  ;;  %v4701_v61 = vadd.f32 %v6751_v0, %v2593_v17  ;;  %v3723_v43 = vadd.f32 %v3722_v38, %v3721_v58  ;;  %v7173_v38 = vld [vmem:[#allocation46_spill] sm:$0xff] }
 0x471   : > { %v3220_v33 = vmax.f32 %v3204_v42, 0.0  ;;  %v3189_v55 = vadd.f32 %v6816_v56, %v3166_v54  ;;  %v4702_v57 = vadd.f32 %v4701_v61, %v6822_v7  ;;  %v2598_v12 = vadd.f32 %v3723_v43, %v6787_v63  ;;  %v3724_v15 = vpop.f32.mrb[146].mxu0 }
 0x472   : > { %v3725_v26 = vpop.f32.mrb[147].mxu0 }
 0x473   : > { %3236 = vst [vmem:[%s6359_s7 + $0x28] sm:$0xff] %v3220_v33  ;;  %v3205_v53 = vadd.f32 %v3189_v55, %v7170_v2  ;;  %v3167_v50 = vmul.f32 %v4702_v57, %v6813_v47  ;;  %v4713_v44 = vadd.f32 %v6757_v37, %v2598_v12  ;;  %v3726_v4 = vadd.f32 %v3725_v26, %v3724_v15  ;;  %v7174_v57 = vld [vmem:[#allocation47_spill] sm:$0xff] }
 0x475   : > { %v3221_v0 = vmax.f32 %v3205_v53, 0.0  ;;  %v3190_v46 = vadd.f32 %v6816_v56, %v3167_v50  ;;  %v4714_v25 = vadd.f32 %v4713_v44, %v6835_v31  ;;  %v2603_v7 = vadd.f32 %v3726_v4, %v6784_v1  ;;  %v3727_v16 = vpop.f32.mrb[148].mxu0  ;;  %v7175_v4 = vld [vmem:[#allocation48_spill] sm:$0xff] }
 0x476   : > { %v3728_v63 = vpop.f32.mrb[149].mxu0 }
 0x477   : > { %3237 = vst [vmem:[%s6359_s7 + $0x30] sm:$0xff] %v3221_v0  ;;  %v3206_v22 = vadd.f32 %v3190_v46, %v7171_v29  ;;  %v3168_v18 = vmul.f32 %v4714_v25, %v6813_v47  ;;  %v4709_v11 = vadd.f32 %v6765_v30, %v2603_v7  ;;  %v3729_v34 = vadd.f32 %v3728_v63, %v3727_v16 }
 0x479   : > { %v3222_v37 = vmax.f32 %v3206_v22, 0.0  ;;  %v3191_v6 = vadd.f32 %v6816_v56, %v3168_v18  ;;  %v4710_v59 = vadd.f32 %v4709_v11, %v6829_v39  ;;  %v2608_v31 = vadd.f32 %v3729_v34, %v6795_v52  ;;  %v3730_v20 = vpop.f32.mrb[150].mxu0  ;;  %v7178_v22 = vld [vmem:[#allocation49_spill] sm:$0xff] }
 0x47a   : > { %v3731_v1 = vpop.f32.mrb[151].mxu0 }
 0x47b   : > { %3238 = vst [vmem:[%s6359_s7 + $0x38] sm:$0xff] %v3222_v37  ;;  %v3207_v35 = vadd.f32 %v3191_v6, %v7172_v60  ;;  %v3169_v51 = vmul.f32 %v4710_v59, %v6813_v47  ;;  %v4721_v41 = vadd.f32 %v6773_v10, %v2608_v31  ;;  %v3732_v40 = vadd.f32 %v3731_v1, %v3730_v20  ;;  %v7179_v59 = vld [vmem:[#allocation50_spill] sm:$0xff] }
 0x47d   : > { %v3223_v30 = vmax.f32 %v3207_v35, 0.0  ;;  %v3192_v21 = vadd.f32 %v6816_v56, %v3169_v51  ;;  %v4722_v17 = vadd.f32 %v4721_v41, %v6845_v19  ;;  %v2613_v39 = vadd.f32 %v3732_v40, %v6792_v36  ;;  %v3733_v58 = vpop.f32.mrb[152].mxu0 }
 0x47e   : > { %v3734_v52 = vpop.f32.mrb[153].mxu0 }
 0x47f   : > { %3239 = vst [vmem:[%s6359_s7 + $0x40] sm:$0xff] %v3223_v30  ;;  %v3208_v14 = vadd.f32 %v3192_v21, %v7173_v38  ;;  %v3170_v42 = vmul.f32 %v4722_v17, %v6813_v47  ;;  %v4717_v54 = vadd.f32 %v6781_v23, %v2613_v39  ;;  %v3735_v61 = vadd.f32 %v3734_v52, %v3733_v58 }
 0x481   : > { %v3224_v10 = vmax.f32 %v3208_v14, 0.0  ;;  %v3193_v43 = vadd.f32 %v6816_v56, %v3170_v42  ;;  %v4718_v33 = vadd.f32 %v4717_v54, %v6839_v5  ;;  %v2618_v19 = vadd.f32 %v3735_v61, %v6802_v32  ;;  %v3736_v55 = vpop.f32.mrb[154].mxu0 }
 0x482   : > { %v3737_v36 = vpop.f32.mrb[155].mxu0 }
 0x483   : > { %3240 = vst [vmem:[%s6359_s7 + $0x48] sm:$0xff] %v3224_v10  ;;  %v3209_v12 = vadd.f32 %v3193_v43, %v7174_v57  ;;  %v3171_v15 = vmul.f32 %v4718_v33, %v6813_v47  ;;  %v4729_v26 = vadd.f32 %v6789_v49, %v2618_v19  ;;  %v3738_v2 = vadd.f32 %v3737_v36, %v3736_v55 }
 0x485   : > { %v3225_v23 = vmax.f32 %v3209_v12, 0.0  ;;  %v3194_v53 = vadd.f32 %v6816_v56, %v3171_v15  ;;  %v4730_v50 = vadd.f32 %v4729_v26, %v6855_v62  ;;  %v2623_v5 = vadd.f32 %v3738_v2, %v6799_v24  ;;  %v3739_v44 = vpop.f32.mrb[156].mxu0 }
 0x486   : > { %v3740_v32 = vpop.f32.mrb[157].mxu0 }
 0x487   : > { %3241 = vst [vmem:[%s6359_s7 + $0x50] sm:$0xff] %v3225_v23  ;;  %v3210_v0 = vadd.f32 %v3194_v53, %v7175_v4  ;;  %v3172_v46 = vmul.f32 %v4730_v50, %v6813_v47  ;;  %v4725_v25 = vadd.f32 %v6797_v3, %v2623_v5  ;;  %v3741_v7 = vadd.f32 %v3740_v32, %v3739_v44 }
 0x489   : > { %v3226_v49 = vmax.f32 %v3210_v0, 0.0  ;;  %v3195_v16 = vadd.f32 %v6816_v56, %v3172_v46  ;;  %v4726_v63 = vadd.f32 %v4725_v25, %v6849_v45  ;;  %v2628_v62 = vadd.f32 %v3741_v7, %v6808_v28  ;;  %v3742_v24 = vpop.f32.mrb[158].mxu0 }
 0x48a   : > { %v3743_v29 = vpop.f32.mrb[159].mxu0 }
 0x48b   : > { %3242 = vst [vmem:[%s6359_s7 + $0x58] sm:$0xff] %v3226_v49  ;;  %v3211_v18 = vadd.f32 %v3195_v16, %v7178_v22  ;;  %v3173_v11 = vmul.f32 %v4726_v63, %v6813_v47  ;;  %v4737_v3 = vadd.f32 %v6804_v13, %v2628_v62  ;;  %v3744_v34 = vadd.f32 %v3743_v29, %v3742_v24 }
 0x48d   : > { %v3227_v37 = vmax.f32 %v3211_v18, 0.0  ;;  %v3196_v6 = vadd.f32 %v6816_v56, %v3173_v11  ;;  %v4738_v45 = vadd.f32 %v4737_v3, %v6865_v27  ;;  %v2633_v28 = vadd.f32 %v3744_v34, %v6806_v8  ;;  %v7180_v8 = vld [vmem:[#allocation51_spill] sm:$0xff] }
 0x48f   : > { %3243 = vst [vmem:[%s6359_s7 + $0x60] sm:$0xff] %v3227_v37  ;;  %v3212_v31 = vadd.f32 %v3196_v6, %v7179_v59  ;;  %v3174_v20 = vmul.f32 %v4738_v45, %v6813_v47  ;;  %v4733_v1 = vadd.f32 %v6810_v48, %v2633_v28  ;;  %v7181_v48 = vld [vmem:[#allocation52_spill] sm:$0xff] }
 0x491   : > { %v3228_v13 = vmax.f32 %v3212_v31, 0.0  ;;  %v3197_v60 = vadd.f32 %v6816_v56, %v3174_v20  ;;  %v4734_v27 = vadd.f32 %v4733_v1, %v6859_v9 }
 0x493   : > { %3244 = vst [vmem:[%s6359_s7 + $0x68] sm:$0xff] %v3228_v13  ;;  %v3213_v35 = vadd.f32 %v3197_v60, %v7180_v8  ;;  %v3175_v51 = vmul.f32 %v4734_v27, %v6813_v47 }
 0x495   : > { %v3229_v41 = vmax.f32 %v3213_v35, 0.0  ;;  %v3198_v40 = vadd.f32 %v6816_v56, %v3175_v51 }
 0x497   : > { %3245 = vst [vmem:[%s6359_s7 + $0x70] sm:$0xff] %v3229_v41  ;;  %v3214_v30 = vadd.f32 %v3198_v40, %v7181_v48 }
 0x499   : > { %v3230_v9 = vmax.f32 %v3214_v30, 0.0 }
 0x49b   : > { %3246 = vst [vmem:[%s6359_s7 + $0x78] sm:$0xff] %v3230_v9 }
 0x49c   : > { %5146 = shalt.err (!%p5143_p9)
}
 0x49d   : > { %s5147_s2 = scalar_lea.hbm %s6943_s22, 2048  ;;  %s5151_s19 = scalar_lea.hbm %s7182_s14, 8192 }
 0x49e   : > { %p5148_p4 = scmp.ne.s32.totalorder %s6943_s22, %s5147_s2  ;;  %p5152_p8 = scmp.lt.u32.totalorder %s6943_s22, %s7182_s14 }
 0x49f   : > { %p5153_p5 = scmp.lt.u32.totalorder %s5151_s19, %s5147_s2  ;;  %p5155_p6 = scmp.lt.u32.totalorder %s5147_s2, %s6943_s22 }
 0x4a0   : > { %p5149_p10 = pnand %p5148_p4, %p7183_p7 }
 0x4a1   : > { %p5154_p13 = por %p5153_p5, %p5152_p8 }
 0x4a2   : > { %p5150_p1 = pneg %p5149_p10 }
 0x4a3   : > { %p5156_p11 = por %p5155_p6, %p5154_p13 }
 0x4a5   : > { %p5157_p12 = pnand %p5156_p11, %p5150_p1 }
 0x4a7   : > { %5160 = shalt.err (!%p5157_p12)
}
 0x4a8   : > { %s5283_s13 = smov 128   ;;  %s5284_s12 = smov 8  }
 0x4a9   : > { %4784 = dma.vmem_to_hbm [thread:$0]  (%p7183_p7), %s6945_s17, 2048, %s6943_s22, %s6950_s0, %s5283_s13, %s5283_s13, %s5284_s12  }
 0x4aa PF: > { %s7184_s4 = sld [smem:[#allocation21_spill]]  ;;  %p4826_p0 = scmp.ge.s32.totalorder %s5267_s11, 2 }
 0x4ab   : > { %p7185_p3 = scmp.ne.s32.totalorder %s7102_s8, 0 }
 0x4ad   : > { %p4810_p2 = pnand %p4826_p0, %p7185_p3 }
 0x4b0   : > { %s3279_s3 = sand.u32 1, %s7184_s4  }
 0x4b1   : > { %s3280_s23 = scalar_lea.sflag [#allocation5], %s3279_s3 }
 0x4b2   : > { %5222 = dma.done.wait (!%p4810_p2), %s3280_s23, 2048  }
 0x4b3   : > { %5224 = vsyncadd (!%p4810_p2), %s3280_s23, 4294965248  ;;  %s26_s11 = sadd.s32 1, %s5267_s11   ;;  %s7186_s24 = smov %s5231_s25 }
 0x4b4   : > { %p23_p9 = scmp.ge.s32.totalorder %s26_s11, 6   ;;  %s7187_s25 = smov %s5235_s26 }
 0x4b5   : > { %s7188_s26 = smov %s5596_s21  ;;  %s7189_s27 = smov %s5243_s28 }
 0x4b6   : > { %s7190_s28 = smov %s5247_s29  ;;  %s7191_s29 = smov %s5593_s16 }
 0x4b7   : > { %s7192_s30 = smov %s5259_s9  ;;  %s7193_s8 = smov %s5263_s10 }
 0x4b8   : > { %s7194_s9 = smov %s7197_s18  ;;  %s7195_s10 = smov %s7201_s20 }
 0x4b9   :  { %25 = sbr.rel (!%p23_p9) target bundleno = 19 (0x13), region = 131 }
 0x4c0   :  { %3285 = vsyncpa [#allocation4], 1 }
 0x4c1   :  { %3287 = vsyncpa [#allocation4 + $0x1], 1 }
 0x4c2   :  { %3288 = vsyncpa [#allocation7], 1 }
 0x4c3   :  { %3289 = vsyncpa [#allocation10], 1 }
 0x4c4   :  { %3290 = vsyncpa [#allocation13], 1 }
 0x4c5   :  { %3291 = vsyncpa [#allocation5], 1 }
 0x4c6   :  { %3293 = vsyncpa [#allocation5 + $0x1], 1 }

</bundles_post_ra>
